<compile_context>
chip_gen: v7x
topology: tpu7x:2x2x1
jax: 0.10.0
libtpu: 0.0.40
codegen_flags: <defaults>
</compile_context>

<pallas_src>
import functools

import jax
import jax.numpy as jnp
from jax import lax
from jax.experimental import pallas as pl
from jax.experimental.pallas import tpu as pltpu


def _round_up(x, m):
    return (x + m - 1) // m * m


def _pick_tile_h(H, cap=16):
    """Largest divisor of H not exceeding `cap` (bounds per-tile VMEM on v7x)."""
    for d in range(min(H, cap), 0, -1):
        if H % d == 0:
            return d
    return 1


def _residual_block_kernel(
    xw_ref,    # (TILE_H+4, Wp, Cp) f32   input window (2-row halo, zero padded)
    w1_ref,    # (3, 3*Cp, Cq)      bf16  conv1 taps, packed [dy, dx*Cp + c, o]
    s1_ref,    # (1, Cq)            f32   folded BN1 scale
    t1_ref,    # (1, Cq)            f32   folded BN1 shift (incl. conv1 bias)
    w2_ref,    # (3, 3*Cq, Cq)      bf16  conv2 taps
    s2_ref,    # (1, Cq)            f32
    t2_ref,    # (1, Cq)            f32
    wsc_ref,   # (Cp, Cq)           bf16  1x1 projection shortcut
    ssc_ref,   # (1, Cq)            f32
    tsc_ref,   # (1, Cq)            f32
    o_ref,     # (TILE_H, Wp, Cq)   f32
    *, tile_h, H, W, Wp, Cp, Cq,
):
    t = pl.program_id(1)             # spatial tile index along H
    th2 = tile_h + 2                 # rows of the conv1 output (h1), incl. halo
    m1 = th2 * Wp
    m2 = tile_h * Wp

    xw = xw_ref[...]                 # (tile_h+4, Wp, Cp) f32, resident in VMEM

    def conv3x3(src, n_rows, w_ref, c_in):
        """3x3 'SAME' conv of src (n_rows+2, Wp, c_in) -> (n_rows*Wp, Cq) f32 acc.

        One MXU matmul per kernel row dy with K = 3*c_in: the dx = 0/1/2 taps are
        merged by concatenating left/center/right shifted operands along lanes.
        The +-1 shift along W == +-1 shift along the flattened (rows*Wp) axis
        (pltpu.roll), with the wrapped W-edge column masked to zero (= the conv's
        zero padding).  Slices along the leading row axis are free address math.
        """
        m = n_rows * Wp
        col = lax.broadcasted_iota(jnp.int32, (n_rows, Wp, c_in), 1).reshape(m, c_in)
        acc = jnp.zeros((m, Cq), jnp.float32)
        for dy in range(3):
            base = src[dy:dy + n_rows].reshape(m, c_in)
            # dx = 0 tap: value at w comes from w-1, zero at w == 0
            left = jnp.where(col > 0, pltpu.roll(base, 1, axis=0), 0.0)
            # dx = 2 tap: value at w comes from w+1, zero at w == Wp-1
            right = jnp.where(col < Wp - 1, pltpu.roll(base, m - 1, axis=0), 0.0)
            lhs = jnp.concatenate([left, base, right], axis=1).astype(jnp.bfloat16)
            acc = acc + jnp.dot(lhs, w_ref[dy], preferred_element_type=jnp.float32)
        return acc

    # ---- conv1 (+ folded BN1, ReLU) on tile_h + 2 rows (1-row halo for conv2) ----
    acc1 = conv3x3(xw, th2, w1_ref, Cp)
    h1 = jnp.maximum(acc1 * s1_ref[...] + t1_ref[...], 0.0)        # (m1, Cq)

    # zero h1 rows outside the image (conv2's zero padding in H) and padded W cols
    hrow = lax.broadcasted_iota(jnp.int32, (th2, Wp, Cq), 0).reshape(m1, Cq)
    wcol = lax.broadcasted_iota(jnp.int32, (th2, Wp, Cq), 1).reshape(m1, Cq)
    grow = t * tile_h - 1 + hrow                                   # global h1 row
    h1 = jnp.where((grow >= 0) & (grow < H) & (wcol < W), h1, 0.0)

    # ---- conv2 (+ folded BN2) ----
    acc2 = conv3x3(h1.reshape(th2, Wp, Cq), tile_h, w2_ref, Cq)
    y2 = acc2 * s2_ref[...] + t2_ref[...]                          # (m2, Cq)

    # ---- projection shortcut (1x1 conv + folded BN), reuses resident window ----
    xs = xw[2:2 + tile_h].reshape(m2, Cp).astype(jnp.bfloat16)
    sc = (jnp.dot(xs, wsc_ref[...], preferred_element_type=jnp.float32)
          * ssc_ref[...] + tsc_ref[...])

    out = jnp.maximum(y2 + sc, 0.0)                                # residual + ReLU
    o_ref[...] = out.reshape(tile_h, Wp, Cq)                       # lane-dense store


def residual_block_pallas(x_nchw, params):
    """x_nchw: (N, Cin, H, W) float32.  Returns (N, Cout, H, W) float32."""
    (w1, s1, t1, w2, s2, t2, wsc, ssc, tsc) = params
    N, Cin, H, W = x_nchw.shape
    Cout = w1.shape[-1]

    Cp = _round_up(Cin, 128)          # lane-dense input channels
    Cq = _round_up(Cout, 128)         # lane-dense output channels
    Wp = _round_up(W, 8)              # sublane-aligned width
    tile_h = _pick_tile_h(H)
    nt = H // tile_h

    # ---- layout plumbing: NHWC, zero-pad H by 2 (conv1+conv2 halo), W->Wp, C->Cp
    x = jnp.transpose(x_nchw, (0, 2, 3, 1)).astype(jnp.float32)
    xpad = jnp.pad(x, ((0, 0), (2, 2), (0, Wp - W), (0, Cp - Cin)))
    # overlapping (tile_h + 4)-row windows, one per spatial grid step
    ridx = jnp.arange(nt)[:, None] * tile_h + jnp.arange(tile_h + 4)[None, :]
    xwin = xpad[:, ridx]                                  # (N, nt, tile_h+4, Wp, Cp)

    # ---- weights: pad channels, merge the 3 dx taps along K, cast to bf16 ----
    w1p = jnp.zeros((3, 3, Cp, Cq), jnp.float32).at[:, :, :Cin, :Cout].set(w1)
    w1m = w1p.reshape(3, 3 * Cp, Cq).astype(jnp.bfloat16)
    w2p = jnp.zeros((3, 3, Cq, Cq), jnp.float32).at[:, :, :Cout, :Cout].set(w2)
    w2m = w2p.reshape(3, 3 * Cq, Cq).astype(jnp.bfloat16)
    wscp = jnp.zeros((Cp, Cq), jnp.float32).at[:Cin, :Cout].set(wsc).astype(jnp.bfloat16)

    pad_c = lambda v: jnp.zeros((1, Cq), jnp.float32).at[0, :Cout].set(v)
    s1r, t1r = pad_c(s1), pad_c(t1)
    s2r, t2r = pad_c(s2), pad_c(t2)
    sscr, tscr = pad_c(ssc), pad_c(tsc)

    kernel = functools.partial(_residual_block_kernel, tile_h=tile_h,
                               H=H, W=W, Wp=Wp, Cp=Cp, Cq=Cq)
    const = lambda shape: pl.BlockSpec(shape, lambda n, t: (0,) * len(shape))

    out = pl.pallas_call(
        kernel,
        out_shape=jax.ShapeDtypeStruct((N, H, Wp, Cq), jnp.float32),
        grid_spec=pltpu.PrefetchScalarGridSpec(
            num_scalar_prefetch=0,
            grid=(N, nt),
            in_specs=[
                pl.BlockSpec((None, None, tile_h + 4, Wp, Cp),
                             lambda n, t: (n, t, 0, 0, 0)),
                const((3, 3 * Cp, Cq)),
                const((1, Cq)), const((1, Cq)),
                const((3, 3 * Cq, Cq)),
                const((1, Cq)), const((1, Cq)),
                const((Cp, Cq)),
                const((1, Cq)), const((1, Cq)),
            ],
            out_specs=pl.BlockSpec((None, tile_h, Wp, Cq),
                                   lambda n, t: (n, t, 0, 0)),
        ),
        compiler_params=pltpu.CompilerParams(
            dimension_semantics=("parallel", "parallel"),
            vmem_limit_bytes=48 * 1024 * 1024,   # > v5e/v6e defaults, < v7x physical
        ),
    )(xwin, w1m, s1r, t1r, w2m, s2r, t2r, wscp, sscr, tscr)

    out = out[:, :, :W, :Cout]                   # drop layout padding (lane-dense store)
    return jnp.transpose(out, (0, 3, 1, 2))      # back to NCHW


def _fold_bn(gamma, beta, mean, var, bias=None, eps=1e-5):
    scale = gamma / jnp.sqrt(var + eps)
    shift = beta - mean * scale
    if bias is not None:
        shift = shift + scale * bias
    return scale, shift


def make_params(key, Cin, Cout):
    ks = jax.random.split(key, 8)
    w1 = 0.1 * jax.random.normal(ks[0], (3, 3, Cin, Cout), jnp.float32)   # HWIO
    b1 = 0.1 * jax.random.normal(ks[1], (Cout,), jnp.float32)
    w2 = 0.1 * jax.random.normal(ks[2], (3, 3, Cout, Cout), jnp.float32)
    b2 = 0.1 * jax.random.normal(ks[3], (Cout,), jnp.float32)
    wsc = 0.1 * jax.random.normal(ks[4], (Cin, Cout), jnp.float32)        # 1x1 conv

    def bn_params(k):
        k1, k2, k3, k4 = jax.random.split(k, 4)
        gamma = 1.0 + 0.1 * jax.random.normal(k1, (Cout,), jnp.float32)
        beta = 0.1 * jax.random.normal(k2, (Cout,), jnp.float32)
        mean = 0.1 * jax.random.normal(k3, (Cout,), jnp.float32)
        var = 1.0 + 0.1 * jax.random.uniform(k4, (Cout,), jnp.float32)
        return gamma, beta, mean, var

    s1, t1 = _fold_bn(*bn_params(ks[5]), bias=b1)
    s2, t2 = _fold_bn(*bn_params(ks[6]), bias=b2)
    ssc, tsc = _fold_bn(*bn_params(ks[7]), bias=None)
    return (w1, s1, t1, w2, s2, t2, wsc, ssc, tsc)


def residual_block_ref(x_nchw, params):
    """Pure-JAX reference (NHWC lax.conv) with matching bf16 operand rounding."""
    (w1, s1, t1, w2, s2, t2, wsc, ssc, tsc) = params
    bf = lambda a: a.astype(jnp.bfloat16).astype(jnp.float32)
    dn = ("NHWC", "HWIO", "NHWC")
    hi = lax.Precision.HIGHEST
    x = jnp.transpose(x_nchw, (0, 2, 3, 1))
    y = lax.conv_general_dilated(bf(x), bf(w1), (1, 1), "SAME",
                                 dimension_numbers=dn, precision=hi)
    h1 = jnp.maximum(y * s1 + t1, 0.0)
    y2 = lax.conv_general_dilated(bf(h1), bf(w2), (1, 1), "SAME",
                                  dimension_numbers=dn, precision=hi)
    y2 = y2 * s2 + t2
    sc = jnp.einsum("nhwc,cd->nhwd", bf(x), bf(wsc), precision=hi) * ssc + tsc
    out = jnp.maximum(y2 + sc, 0.0)
    return jnp.transpose(out, (0, 3, 1, 2))


if __name__ == "__main__":
    N, Cin, Cout, H, W = 2, 4, 8, 16, 16   # stride=1, Cin != Cout -> projection shortcut
    key = jax.random.PRNGKey(0)
    kx, kp = jax.random.split(key)
    x = jax.random.normal(kx, (N, Cin, H, W), jnp.float32)   # NCHW (PyTorch layout)
    params = make_params(kp, Cin, Cout)

    out = jax.jit(residual_block_pallas)(x, params)
    out = jax.block_until_ready(out)

    ref = residual_block_ref(x, params)
    assert out.shape == (N, Cout, H, W)
    err = float(jnp.max(jnp.abs(out - ref)))
    assert jnp.allclose(out, ref, atol=1e-2, rtol=1e-2), f"max abs err {err}"

    print("KERNEL_OK")
</pallas_src>

<mosaic_0001>
module attributes {stable_mosaic.version = 11 : i64} {
  func.func @_residual_block_kernel(%arg0: i32, %arg1: i32, %arg2: memref<1x1x20x16x128xf32, #tpu.memory_space<vmem>>, %arg3: memref<3x384x128xbf16, #tpu.memory_space<vmem>>, %arg4: memref<1x128xf32, #tpu.memory_space<vmem>>, %arg5: memref<1x128xf32, #tpu.memory_space<vmem>>, %arg6: memref<3x384x128xbf16, #tpu.memory_space<vmem>>, %arg7: memref<1x128xf32, #tpu.memory_space<vmem>>, %arg8: memref<1x128xf32, #tpu.memory_space<vmem>>, %arg9: memref<128x128xbf16, #tpu.memory_space<vmem>>, %arg10: memref<1x128xf32, #tpu.memory_space<vmem>>, %arg11: memref<1x128xf32, #tpu.memory_space<vmem>>, %arg12: memref<1x16x16x128xf32, #tpu.memory_space<vmem>>) attributes {dimension_semantics = [#tpu.dimension_semantics<parallel>, #tpu.dimension_semantics<parallel>], iteration_bounds = array<i64: 2, 1>, scalar_prefetch = 0 : i64, scratch_operands = 0 : i64, tpu.core_type = #tpu.core_type<tc>, window_params = [{transform_indices = @transform_0, window_bounds = array<i64: 1, 1, 20, 16, 128>}, {pipeline_mode = #tpu.pipeline_mode<synchronous>, transform_indices = @transform_1, window_bounds = array<i64: 3, 384, 128>}, {pipeline_mode = #tpu.pipeline_mode<synchronous>, transform_indices = @transform_2, window_bounds = array<i64: 1, 128>}, {pipeline_mode = #tpu.pipeline_mode<synchronous>, transform_indices = @transform_3, window_bounds = array<i64: 1, 128>}, {pipeline_mode = #tpu.pipeline_mode<synchronous>, transform_indices = @transform_4, window_bounds = array<i64: 3, 384, 128>}, {pipeline_mode = #tpu.pipeline_mode<synchronous>, transform_indices = @transform_5, window_bounds = array<i64: 1, 128>}, {pipeline_mode = #tpu.pipeline_mode<synchronous>, transform_indices = @transform_6, window_bounds = array<i64: 1, 128>}, {pipeline_mode = #tpu.pipeline_mode<synchronous>, transform_indices = @transform_7, window_bounds = array<i64: 128, 128>}, {pipeline_mode = #tpu.pipeline_mode<synchronous>, transform_indices = @transform_8, window_bounds = array<i64: 1, 128>}, {pipeline_mode = #tpu.pipeline_mode<synchronous>, transform_indices = @transform_9, window_bounds = array<i64: 1, 128>}, {transform_indices = @transform_10, window_bounds = array<i64: 1, 16, 16, 128>}]} {
    %c0 = arith.constant 0 : index
    %c0_0 = arith.constant 0 : index
    %c0_1 = arith.constant 0 : index
    %c0_2 = arith.constant 0 : index
    %c0_3 = arith.constant 0 : index
    %0 = vector.load %arg2[%c0, %c0_0, %c0_1, %c0_2, %c0_3] : memref<1x1x20x16x128xf32, #tpu.memory_space<vmem>>, vector<1x1x20x16x128xf32>
    %1 = vector.shape_cast %0 : vector<1x1x20x16x128xf32> to vector<20x16x128xf32>
    %2 = tpu.iota {dimensions = array<i32: 1>} : vector<18x16x128xi32>
    %3 = vector.shape_cast %2 : vector<18x16x128xi32> to vector<288x128xi32>
    %cst = arith.constant 0.000000e+00 : f32
    %4 = vector.broadcast %cst : f32 to vector<288x128xf32>
    %5 = vector.extract_strided_slice %1 {offsets = [0, 0, 0], sizes = [18, 16, 128], strides = [1, 1, 1]} : vector<20x16x128xf32> to vector<18x16x128xf32>
    %6 = vector.shape_cast %5 : vector<18x16x128xf32> to vector<288x128xf32>
    %c0_i32 = arith.constant 0 : i32
    %7 = vector.broadcast %c0_i32 : i32 to vector<288x128xi32>
    %8 = arith.cmpi sgt, %3, %7 : vector<288x128xi32>
    %c1_i32 = arith.constant 1 : i32
    %9 = tpu.dynamic_rotate %6 by %c1_i32 dim 0 : vector<288x128xf32>, i32 -> vector<288x128xf32>
    %cst_4 = arith.constant 0.000000e+00 : f32
    %10 = vector.broadcast %cst_4 : f32 to vector<288x128xf32>
    %11 = arith.select %8, %9, %10 : vector<288x128xi1>, vector<288x128xf32>
    %c15_i32 = arith.constant 15 : i32
    %12 = vector.broadcast %c15_i32 : i32 to vector<288x128xi32>
    %13 = arith.cmpi slt, %3, %12 : vector<288x128xi32>
    %c287_i32 = arith.constant 287 : i32
    %14 = tpu.dynamic_rotate %6 by %c287_i32 dim 0 : vector<288x128xf32>, i32 -> vector<288x128xf32>
    %cst_5 = arith.constant 0.000000e+00 : f32
    %15 = vector.broadcast %cst_5 : f32 to vector<288x128xf32>
    %16 = arith.select %13, %14, %15 : vector<288x128xi1>, vector<288x128xf32>
    %17 = tpu.concatenate %11, %6, %16 in 1 : vector<288x128xf32>, vector<288x128xf32>, vector<288x128xf32> -> vector<288x384xf32>
    %18 = arith.truncf %17 : vector<288x384xf32> to vector<288x384xbf16>
    %c0_6 = arith.constant 0 : index
    %c0_7 = arith.constant 0 : index
    %c0_8 = arith.constant 0 : index
    %19 = vector.load %arg3[%c0_6, %c0_7, %c0_8] : memref<3x384x128xbf16, #tpu.memory_space<vmem>>, vector<1x384x128xbf16>
    %20 = vector.shape_cast %19 : vector<1x384x128xbf16> to vector<384x128xbf16>
    %cst_9 = arith.constant dense<0.000000e+00> : vector<288x128xf32>
    %21 = tpu.matmul %18, %20, %cst_9 {dimension_numbers = #tpu.dot_dimension_numbers<[1], [0], [0], [1], [0, 0, 1, 1], [], []>} : vector<288x384xbf16>, vector<384x128xbf16>, vector<288x128xf32> -> vector<288x128xf32>
    %22 = arith.addf %4, %21 : vector<288x128xf32>
    %23 = vector.extract_strided_slice %1 {offsets = [1, 0, 0], sizes = [18, 16, 128], strides = [1, 1, 1]} : vector<20x16x128xf32> to vector<18x16x128xf32>
    %24 = vector.shape_cast %23 : vector<18x16x128xf32> to vector<288x128xf32>
    %c0_i32_10 = arith.constant 0 : i32
    %25 = vector.broadcast %c0_i32_10 : i32 to vector<288x128xi32>
    %26 = arith.cmpi sgt, %3, %25 : vector<288x128xi32>
    %c1_i32_11 = arith.constant 1 : i32
    %27 = tpu.dynamic_rotate %24 by %c1_i32_11 dim 0 : vector<288x128xf32>, i32 -> vector<288x128xf32>
    %cst_12 = arith.constant 0.000000e+00 : f32
    %28 = vector.broadcast %cst_12 : f32 to vector<288x128xf32>
    %29 = arith.select %26, %27, %28 : vector<288x128xi1>, vector<288x128xf32>
    %c15_i32_13 = arith.constant 15 : i32
    %30 = vector.broadcast %c15_i32_13 : i32 to vector<288x128xi32>
    %31 = arith.cmpi slt, %3, %30 : vector<288x128xi32>
    %c287_i32_14 = arith.constant 287 : i32
    %32 = tpu.dynamic_rotate %24 by %c287_i32_14 dim 0 : vector<288x128xf32>, i32 -> vector<288x128xf32>
    %cst_15 = arith.constant 0.000000e+00 : f32
    %33 = vector.broadcast %cst_15 : f32 to vector<288x128xf32>
    %34 = arith.select %31, %32, %33 : vector<288x128xi1>, vector<288x128xf32>
    %35 = tpu.concatenate %29, %24, %34 in 1 : vector<288x128xf32>, vector<288x128xf32>, vector<288x128xf32> -> vector<288x384xf32>
    %36 = arith.truncf %35 : vector<288x384xf32> to vector<288x384xbf16>
    %c1 = arith.constant 1 : index
    %c0_16 = arith.constant 0 : index
    %c0_17 = arith.constant 0 : index
    %37 = vector.load %arg3[%c1, %c0_16, %c0_17] : memref<3x384x128xbf16, #tpu.memory_space<vmem>>, vector<1x384x128xbf16>
    %38 = vector.shape_cast %37 : vector<1x384x128xbf16> to vector<384x128xbf16>
    %cst_18 = arith.constant dense<0.000000e+00> : vector<288x128xf32>
    %39 = tpu.matmul %36, %38, %cst_18 {dimension_numbers = #tpu.dot_dimension_numbers<[1], [0], [0], [1], [0, 0, 1, 1], [], []>} : vector<288x384xbf16>, vector<384x128xbf16>, vector<288x128xf32> -> vector<288x128xf32>
    %40 = arith.addf %22, %39 : vector<288x128xf32>
    %41 = vector.extract_strided_slice %1 {offsets = [2, 0, 0], sizes = [18, 16, 128], strides = [1, 1, 1]} : vector<20x16x128xf32> to vector<18x16x128xf32>
    %42 = vector.shape_cast %41 : vector<18x16x128xf32> to vector<288x128xf32>
    %c0_i32_19 = arith.constant 0 : i32
    %43 = vector.broadcast %c0_i32_19 : i32 to vector<288x128xi32>
    %44 = arith.cmpi sgt, %3, %43 : vector<288x128xi32>
    %c1_i32_20 = arith.constant 1 : i32
    %45 = tpu.dynamic_rotate %42 by %c1_i32_20 dim 0 : vector<288x128xf32>, i32 -> vector<288x128xf32>
    %cst_21 = arith.constant 0.000000e+00 : f32
    %46 = vector.broadcast %cst_21 : f32 to vector<288x128xf32>
    %47 = arith.select %44, %45, %46 : vector<288x128xi1>, vector<288x128xf32>
    %c15_i32_22 = arith.constant 15 : i32
    %48 = vector.broadcast %c15_i32_22 : i32 to vector<288x128xi32>
    %49 = arith.cmpi slt, %3, %48 : vector<288x128xi32>
    %c287_i32_23 = arith.constant 287 : i32
    %50 = tpu.dynamic_rotate %42 by %c287_i32_23 dim 0 : vector<288x128xf32>, i32 -> vector<288x128xf32>
    %cst_24 = arith.constant 0.000000e+00 : f32
    %51 = vector.broadcast %cst_24 : f32 to vector<288x128xf32>
    %52 = arith.select %49, %50, %51 : vector<288x128xi1>, vector<288x128xf32>
    %53 = tpu.concatenate %47, %42, %52 in 1 : vector<288x128xf32>, vector<288x128xf32>, vector<288x128xf32> -> vector<288x384xf32>
    %54 = arith.truncf %53 : vector<288x384xf32> to vector<288x384xbf16>
    %c2 = arith.constant 2 : index
    %c0_25 = arith.constant 0 : index
    %c0_26 = arith.constant 0 : index
    %55 = vector.load %arg3[%c2, %c0_25, %c0_26] : memref<3x384x128xbf16, #tpu.memory_space<vmem>>, vector<1x384x128xbf16>
    %56 = vector.shape_cast %55 : vector<1x384x128xbf16> to vector<384x128xbf16>
    %cst_27 = arith.constant dense<0.000000e+00> : vector<288x128xf32>
    %57 = tpu.matmul %54, %56, %cst_27 {dimension_numbers = #tpu.dot_dimension_numbers<[1], [0], [0], [1], [0, 0, 1, 1], [], []>} : vector<288x384xbf16>, vector<384x128xbf16>, vector<288x128xf32> -> vector<288x128xf32>
    %58 = arith.addf %40, %57 : vector<288x128xf32>
    %c0_28 = arith.constant 0 : index
    %c0_29 = arith.constant 0 : index
    %59 = vector.load %arg4[%c0_28, %c0_29] : memref<1x128xf32, #tpu.memory_space<vmem>>, vector<1x128xf32>
    %60 = vector.broadcast %59 : vector<1x128xf32> to vector<288x128xf32>
    %61 = arith.mulf %58, %60 : vector<288x128xf32>
    %c0_30 = arith.constant 0 : index
    %c0_31 = arith.constant 0 : index
    %62 = vector.load %arg5[%c0_30, %c0_31] : memref<1x128xf32, #tpu.memory_space<vmem>>, vector<1x128xf32>
    %63 = vector.broadcast %62 : vector<1x128xf32> to vector<288x128xf32>
    %64 = arith.addf %61, %63 : vector<288x128xf32>
    %cst_32 = arith.constant 0.000000e+00 : f32
    %65 = vector.broadcast %cst_32 : f32 to vector<288x128xf32>
    %66 = arith.maximumf %64, %65 : vector<288x128xf32>
    %67 = tpu.iota {dimensions = array<i32: 0>} : vector<18x16x128xi32>
    %68 = vector.shape_cast %67 : vector<18x16x128xi32> to vector<288x128xi32>
    %69 = tpu.iota {dimensions = array<i32: 1>} : vector<18x16x128xi32>
    %70 = vector.shape_cast %69 : vector<18x16x128xi32> to vector<288x128xi32>
    %c16_i32 = arith.constant 16 : i32
    %71 = arith.muli %arg1, %c16_i32 : i32
    %c1_i32_33 = arith.constant 1 : i32
    %72 = arith.subi %71, %c1_i32_33 : i32
    %73 = vector.broadcast %72 : i32 to vector<288x128xi32>
    %74 = arith.addi %73, %68 : vector<288x128xi32>
    %c0_i32_34 = arith.constant 0 : i32
    %75 = vector.broadcast %c0_i32_34 : i32 to vector<288x128xi32>
    %76 = arith.cmpi sge, %74, %75 : vector<288x128xi32>
    %c16_i32_35 = arith.constant 16 : i32
    %77 = vector.broadcast %c16_i32_35 : i32 to vector<288x128xi32>
    %78 = arith.cmpi slt, %74, %77 : vector<288x128xi32>
    %79 = arith.andi %76, %78 : vector<288x128xi1>
    %c16_i32_36 = arith.constant 16 : i32
    %80 = vector.broadcast %c16_i32_36 : i32 to vector<288x128xi32>
    %81 = arith.cmpi slt, %70, %80 : vector<288x128xi32>
    %82 = arith.andi %79, %81 : vector<288x128xi1>
    %cst_37 = arith.constant 0.000000e+00 : f32
    %83 = vector.broadcast %cst_37 : f32 to vector<288x128xf32>
    %84 = arith.select %82, %66, %83 : vector<288x128xi1>, vector<288x128xf32>
    %85 = vector.shape_cast %84 : vector<288x128xf32> to vector<18x16x128xf32>
    %86 = tpu.iota {dimensions = array<i32: 1>} : vector<16x16x128xi32>
    %87 = vector.shape_cast %86 : vector<16x16x128xi32> to vector<256x128xi32>
    %cst_38 = arith.constant 0.000000e+00 : f32
    %88 = vector.broadcast %cst_38 : f32 to vector<256x128xf32>
    %89 = vector.extract_strided_slice %85 {offsets = [0, 0, 0], sizes = [16, 16, 128], strides = [1, 1, 1]} : vector<18x16x128xf32> to vector<16x16x128xf32>
    %90 = vector.shape_cast %89 : vector<16x16x128xf32> to vector<256x128xf32>
    %c0_i32_39 = arith.constant 0 : i32
    %91 = vector.broadcast %c0_i32_39 : i32 to vector<256x128xi32>
    %92 = arith.cmpi sgt, %87, %91 : vector<256x128xi32>
    %c1_i32_40 = arith.constant 1 : i32
    %93 = tpu.dynamic_rotate %90 by %c1_i32_40 dim 0 : vector<256x128xf32>, i32 -> vector<256x128xf32>
    %cst_41 = arith.constant 0.000000e+00 : f32
    %94 = vector.broadcast %cst_41 : f32 to vector<256x128xf32>
    %95 = arith.select %92, %93, %94 : vector<256x128xi1>, vector<256x128xf32>
    %c15_i32_42 = arith.constant 15 : i32
    %96 = vector.broadcast %c15_i32_42 : i32 to vector<256x128xi32>
    %97 = arith.cmpi slt, %87, %96 : vector<256x128xi32>
    %c255_i32 = arith.constant 255 : i32
    %98 = tpu.dynamic_rotate %90 by %c255_i32 dim 0 : vector<256x128xf32>, i32 -> vector<256x128xf32>
    %cst_43 = arith.constant 0.000000e+00 : f32
    %99 = vector.broadcast %cst_43 : f32 to vector<256x128xf32>
    %100 = arith.select %97, %98, %99 : vector<256x128xi1>, vector<256x128xf32>
    %101 = tpu.concatenate %95, %90, %100 in 1 : vector<256x128xf32>, vector<256x128xf32>, vector<256x128xf32> -> vector<256x384xf32>
    %102 = arith.truncf %101 : vector<256x384xf32> to vector<256x384xbf16>
    %c0_44 = arith.constant 0 : index
    %c0_45 = arith.constant 0 : index
    %c0_46 = arith.constant 0 : index
    %103 = vector.load %arg6[%c0_44, %c0_45, %c0_46] : memref<3x384x128xbf16, #tpu.memory_space<vmem>>, vector<1x384x128xbf16>
    %104 = vector.shape_cast %103 : vector<1x384x128xbf16> to vector<384x128xbf16>
    %cst_47 = arith.constant dense<0.000000e+00> : vector<256x128xf32>
    %105 = tpu.matmul %102, %104, %cst_47 {dimension_numbers = #tpu.dot_dimension_numbers<[1], [0], [0], [1], [0, 0, 1, 1], [], []>} : vector<256x384xbf16>, vector<384x128xbf16>, vector<256x128xf32> -> vector<256x128xf32>
    %106 = arith.addf %88, %105 : vector<256x128xf32>
    %107 = vector.extract_strided_slice %85 {offsets = [1, 0, 0], sizes = [16, 16, 128], strides = [1, 1, 1]} : vector<18x16x128xf32> to vector<16x16x128xf32>
    %108 = vector.shape_cast %107 : vector<16x16x128xf32> to vector<256x128xf32>
    %c0_i32_48 = arith.constant 0 : i32
    %109 = vector.broadcast %c0_i32_48 : i32 to vector<256x128xi32>
    %110 = arith.cmpi sgt, %87, %109 : vector<256x128xi32>
    %c1_i32_49 = arith.constant 1 : i32
    %111 = tpu.dynamic_rotate %108 by %c1_i32_49 dim 0 : vector<256x128xf32>, i32 -> vector<256x128xf32>
    %cst_50 = arith.constant 0.000000e+00 : f32
    %112 = vector.broadcast %cst_50 : f32 to vector<256x128xf32>
    %113 = arith.select %110, %111, %112 : vector<256x128xi1>, vector<256x128xf32>
    %c15_i32_51 = arith.constant 15 : i32
    %114 = vector.broadcast %c15_i32_51 : i32 to vector<256x128xi32>
    %115 = arith.cmpi slt, %87, %114 : vector<256x128xi32>
    %c255_i32_52 = arith.constant 255 : i32
    %116 = tpu.dynamic_rotate %108 by %c255_i32_52 dim 0 : vector<256x128xf32>, i32 -> vector<256x128xf32>
    %cst_53 = arith.constant 0.000000e+00 : f32
    %117 = vector.broadcast %cst_53 : f32 to vector<256x128xf32>
    %118 = arith.select %115, %116, %117 : vector<256x128xi1>, vector<256x128xf32>
    %119 = tpu.concatenate %113, %108, %118 in 1 : vector<256x128xf32>, vector<256x128xf32>, vector<256x128xf32> -> vector<256x384xf32>
    %120 = arith.truncf %119 : vector<256x384xf32> to vector<256x384xbf16>
    %c1_54 = arith.constant 1 : index
    %c0_55 = arith.constant 0 : index
    %c0_56 = arith.constant 0 : index
    %121 = vector.load %arg6[%c1_54, %c0_55, %c0_56] : memref<3x384x128xbf16, #tpu.memory_space<vmem>>, vector<1x384x128xbf16>
    %122 = vector.shape_cast %121 : vector<1x384x128xbf16> to vector<384x128xbf16>
    %cst_57 = arith.constant dense<0.000000e+00> : vector<256x128xf32>
    %123 = tpu.matmul %120, %122, %cst_57 {dimension_numbers = #tpu.dot_dimension_numbers<[1], [0], [0], [1], [0, 0, 1, 1], [], []>} : vector<256x384xbf16>, vector<384x128xbf16>, vector<256x128xf32> -> vector<256x128xf32>
    %124 = arith.addf %106, %123 : vector<256x128xf32>
    %125 = vector.extract_strided_slice %85 {offsets = [2, 0, 0], sizes = [16, 16, 128], strides = [1, 1, 1]} : vector<18x16x128xf32> to vector<16x16x128xf32>
    %126 = vector.shape_cast %125 : vector<16x16x128xf32> to vector<256x128xf32>
    %c0_i32_58 = arith.constant 0 : i32
    %127 = vector.broadcast %c0_i32_58 : i32 to vector<256x128xi32>
    %128 = arith.cmpi sgt, %87, %127 : vector<256x128xi32>
    %c1_i32_59 = arith.constant 1 : i32
    %129 = tpu.dynamic_rotate %126 by %c1_i32_59 dim 0 : vector<256x128xf32>, i32 -> vector<256x128xf32>
    %cst_60 = arith.constant 0.000000e+00 : f32
    %130 = vector.broadcast %cst_60 : f32 to vector<256x128xf32>
    %131 = arith.select %128, %129, %130 : vector<256x128xi1>, vector<256x128xf32>
    %c15_i32_61 = arith.constant 15 : i32
    %132 = vector.broadcast %c15_i32_61 : i32 to vector<256x128xi32>
    %133 = arith.cmpi slt, %87, %132 : vector<256x128xi32>
    %c255_i32_62 = arith.constant 255 : i32
    %134 = tpu.dynamic_rotate %126 by %c255_i32_62 dim 0 : vector<256x128xf32>, i32 -> vector<256x128xf32>
    %cst_63 = arith.constant 0.000000e+00 : f32
    %135 = vector.broadcast %cst_63 : f32 to vector<256x128xf32>
    %136 = arith.select %133, %134, %135 : vector<256x128xi1>, vector<256x128xf32>
    %137 = tpu.concatenate %131, %126, %136 in 1 : vector<256x128xf32>, vector<256x128xf32>, vector<256x128xf32> -> vector<256x384xf32>
    %138 = arith.truncf %137 : vector<256x384xf32> to vector<256x384xbf16>
    %c2_64 = arith.constant 2 : index
    %c0_65 = arith.constant 0 : index
    %c0_66 = arith.constant 0 : index
    %139 = vector.load %arg6[%c2_64, %c0_65, %c0_66] : memref<3x384x128xbf16, #tpu.memory_space<vmem>>, vector<1x384x128xbf16>
    %140 = vector.shape_cast %139 : vector<1x384x128xbf16> to vector<384x128xbf16>
    %cst_67 = arith.constant dense<0.000000e+00> : vector<256x128xf32>
    %141 = tpu.matmul %138, %140, %cst_67 {dimension_numbers = #tpu.dot_dimension_numbers<[1], [0], [0], [1], [0, 0, 1, 1], [], []>} : vector<256x384xbf16>, vector<384x128xbf16>, vector<256x128xf32> -> vector<256x128xf32>
    %142 = arith.addf %124, %141 : vector<256x128xf32>
    %c0_68 = arith.constant 0 : index
    %c0_69 = arith.constant 0 : index
    %143 = vector.load %arg7[%c0_68, %c0_69] : memref<1x128xf32, #tpu.memory_space<vmem>>, vector<1x128xf32>
    %144 = vector.broadcast %143 : vector<1x128xf32> to vector<256x128xf32>
    %145 = arith.mulf %142, %144 : vector<256x128xf32>
    %c0_70 = arith.constant 0 : index
    %c0_71 = arith.constant 0 : index
    %146 = vector.load %arg8[%c0_70, %c0_71] : memref<1x128xf32, #tpu.memory_space<vmem>>, vector<1x128xf32>
    %147 = vector.broadcast %146 : vector<1x128xf32> to vector<256x128xf32>
    %148 = arith.addf %145, %147 : vector<256x128xf32>
    %149 = vector.extract_strided_slice %1 {offsets = [2, 0, 0], sizes = [16, 16, 128], strides = [1, 1, 1]} : vector<20x16x128xf32> to vector<16x16x128xf32>
    %150 = vector.shape_cast %149 : vector<16x16x128xf32> to vector<256x128xf32>
    %151 = arith.truncf %150 : vector<256x128xf32> to vector<256x128xbf16>
    %c0_72 = arith.constant 0 : index
    %c0_73 = arith.constant 0 : index
    %152 = vector.load %arg9[%c0_72, %c0_73] : memref<128x128xbf16, #tpu.memory_space<vmem>>, vector<128x128xbf16>
    %cst_74 = arith.constant dense<0.000000e+00> : vector<256x128xf32>
    %153 = tpu.matmul %151, %152, %cst_74 {dimension_numbers = #tpu.dot_dimension_numbers<[1], [0], [0], [1], [0, 0, 1, 1], [], []>} : vector<256x128xbf16>, vector<128x128xbf16>, vector<256x128xf32> -> vector<256x128xf32>
    %c0_75 = arith.constant 0 : index
    %c0_76 = arith.constant 0 : index
    %154 = vector.load %arg10[%c0_75, %c0_76] : memref<1x128xf32, #tpu.memory_space<vmem>>, vector<1x128xf32>
    %155 = vector.broadcast %154 : vector<1x128xf32> to vector<256x128xf32>
    %156 = arith.mulf %153, %155 : vector<256x128xf32>
    %c0_77 = arith.constant 0 : index
    %c0_78 = arith.constant 0 : index
    %157 = vector.load %arg11[%c0_77, %c0_78] : memref<1x128xf32, #tpu.memory_space<vmem>>, vector<1x128xf32>
    %158 = vector.broadcast %157 : vector<1x128xf32> to vector<256x128xf32>
    %159 = arith.addf %156, %158 : vector<256x128xf32>
    %160 = arith.addf %148, %159 : vector<256x128xf32>
    %cst_79 = arith.constant 0.000000e+00 : f32
    %161 = vector.broadcast %cst_79 : f32 to vector<256x128xf32>
    %162 = arith.maximumf %160, %161 : vector<256x128xf32>
    %163 = vector.shape_cast %162 : vector<256x128xf32> to vector<16x16x128xf32>
    %c0_80 = arith.constant 0 : index
    %c0_81 = arith.constant 0 : index
    %c0_82 = arith.constant 0 : index
    %c0_83 = arith.constant 0 : index
    %164 = vector.load %arg12[%c0_80, %c0_81, %c0_82, %c0_83] : memref<1x16x16x128xf32, #tpu.memory_space<vmem>>, vector<1x16x16x128xf32>
    %165 = vector.shape_cast %164 : vector<1x16x16x128xf32> to vector<16x16x128xf32>
    %166 = vector.shape_cast %163 : vector<16x16x128xf32> to vector<1x16x16x128xf32>
    tpu.vector_store %arg12[%c0_80, %c0_81, %c0_82, %c0_83], %166 {strides = array<i32>} : memref<1x16x16x128xf32, #tpu.memory_space<vmem>>, vector<1x16x16x128xf32>,
    return
  }
  func.func @transform_0(%arg0: i32, %arg1: i32) -> (i32, i32, i32, i32, i32) {
    %c0_i32 = arith.constant 0 : i32
    %c0_i32_0 = arith.constant 0 : i32
    %c0_i32_1 = arith.constant 0 : i32
    %c0_i32_2 = arith.constant 0 : i32
    return %arg0, %arg1, %c0_i32, %c0_i32_0, %c0_i32_1 : i32, i32, i32, i32, i32
  }
  func.func @transform_1(%arg0: i32, %arg1: i32) -> (i32, i32, i32) {
    %c0_i32 = arith.constant 0 : i32
    %c0_i32_0 = arith.constant 0 : i32
    %c0_i32_1 = arith.constant 0 : i32
    %c0_i32_2 = arith.constant 0 : i32
    return %c0_i32, %c0_i32_0, %c0_i32_1 : i32, i32, i32
  }
  func.func @transform_2(%arg0: i32, %arg1: i32) -> (i32, i32) {
    %c0_i32 = arith.constant 0 : i32
    %c0_i32_0 = arith.constant 0 : i32
    %c0_i32_1 = arith.constant 0 : i32
    return %c0_i32, %c0_i32_0 : i32, i32
  }
  func.func @transform_3(%arg0: i32, %arg1: i32) -> (i32, i32) {
    %c0_i32 = arith.constant 0 : i32
    %c0_i32_0 = arith.constant 0 : i32
    %c0_i32_1 = arith.constant 0 : i32
    return %c0_i32, %c0_i32_0 : i32, i32
  }
  func.func @transform_4(%arg0: i32, %arg1: i32) -> (i32, i32, i32) {
    %c0_i32 = arith.constant 0 : i32
    %c0_i32_0 = arith.constant 0 : i32
    %c0_i32_1 = arith.constant 0 : i32
    %c0_i32_2 = arith.constant 0 : i32
    return %c0_i32, %c0_i32_0, %c0_i32_1 : i32, i32, i32
  }
  func.func @transform_5(%arg0: i32, %arg1: i32) -> (i32, i32) {
    %c0_i32 = arith.constant 0 : i32
    %c0_i32_0 = arith.constant 0 : i32
    %c0_i32_1 = arith.constant 0 : i32
    return %c0_i32, %c0_i32_0 : i32, i32
  }
  func.func @transform_6(%arg0: i32, %arg1: i32) -> (i32, i32) {
    %c0_i32 = arith.constant 0 : i32
    %c0_i32_0 = arith.constant 0 : i32
    %c0_i32_1 = arith.constant 0 : i32
    return %c0_i32, %c0_i32_0 : i32, i32
  }
  func.func @transform_7(%arg0: i32, %arg1: i32) -> (i32, i32) {
    %c0_i32 = arith.constant 0 : i32
    %c0_i32_0 = arith.constant 0 : i32
    %c0_i32_1 = arith.constant 0 : i32
    return %c0_i32, %c0_i32_0 : i32, i32
  }
  func.func @transform_8(%arg0: i32, %arg1: i32) -> (i32, i32) {
    %c0_i32 = arith.constant 0 : i32
    %c0_i32_0 = arith.constant 0 : i32
    %c0_i32_1 = arith.constant 0 : i32
    return %c0_i32, %c0_i32_0 : i32, i32
  }
  func.func @transform_9(%arg0: i32, %arg1: i32) -> (i32, i32) {
    %c0_i32 = arith.constant 0 : i32
    %c0_i32_0 = arith.constant 0 : i32
    %c0_i32_1 = arith.constant 0 : i32
    return %c0_i32, %c0_i32_0 : i32, i32
  }
  func.func @transform_10(%arg0: i32, %arg1: i32) -> (i32, i32, i32, i32) {
    %c0_i32 = arith.constant 0 : i32
    %c0_i32_0 = arith.constant 0 : i32
    %c0_i32_1 = arith.constant 0 : i32
    return %arg0, %arg1, %c0_i32, %c0_i32_0 : i32, i32, i32, i32
  }
}

</mosaic_0001>

<bundles_post_ra>
// kernel: residual_block_pallas.1
= control target key start
LH: loop header
LB: loop body
LE: loop exit
PB: predicated region body
PF: predicated region fallthrough
CT: control target
= control target key end

     0   :  { %s7432_s13 = smov 0   ;;  %s7434_s14 = smov 0   ;;  %s11170_s0 = inlined_call_operand.vmem [shape: f32[2,1,20,16,128], index: 0, kind: input, shape index: {}]   ;;  %s11171_s1 = inlined_call_operand.vmem [shape: bf16[3,384,128], index: 1, kind: input, shape index: {}]   ;;  %s11172_s2 = inlined_call_operand.vmem [shape: f32[1,128], index: 2, kind: input, shape index: {}]   ;;  %s11173_s3 = inlined_call_operand.vmem [shape: f32[1,128], index: 3, kind: input, shape index: {}]   ;;  %s11174_s4 = inlined_call_operand.vmem [shape: bf16[3,384,128], index: 4, kind: input, shape index: {}]   ;;  %s11175_s5 = inlined_call_operand.vmem [shape: f32[1,128], index: 5, kind: input, shape index: {}]   ;;  %s11176_s6 = inlined_call_operand.vmem [shape: f32[1,128], index: 6, kind: input, shape index: {}]   ;;  %s11177_s7 = inlined_call_operand.vmem [shape: bf16[128,128], index: 7, kind: input, shape index: {}]   ;;  %s11178_s8 = inlined_call_operand.vmem [shape: f32[1,128], index: 8, kind: input, shape index: {}]   ;;  %s11179_s9 = inlined_call_operand.vmem [shape: f32[1,128], index: 9, kind: input, shape index: {}]   ;;  %s11180_s10 = inlined_call_operand.vmem [shape: f32[2,16,16,128], index: 10, kind: output, shape index: {}]  }
   0x1   :  { %s7436_s15 = smov 0  }
   0x2 LB: > { %s32_s16 = sadd.s32 1, %s7367_s14  ;;  %p5142_p0 = scmp.ge.s32.totalorder %s7371_s15, 1  ;;  %s7371_s15 = sphi %s7436_s15, %s20_s15   ;;  %s7367_s14 = sphi %s7434_s14, %s11648_s14   ;;  %s7363_s13 = sphi %s7432_s13, %s11647_s13  }
   0x3   : > { %p34_p1 = scmp.ge.s32.totalorder %s32_s16, 2  ;;  %p332_p2 = scmp.lt.s32.totalorder %s7371_s15, 3 }
   0x5   : > { %s11650_s16 = smov (%p34_p1, %s32_s16), 0  ;;  %p333_p3 = pnand %p5142_p0, %p332_p2 }
   0x7   : > { %336 = sbr.rel (%p333_p3) target bundleno = 1801 (0x709), region = 60 }
   0xe   : > { %v7194_v0 = vld [vmem:[%s11171_s1 + $0xc0] sm:$0xff]   ;;  %v11182_v1 = vmov 0   ;;  %v7195_v2 = vld [vmem:[%s11171_s1 + $0xc8] sm:$0xff]   ;;  %p379_p4 = scmp.lt.s32.totalorder %s7363_s13, 1  ;;  %v7196_v3 = vld [vmem:[%s11171_s1 + $0xd0] sm:$0xff]   ;;  %v440_v6 = vlaneseq  ;;  %vm7374_vm4 = vmmov 1  }
   0xf   : > { %981 = vmatprep.subr.bf16.mxu0 %v11182_v1  ;;  %v7197_v4 = vld [vmem:[%s11171_s1 + $0xd8] sm:$0xff]   ;;  %v7198_v5 = vld [vmem:[%s11171_s1 + $0xe0] sm:$0xff]   ;;  %v7199_v9 = vld [vmem:[%s11171_s1 + $0xe8] sm:$0xff]   ;;  %v11292_v26 = vmov 0 }
  0x10   : > { %982 = vmatpush1.bf16.msra.mxu0 %v7194_v0  ;;  %s11652_s13 = smov (!%p379_p4, %s7363_s13), 1  ;;  %v7491_v11 = vshrl.u32 %v440_v6, 7  ;;  %v7496_v12 = vld [vmem:[%s11171_s1 + $0x140] sm:$0xff]   ;;  %v7516_v18 = vld [vmem:[%s11171_s1 + $0x148] sm:$0xff]   ;;  %v7200_v21 = vld [vmem:[%s11171_s1 + $0xf0] sm:$0xff]  }
  0x11   : > { %983 = vmatprep.subr.bf16.mxu0 %v11182_v1  ;;  %s7165_s25 = smul.u32 320, %s11652_s13  ;;  %6969 = vmatprep.subr.bf16.mxu1 %v7496_v12  ;;  %v7552_v27 = vld [vmem:[%s11171_s1 + $0x150] sm:$0xff]   ;;  %v7201_v29 = vld [vmem:[%s11171_s1 + $0xf8] sm:$0xff]   ;;  %v7202_v31 = vld [vmem:[%s11171_s1 + $0x100] sm:$0xff]  }
  0x12   : > { %6977 = vmatpush3.bf16.msra.mxu1 %v7496_v12  ;;  %vm481_vm0 = vcmp.lt.s32.totalorder %v7491_v11, 1  ;;  %vm592_vm1 = vcmp.lt.s32.totalorder %v7491_v11, 7  ;;  %v7569_v30 = vld [vmem:[%s11171_s1 + $0x158] sm:$0xff]   ;;  %v7580_v32 = vld [vmem:[%s11171_s1 + $0x160] sm:$0xff]   ;;  %v7203_v33 = vld [vmem:[%s11171_s1 + $0x108] sm:$0xff]   ;;  %v442_v40 = vadd.s32 8, %v7491_v11 }
  0x13   : > { %s7475_s30 = scalar_lea.vmem %s11170_s0, %s7165_s25  ;;  %6970 = vmatprep.subr.bf16.mxu1 %v7516_v18  ;;  %v7591_v34 = vld [vmem:[%s11171_s1 + $0x168] sm:$0xff]   ;;  %v7204_v35 = vld [vmem:[%s11171_s1 + $0x110] sm:$0xff]   ;;  %v7205_v37 = vld [vmem:[%s11171_s1 + $0x118] sm:$0xff]   ;;  %vm443_vm2 = vcmp.gt.s32.totalorder %v7491_v11, 0  ;;  %s6110_s25 = sshll.u32 %s11652_s13, 8 }
  0x14   : > { %984 = vmatpush1.bf16.msra.mxu0 %v7195_v2  ;;  %v7479_v7 = vld [vmem:[%s7475_s30 + $0x10] sm:$0xff]  ;;  %v7482_v8 = vld [vmem:[%s7475_s30 + $0x18] sm:$0xff]  ;;  %v7500_v13 = vld [vmem:[%s7475_s30 + $0x20] sm:$0xff]  ;;  %vm555_vm3 = vcmp.lt.s32.totalorder %v442_v40, 15  ;;  %s10986_s27 = scalar_lea.vmem %s11180_s10, %s6110_s25 }
  0x15   : > { %985 = vmatprep.subr.bf16.mxu0 %v11182_v1  ;;  %v7489_v10 = vpack.c.bf16 %v7482_v8, %v7479_v7  ;;  %v7503_v14 = vld [vmem:[%s7475_s30 + $0x28] sm:$0xff]  ;;  %v7506_v15 = vld [vmem:[%s7475_s30 + $0x138] sm:$0xff]  ;;  %v7510_v16 = vrot.slane %v7500_v13, 7  ;;  %v7527_v22 = vld [vmem:[%s7475_s30 + $0x30] sm:$0xff]  ;;  %v7623_v42 = vrot.slane %v7479_v7, 7  ;;  %v448_v44 = vrot.slane %v7482_v8, 7 }
  0x16   : > { %11286 = vst [vmem:[#allocation2_spill] sm:$0xff] %v7506_v15  ;;  %v450_v17 = vrot.slane %v7503_v14, 7  ;;  %v561_v19 = vrot.slane %v7503_v14, 1  ;;  %v11181_v20 = vrot.slane %v7506_v15, 7  ;;  %v562_v25 = vrot.slane %v7527_v22, 1  ;;  %6978 = vmatpush3.bf16.msra.mxu1 %v7516_v18  ;;  %v7604_v36 = vld [vmem:[%s11171_s1 + $0x170] sm:$0xff]   ;;  %vm7720_vm5 = vmpackc.low %vm7374_vm4, %vm443_vm2 }
  0x17   : > { %1013 = vmatprep.mubr.bf16.mxu0 %v7489_v10  ;;  %6971 = vmatprep.subr.bf16.mxu1 %v7552_v27  ;;  %v7612_v38 = vld [vmem:[%s7475_s30 + $0x128] sm:$0xff]  ;;  %v7206_v39 = vld [vmem:[%s11171_s1 + $0x120] sm:$0xff]   ;;  %v7620_v41 = vld [vmem:[%s7475_s30 + $0x38] sm:$0xff]  ;;  %v7635_v46 = vrot.slane %v7479_v7, 1  ;;  %v7651_v51 = vrot.slane %v7500_v13, 1  ;;  %v451_v52 = vrot.slane %v7527_v22, 7  ;;  %v7746_v60 = vpack.c.bf16 %v7503_v14, %v7500_v13 }
  0x18   : > { %986 = vmatpush1.bf16.msra.mxu0 %v7196_v3  ;;  %v7536_v23 = vsel %vm481_vm0, %v7510_v16, %v450_v17  ;;  %v7543_v24 = vsel %vm481_vm0, %v11181_v20, %v7510_v16  ;;  %v7560_v28 = vsel %vm592_vm1, %v561_v19, %v562_v25  ;;  %v7626_v43 = vld [vmem:[%s7475_s30 + $0x40] sm:$0xff]  ;;  %v7631_v45 = vld [vmem:[%s7475_s30 + $0x48] sm:$0xff]  ;;  %v7638_v47 = vld [vmem:[%s7475_s30 + $0x50] sm:$0xff]  ;;  %v7645_v49 = vrot.slane %v7612_v38, 7 }
  0x19   : > { %987 = vmatprep.subr.bf16.mxu0 %v11182_v1  ;;  %11287 = vst [vmem:[#allocation3_spill] sm:$0xff] %v7536_v23  ;;  %11288 = vst [vmem:[#allocation4_spill] sm:$0xff] %v7543_v24  ;;  %v7207_v48 = vld [vmem:[%s11171_s1 + $0x128] sm:$0xff]   ;;  %v7648_v50 = vld [vmem:[%s7475_s30 + $0x58] sm:$0xff]  ;;  %v452_v53 = vrot.slane %v7620_v41, 7  ;;  %v563_v54 = vrot.slane %v7620_v41, 1  ;;  %v623_v8 = vsel %vm592_vm1, %v7651_v51, %v561_v19 }
  0x1a   : > { %6979 = vmatpush3.bf16.msra.mxu1 %v7552_v27  ;;  %11289 = vst [vmem:[#allocation5_spill] sm:$0xff] %v7645_v49  ;;  %11290 = vst [vmem:[#allocation6_spill] sm:$0xff] %v7651_v51  ;;  %v453_v55 = vrot.slane %v7626_v43, 7  ;;  %v454_v56 = vrot.slane %v7631_v45, 7  ;;  %v564_v57 = vrot.slane %v7626_v43, 1  ;;  %v7208_v61 = vld [vmem:[%s11171_s1 + $0x130] sm:$0xff]  }
  0x1b   : > { %6972 = vmatprep.subr.bf16.mxu1 %v7569_v30  ;;  %v7667_v62 = vld [vmem:[%s7475_s30 + $0x60] sm:$0xff]  ;;  %v7670_v63 = vld [vmem:[%s7475_s30 + $0x68] sm:$0xff]  ;;  %v7673_v0 = vld [vmem:[%s7475_s30 + $0x70] sm:$0xff]  ;;  %v566_v6 = vrot.slane %v7638_v47, 1  ;;  %v11293_v26 = vsel %vm7720_vm5, 4294967295, %v11292_v26  ;;  %v7742_v59 = vrot.slane %v7612_v38, 1 }
  0x1c   : > { %988 = vmatpush1.bf16.msra.mxu0 %v7197_v4  ;;  %v7677_v2 = vld [vmem:[%s7475_s30 + $0x78] sm:$0xff]  ;;  %v7687_v4 = vsel %vm481_vm0, %v7623_v42, %v448_v44  ;;  %11294 = vst [vmem:[#allocation8_spill] sm:$0xff] %v11293_v26  ;;  %vm7731_vm6 = vmpackc.low %vm555_vm3, %vm7374_vm4  ;;  %v570_v14 = vrot.slane %v7673_v0, 1  ;;  %v8042_v24 = vld [vmem:[%s7475_s30 + $0xc8] sm:$0xff] }
  0x1d   : > { %989 = vmatprep.subr.bf16.mxu0 %v11182_v1  ;;  %v7209_v3 = vld [vmem:[%s11171_s1 + $0x138] sm:$0xff]   ;;  %11299 = vst [vmem:[#allocation11_spill] sm:$0xff] %v7742_v59  ;;  %11300 = vst [vmem:[#allocation12_spill] sm:$0xff] %v7746_v60 }
  0x1e   : > { %6980 = vmatpush3.bf16.msra.mxu1 %v7569_v30 }
  0x1f   : > { %6973 = vmatprep.subr.bf16.mxu1 %v7580_v32 }
  0x20   : > { %990 = vmatpush1.bf16.msra.mxu0 %v7198_v5  ;;  %v771_v5 = vsel %vm481_vm0, %v7645_v49, %v7623_v42 }
  0x21   : > { %991 = vmatprep.subr.bf16.mxu0 %v11182_v1  ;;  %v5219_v7 = vpack.c.bf16 %v7687_v4, %v771_v5 }
  0x22   : > { %6981 = vmatpush3.bf16.msra.mxu1 %v7580_v32 }
  0x23   : > { %6974 = vmatprep.subr.bf16.mxu1 %v7591_v34 }
  0x24   : > { %992 = vmatpush1.bf16.msra.mxu0 %v7199_v9 }
  0x25   : > { %993 = vmatprep.subr.bf16.mxu0 %v11182_v1 }
  0x26   : > { %6982 = vmatpush3.bf16.msra.mxu1 %v7591_v34 }
  0x27   : > { %6975 = vmatprep.subr.bf16.mxu1 %v7604_v36 }
  0x28   : > { %994 = vmatpush1.bf16.msra.mxu0 %v7200_v21 }
  0x29   : > { %995 = vmatprep.subr.bf16.mxu0 %v11182_v1 }
  0x2a   : > { %6983 = vmatpush3.bf16.msra.mxu1 %v7604_v36 }
  0x2c   : > { %996 = vmatpush1.bf16.msra.mxu0 %v7201_v29  ;;  %v7700_v29 = vld [vmem:[%s11171_s1 + $0x178] sm:$0xff]  }
  0x2d   : > { %997 = vmatprep.subr.bf16.mxu0 %v11182_v1  ;;  %6976 = vmatprep.subr.bf16.mxu1 %v7700_v29 }
  0x2e   : > { %6984 = vmatpush3.bf16.msra.mxu1 %v7700_v29 }
  0x30   : > { %998 = vmatpush1.bf16.msra.mxu0 %v7202_v31  ;;  %v7703_v31 = vld [vmem:[%s7475_s30 + $0x110] sm:$0xff] }
  0x31   : > { %999 = vmatprep.subr.bf16.mxu0 %v11182_v1  ;;  %v11184_v20 = vrot.slane %v7703_v31, 1 }
  0x34   : > { %1000 = vmatpush1.bf16.msra.mxu0 %v7203_v33 }
  0x35   : > { %1001 = vmatprep.subr.bf16.mxu0 %v11182_v1 }
  0x38   : > { %1002 = vmatpush1.bf16.msra.mxu0 %v7204_v35 }
  0x39   : > { %1003 = vmatprep.subr.bf16.mxu0 %v11182_v1 }
  0x3c   : > { %1004 = vmatpush1.bf16.msra.mxu0 %v7205_v37  ;;  %v7708_v37 = vld [vmem:[%s7475_s30] sm:$0xff] }
  0x3d   : > { %1005 = vmatprep.subr.bf16.mxu0 %v11182_v1  ;;  %11291 = vst [vmem:[#allocation7_spill] sm:$0xff] %v7708_v37  ;;  %v11185_v9 = vrot.slane %v7708_v37, 1 }
  0x40   : > { %1006 = vmatpush1.bf16.msra.mxu0 %v7206_v39  ;;  %v7711_v39 = vld [vmem:[%s7475_s30 + $0x118] sm:$0xff] }
  0x41   : > { %1007 = vmatprep.subr.bf16.mxu0 %v11182_v1  ;;  %v591_v21 = vrot.slane %v7711_v39, 1 }
  0x43   : > { %v7752_v40 = vsel %vm592_vm1, %v11184_v20, %v591_v21  ;;  %v7758_v5 = vsel %vm592_vm1, %v591_v21, %v11185_v9  ;;  %v779_v9 = vsel %vm592_vm1, %v7742_v59, %v7635_v46 }
  0x44   : > { %1008 = vmatpush1.bf16.msra.mxu0 %v7207_v48  ;;  %v7714_v48 = vld [vmem:[%s7475_s30 + $0x120] sm:$0xff]  ;;  %11301 = vst [vmem:[#allocation13_spill] sm:$0xff] %v7752_v40  ;;  %11302 = vst [vmem:[#allocation14_spill] sm:$0xff] %v7758_v5 }
  0x45   : > { %1009 = vmatprep.subr.bf16.mxu0 %v11182_v1  ;;  %v775_v35 = vrot.slane %v7714_v48, 1 }
  0x47   : > { %v778_v33 = vsel %vm592_vm1, %v591_v21, %v775_v35  ;;  %v7770_v20 = vsel %vm592_vm1, %v775_v35, %v7742_v59  ;;  %v7787_v21 = vpack.c.bf16 %v7612_v38, %v7714_v48  ;;  %v7802_v38 = vpack.c.bf16 %v7620_v41, %v7527_v22  ;;  %v7842_v35 = vld [vmem:[%s7475_s30 + $0x88] sm:$0xff] }
  0x48   : > { %1010 = vmatpush1.bf16.msra.mxu0 %v7208_v61  ;;  %v7739_v61 = vpack.c.bf16 %v7711_v39, %v7703_v31  ;;  %v7763_v58 = vpack.c.bf16 %v778_v33, %v7752_v40  ;;  %11304 = vst [vmem:[#allocation16_spill] sm:$0xff] %v7770_v20  ;;  %v7839_v33 = vld [vmem:[%s7475_s30 + $0x80] sm:$0xff]  ;;  %v11311_v41 = vrot.slane %v7631_v45, 1  ;;  %v8065_v40 = vld [vmem:[%s7475_s30 + $0xd8] sm:$0xff] }
  0x49   : > { %1011 = vmatprep.subr.bf16.mxu0 %v11182_v1  ;;  %v11295_v1 = vmov 0  ;;  %11305 = vst [vmem:[#allocation17_spill] sm:$0xff] %v7787_v21  ;;  %11306 = vst [vmem:[#allocation18_spill] sm:$0xff] %v7802_v38  ;;  %v583_v5 = vrot.slane %v8065_v40, 1 }
  0x4a   : > { %v11296_v1 = vsel %vm7731_vm6, 4294967295, %v11295_v1  ;;  %11298 = vst [vmem:[#allocation10_spill] sm:$0xff] %v7739_v61  ;;  %11303 = vst [vmem:[#allocation15_spill] sm:$0xff] %v7763_v58  ;;  %6669 = vmatprep.mubr.msk.bf16.mxu1 %vm7731_vm6, %v7763_v58  ;;  %v618_v22 = vsel %vm592_vm1, %v11311_v41, %v566_v6  ;;  %v7995_v58 = vld [vmem:[%s7475_s30 + $0xb0] sm:$0xff] }
  0x4b   : > { %11297 = vst [vmem:[#allocation9_spill] sm:$0xff] %v11296_v1 }
  0x4c   : > { %1012 = vmatpush1.bf16.msra.mxu0 %v7209_v3  ;;  %v5324_v3 = vpack.c.bf16 %v779_v9, %v7770_v20  ;;  %v513_v9 = vsel %vm481_vm0, %v448_v44, %v7510_v16  ;;  %v511_v16 = vsel %vm481_vm0, %v450_v17, %v451_v52  ;;  %v7836_v44 = vpack.c.bf16 %v7631_v45, %v7626_v43 }
  0x4d   : > { %6621 = vmatprep.subr.bf16.mxu0 %v7496_v12  ;;  %v571_v17 = vrot.slane %v7677_v2, 1  ;;  %v11313_v43 = vrot.slane %v7648_v50, 7 }
  0x4e   : > { %6670 = vmatmul.mubr.msk.bf16.vlgmr.msra.gmra.mrb[0].mxu1 %vm7731_vm6, %v5324_v3  ;;  %11308 = vst [vmem:[#allocation20_spill] sm:$0xff] %v7836_v44 }
  0x4f   : > { %5220 = vmatmul.mubr.msk.bf16.vlgmr.msra.gmra.mrb[0].mxu0 %vm7720_vm5, %v5219_v7  ;;  %v7798_v7 = vpack.c.bf16 %v7536_v23, %v513_v9  ;;  %v620_v9 = vsel %vm592_vm1, %v563_v54, %v564_v57  ;;  %v8045_v23 = vld [vmem:[%s7475_s30 + $0xd0] sm:$0xff] }
  0x50   : > { %6622 = vmatpush3.bf16.msra.mxu0 %v7496_v12  ;;  %1021 = vmatprep.mubr.bf16.mxu0 %v7746_v60  ;;  %v510_v12 = vsel %vm481_vm0, %v451_v52, %v452_v53  ;;  %v7992_v52 = vld [vmem:[%s7475_s30 + $0xa8] sm:$0xff] }
  0x51   : > { %6623 = vmatprep.subr.bf16.mxu0 %v7516_v18  ;;  %v7832_v19 = vpack.c.bf16 %v510_v12, %v511_v16  ;;  %v572_v16 = vrot.slane %v7839_v33, 1 }
  0x53   : > { %11307 = vst [vmem:[#allocation19_spill] sm:$0xff] %v7832_v19 }
  0x54   : > { %6624 = vmatpush3.bf16.msra.mxu0 %v7516_v18  ;;  %v7829_v18 = vpack.c.bf16 %v7560_v28, %v623_v8  ;;  %v509_v28 = vsel %vm481_vm0, %v452_v53, %v453_v55  ;;  %v7884_v53 = vpack.c.bf16 %v7648_v50, %v7638_v47  ;;  %v7890_v8 = vld [vmem:[%s7475_s30 + $0x98] sm:$0xff] }
  0x55   : > { %6625 = vmatprep.subr.bf16.mxu0 %v7552_v27 }
  0x56   : > { %11310 = vst [vmem:[#allocation22_spill] sm:$0xff] %v7884_v53 }
  0x57   : > { %5223 = vmatmul.mubr.msk.bf16.gmra.mrb[4].mxu0 %vm7720_vm5, %v7798_v7 }
  0x58   : > { %1029 = vmatprep.mubr.bf16.mxu0 %v7802_v38  ;;  %6626 = vmatpush3.bf16.msra.mxu0 %v7552_v27  ;;  %v508_v27 = vsel %vm481_vm0, %v453_v55, %v454_v56  ;;  %v7887_v55 = vld [vmem:[%s7475_s30 + $0x90] sm:$0xff] }
  0x59   : > { %6627 = vmatprep.subr.bf16.mxu0 %v7569_v30  ;;  %v7868_v3 = vpack.c.bf16 %v508_v27, %v509_v28  ;;  %v573_v27 = vrot.slane %v7842_v35, 1  ;;  %v11314_v28 = vrot.slane %v7638_v47, 7 }
  0x5b   : > { %11309 = vst [vmem:[#allocation21_spill] sm:$0xff] %v7868_v3 }
  0x5c   : > { %6628 = vmatpush3.bf16.msra.mxu0 %v7569_v30 }
  0x5d   : > { %6629 = vmatprep.subr.bf16.mxu0 %v7580_v32 }
  0x5f   : > { %5226 = vmatmul.mubr.msk.bf16.gmra.mrb[8].mxu0 %vm7720_vm5, %v7832_v19 }
  0x60   : > { %1037 = vmatprep.mubr.bf16.mxu0 %v7836_v44  ;;  %6630 = vmatpush3.bf16.msra.mxu0 %v7580_v32  ;;  %v621_v32 = vsel %vm592_vm1, %v562_v25, %v563_v54  ;;  %v11312_v25 = vmov %v11311_v41  ;;  %v8015_v41 = vld [vmem:[%s7475_s30 + $0xb8] sm:$0xff] }
  0x61   : > { %6631 = vmatprep.subr.bf16.mxu0 %v7591_v34  ;;  %v7893_v12 = vpack.c.bf16 %v620_v9, %v621_v32  ;;  %v619_v54 = vsel %vm592_vm1, %v564_v57, %v11312_v25  ;;  %v506_v57 = vsel %vm481_vm0, %v11314_v28, %v11313_v43  ;;  %v11315_v9 = vmov %v11314_v28 }
  0x62   : > { %v507_v32 = vsel %vm481_vm0, %v454_v56, %v11315_v9  ;;  %v11318_v43 = vrot.slane %v7648_v50, 1  ;;  %v7948_v56 = vpack.c.bf16 %v7670_v63, %v7667_v62  ;;  %v579_v20 = vrot.slane %v8015_v41, 1 }
  0x63   : > { %v7932_v25 = vpack.c.bf16 %v506_v57, %v507_v32  ;;  %v7951_v57 = vld [vmem:[%s7475_s30 + $0xa0] sm:$0xff]  ;;  %v11321_v32 = vrot.slane %v7670_v63, 1 }
  0x64   : > { %6632 = vmatpush3.bf16.msra.mxu0 %v7591_v34  ;;  %v7908_v34 = vpack.c.bf16 %v618_v22, %v619_v54  ;;  %v11317_v54 = vrot.slane %v7667_v62, 1  ;;  %v11319_v28 = vmov %v11318_v43  ;;  %11320 = vst [vmem:[#allocation24_spill] sm:$0xff] %v7948_v56  ;;  %v576_v22 = vrot.slane %v7951_v57, 1 }
  0x65   : > { %6633 = vmatprep.subr.bf16.mxu0 %v7604_v36  ;;  %11316 = vst [vmem:[#allocation23_spill] sm:$0xff] %v7932_v25  ;;  %v614_v47 = vsel %vm592_vm1, %v11321_v32, %v570_v14 }
  0x66   : > { %v616_v45 = vsel %vm592_vm1, %v11318_v43, %v11317_v54  ;;  %v11322_v54 = vmov %v11321_v32  ;;  %v11326_v32 = vrot.slane %v7667_v62, 7 }
  0x67   : > { %5229 = vmatmul.mubr.msk.bf16.gmra.mrb[12].mxu0 %vm7720_vm5, %v7868_v3 }
  0x68   : > { %1045 = vmatprep.mubr.bf16.mxu0 %v7884_v53  ;;  %6634 = vmatpush3.bf16.msra.mxu0 %v7604_v36  ;;  %v617_v36 = vsel %vm592_vm1, %v566_v6, %v11319_v28  ;;  %v11323_v6 = vrot.slane %v7667_v62, 1  ;;  %v11324_v28 = vmov 0   ;;  %v8003_v62 = vpack.c.bf16 %v7677_v2, %v7673_v0 }
  0x69   : > { %6635 = vmatprep.subr.bf16.mxu0 %v7700_v29  ;;  %v7954_v9 = vpack.c.bf16 %v616_v45, %v617_v36  ;;  %v575_v45 = vrot.slane %v7890_v8, 1  ;;  %v11325_v36 = vrot.slane %v7670_v63, 7 }
  0x6a   : > { %v615_v43 = vsel %vm592_vm1, %v11323_v6, %v11322_v54  ;;  %v11328_v6 = vrot.slane %v7648_v50, 7  ;;  %v613_v50 = vsel %vm592_vm1, %v570_v14, %v571_v17  ;;  %11330 = vst [vmem:[#allocation26_spill] sm:$0xff] %v8003_v62  ;;  %v578_v14 = vrot.slane %v7995_v58, 1 }
  0x6b   : > { %v7967_v13 = vpack.c.bf16 %v614_v47, %v615_v43  ;;  %v504_v54 = vsel %vm481_vm0, %v11326_v32, %v11325_v36  ;;  %v11327_v47 = vmov %v11326_v32  ;;  %v612_v36 = vsel %vm592_vm1, %v571_v17, %v572_v16  ;;  %v8019_v17 = vld [vmem:[%s7475_s30 + $0xc0] sm:$0xff] }
  0x6c   : > { %6636 = vmatpush3.bf16.msra.mxu0 %v7700_v29  ;;  %v574_v29 = vrot.slane %v7887_v55, 1  ;;  %v505_v43 = vsel %vm481_vm0, %v11328_v6, %v11327_v47  ;;  %v8005_v32 = vpack.c.bf16 %v612_v36, %v613_v50  ;;  %v611_v47 = vsel %vm592_vm1, %v572_v16, %v573_v27 }
  0x6d   : > { %1479 = vmatprep.subr.bf16.mxu0 %v11324_v28  ;;  %v7989_v30 = vpack.c.bf16 %v504_v54, %v505_v43  ;;  %v577_v43 = vrot.slane %v7992_v52, 1  ;;  %v11331_v36 = vrot.slane %v7677_v2, 7  ;;  %v11332_v16 = vrot.slane %v7673_v0, 7 }
  0x6e   : > { %v610_v54 = vsel %vm592_vm1, %v573_v27, %v574_v29  ;;  %v580_v59 = vrot.slane %v8019_v17, 1  ;;  %v8053_v0 = vpack.c.bf16 %v7842_v35, %v7839_v33 }
  0x6f   : > { %5232 = vmatmul.mubr.msk.bf16.gmra.mrb[16].mxu0 %vm7720_vm5, %v7932_v25  ;;  %11329 = vst [vmem:[#allocation25_spill] sm:$0xff] %v7989_v30  ;;  %v8011_v6 = vpack.c.bf16 %v610_v54, %v611_v47  ;;  %v502_v27 = vsel %vm481_vm0, %v11332_v16, %v11331_v36  ;;  %v11333_v50 = vmov %v11332_v16  ;;  %v11334_v54 = vrot.slane %v7670_v63, 7  ;;  %v8142_v25 = vld [vmem:[%s7475_s30 + $0x108] sm:$0xff] }
  0x70   : > { %1053 = vmatprep.mubr.bf16.mxu0 %v7948_v56  ;;  %v608_v36 = vsel %vm592_vm1, %v575_v45, %v576_v22  ;;  %v609_v63 = vsel %vm592_vm1, %v574_v29, %v575_v45  ;;  %11336 = vst [vmem:[#allocation28_spill] sm:$0xff] %v8053_v0  ;;  %v582_v29 = vrot.slane %v8045_v23, 1  ;;  %v8069_v45 = vld [vmem:[%s7475_s30 + $0xe0] sm:$0xff]  ;;  %v589_v53 = vrot.slane %v8142_v25, 1 }
  0x71   : > { %v503_v47 = vsel %vm481_vm0, %v11334_v54, %v11333_v50  ;;  %v8055_v16 = vpack.c.bf16 %v608_v36, %v609_v63  ;;  %v607_v50 = vsel %vm592_vm1, %v576_v22, %v577_v43  ;;  %v11337_v36 = vrot.slane %v7842_v35, 7 }
  0x72   : > { %v8039_v15 = vpack.c.bf16 %v502_v27, %v503_v47  ;;  %v606_v27 = vsel %vm592_vm1, %v577_v43, %v578_v14  ;;  %v581_v47 = vrot.slane %v8042_v24, 1  ;;  %v11338_v22 = vrot.slane %v7839_v33, 7 }
  0x73   : > { %v8061_v54 = vpack.c.bf16 %v606_v27, %v607_v50  ;;  %v11340_v27 = vrot.slane %v7677_v2, 7  ;;  %v584_v37 = vrot.slane %v8069_v45, 1  ;;  %v605_v33 = vsel %vm592_vm1, %v578_v14, %v579_v20 }
  0x74   : > { %11335 = vst [vmem:[#allocation27_spill] sm:$0xff] %v8039_v15  ;;  %v500_v43 = vsel %vm481_vm0, %v11338_v22, %v11337_v36  ;;  %v11339_v63 = vmov %v11338_v22  ;;  %v604_v36 = vsel %vm592_vm1, %v579_v20, %v580_v59  ;;  %v8103_v2 = vpack.c.bf16 %v7890_v8, %v7887_v55 }
  0x75   : > { %v501_v50 = vsel %vm481_vm0, %v11340_v27, %v11339_v63  ;;  %v8105_v22 = vpack.c.bf16 %v604_v36, %v605_v33  ;;  %v603_v63 = vsel %vm592_vm1, %v580_v59, %v581_v47  ;;  %v11343_v14 = vrot.slane %v7890_v8, 7 }
  0x76   : > { %11342 = vst [vmem:[#allocation30_spill] sm:$0xff] %v8103_v2  ;;  %v11344_v36 = vrot.slane %v7887_v55, 7  ;;  %v11346_v33 = vrot.slane %v7842_v35, 7  ;;  %v601_v55 = vsel %vm592_vm1, %v582_v29, %v583_v5  ;;  %v8150_v35 = vpack.c.bf16 %v7992_v52, %v7951_v57 }
  0x77   : > { %5235 = vmatmul.mubr.msk.bf16.gmra.mrb[20].mxu0 %vm7720_vm5, %v7989_v30  ;;  %v8115_v30 = vld [vmem:[%s7475_s30 + $0xf8] sm:$0xff] }
  0x78   : > { %1061 = vmatprep.mubr.bf16.mxu0 %v8003_v62  ;;  %v8095_v62 = vld [vmem:[%s7475_s30 + $0xf0] sm:$0xff]  ;;  %v498_v59 = vsel %vm481_vm0, %v11344_v36, %v11343_v14  ;;  %v600_v14 = vsel %vm592_vm1, %v583_v5, %v584_v37  ;;  %11348 = vst [vmem:[#allocation32_spill] sm:$0xff] %v8150_v35  ;;  %v11349_v5 = vrot.slane %v7951_v57, 7  ;;  %v8186_v57 = vpack.c.bf16 %v8015_v41, %v7995_v58 }
  0x79   : > { %v586_v20 = vrot.slane %v8095_v62, 1 }
  0x7a   : > { %11353 = vst [vmem:[#allocation34_spill] sm:$0xff] %v8186_v57 }
  0x7f   : > { %5238 = vmatmul.mubr.msk.bf16.gmra.mrb[24].mxu0 %vm7720_vm5, %v8039_v15  ;;  %v8092_v15 = vld [vmem:[%s7475_s30 + $0xe8] sm:$0xff] }
  0x80   : > { %1069 = vmatprep.mubr.bf16.mxu0 %v8053_v0  ;;  %v8089_v0 = vpack.c.bf16 %v500_v43, %v501_v50  ;;  %v602_v43 = vsel %vm592_vm1, %v581_v47, %v582_v29  ;;  %v585_v50 = vrot.slane %v8092_v15, 1  ;;  %v11345_v47 = vmov %v11344_v36 }
  0x81   : > { %v8111_v27 = vpack.c.bf16 %v602_v43, %v603_v63  ;;  %v499_v43 = vsel %vm481_vm0, %v11346_v33, %v11345_v47  ;;  %v466_v63 = vrot.slane %v7992_v52, 7  ;;  %v8152_v36 = vpack.c.bf16 %v600_v14, %v601_v55 }
  0x82   : > { %11341 = vst [vmem:[#allocation29_spill] sm:$0xff] %v8089_v0  ;;  %v8136_v56 = vpack.c.bf16 %v498_v59, %v499_v43  ;;  %v598_v59 = vsel %vm592_vm1, %v585_v50, %v586_v20  ;;  %v599_v47 = vsel %vm592_vm1, %v584_v37, %v585_v50  ;;  %v11350_v29 = vmov %v11349_v5 }
  0x83   : > { %v8158_v33 = vpack.c.bf16 %v598_v59, %v599_v47  ;;  %v496_v52 = vsel %vm481_vm0, %v11349_v5, %v466_v63  ;;  %v11351_v37 = vrot.slane %v7890_v8, 7  ;;  %v467_v14 = vrot.slane %v7995_v58, 7 }
  0x84   : > { %11347 = vst [vmem:[#allocation31_spill] sm:$0xff] %v8136_v56  ;;  %v468_v55 = vrot.slane %v8015_v41, 7  ;;  %v11354_v5 = vrot.slane %v7703_v31, 1 }
  0x85   : > { %v497_v50 = vsel %vm481_vm0, %v11351_v37, %v11350_v29  ;;  %v495_v41 = vsel %vm481_vm0, %v466_v63, %v467_v14 }
  0x86   : > { %v8178_v59 = vpack.c.bf16 %v496_v52, %v497_v50  ;;  %v594_v29 = vsel %vm592_vm1, %v589_v53, %v11354_v5  ;;  %v494_v58 = vsel %vm481_vm0, %v467_v14, %v468_v55  ;;  %v471_v14 = vrot.slane %v8045_v23, 7 }
  0x87   : > { %5241 = vmatmul.mubr.msk.bf16.gmra.mrb[28].mxu0 %vm7720_vm5, %v8089_v0  ;;  %v587_v0 = vrot.slane %v8115_v30, 1 }
  0x88   : > { %1077 = vmatprep.mubr.bf16.mxu0 %v8103_v2  ;;  %v8139_v2 = vld [vmem:[%s7475_s30 + $0x100] sm:$0xff]  ;;  %11352 = vst [vmem:[#allocation33_spill] sm:$0xff] %v8178_v59 }
  0x89   : > { %v588_v43 = vrot.slane %v8139_v2, 1 }
  0x8b   : > { %v596_v47 = vsel %vm592_vm1, %v587_v0, %v588_v43  ;;  %v595_v52 = vsel %vm592_vm1, %v588_v43, %v589_v53  ;;  %v470_v53 = vrot.slane %v8042_v24, 7 }
  0x8c   : > { %v8196_v37 = vpack.c.bf16 %v594_v29, %v595_v52  ;;  %v473_v29 = vrot.slane %v8069_v45, 7  ;;  %v474_v52 = vrot.slane %v8092_v15, 7 }
  0x8f   : > { %5244 = vmatmul.mubr.msk.bf16.gmra.mrb[32].mxu0 %vm7720_vm5, %v8136_v56 }
  0x90   : > { %1085 = vmatprep.mubr.bf16.mxu0 %v8150_v35  ;;  %v597_v35 = vsel %vm592_vm1, %v586_v20, %v587_v0  ;;  %v8206_v0 = vpack.c.bf16 %v494_v58, %v495_v41  ;;  %v469_v20 = vrot.slane %v8019_v17, 7 }
  0x91   : > { %v8188_v8 = vpack.c.bf16 %v596_v47, %v597_v35  ;;  %v8212_v35 = vpack.c.bf16 %v8042_v24, %v8019_v17  ;;  %v472_v47 = vrot.slane %v8065_v40, 7  ;;  %v8228_v24 = vpack.c.bf16 %v8065_v40, %v8045_v23 }
  0x92   : > { %11355 = vst [vmem:[#allocation35_spill] sm:$0xff] %v8206_v0  ;;  %v492_v43 = vsel %vm481_vm0, %v469_v20, %v470_v53  ;;  %v493_v63 = vsel %vm481_vm0, %v468_v55, %v469_v20  ;;  %v491_v55 = vsel %vm481_vm0, %v470_v53, %v471_v14  ;;  %v8244_v23 = vpack.c.bf16 %v8092_v15, %v8069_v45 }
  0x93   : > { %11356 = vst [vmem:[#allocation36_spill] sm:$0xff] %v8212_v35  ;;  %v8222_v50 = vpack.c.bf16 %v492_v43, %v493_v63  ;;  %11358 = vst [vmem:[#allocation38_spill] sm:$0xff] %v8228_v24  ;;  %v490_v17 = vsel %vm481_vm0, %v471_v14, %v472_v47  ;;  %v488_v40 = vsel %vm481_vm0, %v473_v29, %v474_v52  ;;  %v475_v20 = vrot.slane %v8095_v62, 7 }
  0x94   : > { %v8238_v5 = vpack.c.bf16 %v490_v17, %v491_v55  ;;  %11360 = vst [vmem:[#allocation40_spill] sm:$0xff] %v8244_v23  ;;  %v489_v58 = vsel %vm481_vm0, %v472_v47, %v473_v29  ;;  %v476_v53 = vrot.slane %v8115_v30, 7  ;;  %v8260_v15 = vpack.c.bf16 %v8115_v30, %v8095_v62 }
  0x95   : > { %11357 = vst [vmem:[#allocation37_spill] sm:$0xff] %v8222_v50  ;;  %v8254_v41 = vpack.c.bf16 %v488_v40, %v489_v58  ;;  %v487_v43 = vsel %vm481_vm0, %v474_v52, %v475_v20  ;;  %v477_v14 = vrot.slane %v8139_v2, 7  ;;  %v478_v30 = vrot.slane %v8142_v25, 7  ;;  %v7346_v58 = vld [vmem:[%s7475_s30 + $0x18] sm:$0xff] }
  0x96   : > { %11359 = vst [vmem:[#allocation39_spill] sm:$0xff] %v8238_v5  ;;  %11362 = vst [vmem:[#allocation42_spill] sm:$0xff] %v8260_v15  ;;  %v486_v45 = vsel %vm481_vm0, %v475_v20, %v476_v53  ;;  %v8276_v62 = vpack.c.bf16 %v8142_v25, %v8139_v2  ;;  %v479_v29 = vrot.slane %v7703_v31, 7  ;;  %v8290_v52 = vrot.slane %v7711_v39, 7 }
  0x97   : > { %5247 = vmatmul.mubr.msk.bf16.gmra.mrb[36].mxu0 %vm7720_vm5, %v8178_v59  ;;  %11361 = vst [vmem:[#allocation41_spill] sm:$0xff] %v8254_v41  ;;  %v8270_v63 = vpack.c.bf16 %v486_v45, %v487_v43  ;;  %v484_v47 = vsel %vm481_vm0, %v477_v14, %v478_v30  ;;  %v485_v17 = vsel %vm481_vm0, %v476_v53, %v477_v14  ;;  %v767_v31 = vrot.slane %v7714_v48, 7 }
  0x98   : > { %1093 = vmatprep.mubr.bf16.mxu0 %v8186_v57  ;;  %11364 = vst [vmem:[#allocation44_spill] sm:$0xff] %v8276_v62  ;;  %v8286_v55 = vpack.c.bf16 %v484_v47, %v485_v17  ;;  %v482_v25 = vsel %vm481_vm0, %v479_v29, %v8290_v52  ;;  %v483_v2 = vsel %vm481_vm0, %v478_v30, %v479_v29  ;;  %v559_v39 = vrot.slane %v7346_v58, 1  ;;  %v7218_v30 = vld [vmem:[%s11171_s1] sm:$0xff]   ;;  %v7219_v47 = vld [vmem:[%s11171_s1 + $0x8] sm:$0xff]   ;;  %v7220_v17 = vld [vmem:[%s11171_s1 + $0x10] sm:$0xff]  }
  0x99   : > { %11363 = vst [vmem:[#allocation43_spill] sm:$0xff] %v8270_v63  ;;  %v8301_v40 = vpack.c.bf16 %v482_v25, %v483_v2  ;;  %v769_v20 = vsel %vm481_vm0, %v767_v31, %v7645_v49  ;;  %v770_v53 = vsel %vm481_vm0, %v8290_v52, %v767_v31  ;;  %v7221_v29 = vld [vmem:[%s11171_s1 + $0x18] sm:$0xff]   ;;  %v7222_v25 = vld [vmem:[%s11171_s1 + $0x20] sm:$0xff]   ;;  %v7223_v2 = vld [vmem:[%s11171_s1 + $0x28] sm:$0xff]  }
  0x9a   : > { %11365 = vst [vmem:[#allocation45_spill] sm:$0xff] %v8286_v55  ;;  %v624_v48 = vsel %vm592_vm1, %v559_v39, %v7651_v51  ;;  %v625_v45 = vsel %vm592_vm1, %v7635_v46, %v559_v39  ;;  %v8321_v43 = vpack.c.bf16 %v769_v20, %v770_v53  ;;  %v7224_v31 = vld [vmem:[%s11171_s1 + $0x30] sm:$0xff]   ;;  %v7225_v58 = vld [vmem:[%s11171_s1 + $0x38] sm:$0xff]   ;;  %v7226_v39 = vld [vmem:[%s11171_s1 + $0x40] sm:$0xff]  }
  0x9b   : > { %v8323_v14 = vpack.c.bf16 %v624_v48, %v625_v45  ;;  %v7227_v20 = vld [vmem:[%s11171_s1 + $0x48] sm:$0xff]   ;;  %v7228_v53 = vld [vmem:[%s11171_s1 + $0x50] sm:$0xff]   ;;  %v7229_v48 = vld [vmem:[%s11171_s1 + $0x58] sm:$0xff]  }
  0x9c   : > { %11366 = vst [vmem:[#allocation46_spill] sm:$0xff] %v8321_v43  ;;  %v7230_v45 = vld [vmem:[%s11171_s1 + $0x60] sm:$0xff]   ;;  %v11370_v51 = vld [vmem:[#allocation25_spill] sm:$0xff] }
  0x9f   : > { %5250 = vmatmul.mubr.msk.bf16.gmra.mrb[40].mxu0 %vm7720_vm5, %v8206_v0 }
  0xa0   : > { %1101 = vmatprep.mubr.bf16.mxu0 %v8212_v35 }
  0xa7   : > { %5253 = vmatmul.mubr.msk.bf16.gmra.mrb[44].mxu0 %vm7720_vm5, %v8222_v50 }
  0xa8   : > { %1109 = vmatprep.mubr.bf16.mxu0 %v8228_v24 }
  0xaf   : > { %5256 = vmatmul.mubr.msk.bf16.gmra.mrb[48].mxu0 %vm7720_vm5, %v8238_v5 }
  0xb0   : > { %1117 = vmatprep.mubr.bf16.mxu0 %v8244_v23 }
  0xb7   : > { %5259 = vmatmul.mubr.msk.bf16.gmra.mrb[52].mxu0 %vm7720_vm5, %v8254_v41 }
  0xb8   : > { %1125 = vmatprep.mubr.bf16.mxu0 %v8260_v15 }
  0xbf   : > { %5262 = vmatmul.mubr.msk.bf16.gmra.mrb[56].mxu0 %vm7720_vm5, %v8270_v63 }
  0xc0   : > { %1133 = vmatprep.mubr.bf16.mxu0 %v8276_v62 }
  0xc7   : > { %5265 = vmatmul.mubr.msk.bf16.gmra.mrb[60].mxu0 %vm7720_vm5, %v8286_v55 }
  0xc8   : > { %1141 = vmatprep.mubr.bf16.mxu0 %v7739_v61 }
  0xcf   : > { %5268 = vmatmul.mubr.msk.bf16.gmra.mrb[64].mxu0 %vm7720_vm5, %v8301_v40 }
  0xd0   : > { %1149 = vmatprep.mubr.bf16.mxu0 %v7787_v21 }
  0xd7   : > { %5271 = vmatmul.mubr.msk.bf16.gmra.mrb[68].mxu0 %vm7720_vm5, %v8321_v43 }
  0xd8   : > { %6637 = vmatprep.mubr.msk.bf16.mxu0 %vm7731_vm6, %v8323_v14 }
  0xdf   : > { %6638 = vmatmul.mubr.msk.bf16.vlgmr.msra.gmra.mrb[4].mxu0 %vm7731_vm6, %v7829_v18 }
  0xe0   : > { %1480 = vmatpush1.bf16.msra.mxu0 %v7218_v30  ;;  %6641 = vmatprep.mubr.msk.bf16.mxu0 %vm7731_vm6, %v7893_v12  ;;  %v7231_v30 = vld [vmem:[%s11171_s1 + $0x68] sm:$0xff]  }
  0xe1   : > { %1481 = vmatprep.subr.bf16.mxu0 %v11324_v28 }
  0xe4   : > { %1482 = vmatpush1.bf16.msra.mxu0 %v7219_v47  ;;  %v8429_v47 = vld [vmem:[%s7475_s30 + $0x8] sm:$0xff] }
  0xe5   : > { %1483 = vmatprep.subr.bf16.mxu0 %v11324_v28 }
  0xe7   : > { %6642 = vmatmul.mubr.msk.bf16.gmra.mrb[72].mxu0 %vm7731_vm6, %v7908_v34 }
  0xe8   : > { %1484 = vmatpush1.bf16.msra.mxu0 %v7220_v17  ;;  %6645 = vmatprep.mubr.msk.bf16.mxu0 %vm7731_vm6, %v7954_v9  ;;  %v7347_v17 = vld [vmem:[%s7475_s30] sm:$0xff] }
  0xe9   : > { %1485 = vmatprep.subr.bf16.mxu0 %v11324_v28 }
  0xec   : > { %1486 = vmatpush1.bf16.msra.mxu0 %v7221_v29  ;;  %v445_v29 = vrot.slane %v7347_v17, 7 }
  0xed   : > { %1487 = vmatprep.subr.bf16.mxu0 %v11324_v28 }
  0xef   : > { %6646 = vmatmul.mubr.msk.bf16.gmra.mrb[76].mxu0 %vm7731_vm6, %v7967_v13 }
  0xf0   : > { %1488 = vmatpush1.bf16.msra.mxu0 %v7222_v25  ;;  %6649 = vmatprep.mubr.msk.bf16.mxu0 %vm7731_vm6, %v8005_v32  ;;  %v7232_v25 = vld [vmem:[%s11171_s1 + $0x70] sm:$0xff]  }
  0xf1   : > { %1489 = vmatprep.subr.bf16.mxu0 %v11324_v28 }
  0xf4   : > { %1490 = vmatpush1.bf16.msra.mxu0 %v7223_v2  ;;  %v446_v2 = vrot.slane %v8429_v47, 7 }
  0xf5   : > { %1491 = vmatprep.subr.bf16.mxu0 %v11324_v28 }
  0xf7   : > { %6650 = vmatmul.mubr.msk.bf16.gmra.mrb[80].mxu0 %vm7731_vm6, %v8011_v6 }
  0xf8   : > { %1492 = vmatpush1.bf16.msra.mxu0 %v7224_v31  ;;  %6653 = vmatprep.mubr.msk.bf16.mxu0 %vm7731_vm6, %v8055_v16  ;;  %v666_v31 = vpack.c.bf16 %v8429_v47, %v7347_v17 }
  0xf9   : > { %1493 = vmatprep.subr.bf16.mxu0 %v11324_v28 }
  0xfc   : > { %1494 = vmatpush1.bf16.msra.mxu0 %v7225_v58  ;;  %v7233_v58 = vld [vmem:[%s11171_s1 + $0x78] sm:$0xff]  }
  0xfd   : > { %1495 = vmatprep.subr.bf16.mxu0 %v11324_v28 }
  0xff   : > { %6654 = vmatmul.mubr.msk.bf16.gmra.mrb[84].mxu0 %vm7731_vm6, %v8061_v54 }
 0x100   : > { %1496 = vmatpush1.bf16.msra.mxu0 %v7226_v39  ;;  %6657 = vmatprep.mubr.msk.bf16.mxu0 %vm7731_vm6, %v8105_v22  ;;  %v516_v39 = vsel %vm481_vm0, %v445_v29, %v446_v2 }
 0x101   : > { %1497 = vmatprep.subr.bf16.mxu0 %v11324_v28 }
 0x104   : > { %1498 = vmatpush1.bf16.msra.mxu0 %v7227_v20  ;;  %v517_v20 = vsel %vm481_vm0, %v8290_v52, %v445_v29  ;;  %v515_v52 = vsel %vm481_vm0, %v446_v2, %v7623_v42  ;;  %v7237_v42 = vld [vmem:[%s11171_s1 + $0x98] sm:$0xff]  }
 0x105   : > { %1499 = vmatprep.subr.bf16.mxu0 %v11324_v28 }
 0x107   : > { %6658 = vmatmul.mubr.msk.bf16.gmra.mrb[88].mxu0 %vm7731_vm6, %v8111_v27 }
 0x108   : > { %1500 = vmatpush1.bf16.msra.mxu0 %v7228_v53  ;;  %6661 = vmatprep.mubr.msk.bf16.mxu0 %vm7731_vm6, %v8152_v36  ;;  %v7234_v53 = vld [vmem:[%s11171_s1 + $0x80] sm:$0xff]  }
 0x109   : > { %1501 = vmatprep.subr.bf16.mxu0 %v11324_v28 }
 0x10c   : > { %1502 = vmatpush1.bf16.msra.mxu0 %v7229_v48  ;;  %v5351_v48 = vpack.c.bf16 %v516_v39, %v517_v20 }
 0x10d   : > { %1503 = vmatprep.subr.bf16.mxu0 %v11324_v28 }
 0x10f   : > { %6662 = vmatmul.mubr.msk.bf16.gmra.mrb[92].mxu0 %vm7731_vm6, %v8158_v33 }
 0x110   : > { %1504 = vmatpush1.bf16.msra.mxu0 %v7230_v45  ;;  %6665 = vmatprep.mubr.msk.bf16.mxu0 %vm7731_vm6, %v8188_v8  ;;  %v7235_v45 = vld [vmem:[%s11171_s1 + $0x88] sm:$0xff]  }
 0x111   : > { %1505 = vmatprep.subr.bf16.mxu0 %v11324_v28 }
 0x114   : > { %1506 = vmatpush1.bf16.msra.mxu0 %v7231_v30  ;;  %v7236_v30 = vld [vmem:[%s11171_s1 + $0x90] sm:$0xff]  }
 0x115   : > { %1507 = vmatprep.subr.bf16.mxu0 %v11324_v28 }
 0x117   : > { %6666 = vmatmul.mubr.msk.bf16.gmra.mrb[96].mxu0 %vm7731_vm6, %v8196_v37 }
 0x118   : > { %1508 = vmatpush1.bf16.msra.mxu0 %v7232_v25  ;;  %1511 = vmatprep.mubr.bf16.mxu0 %v666_v31  ;;  %v5354_v31 = vpack.c.bf16 %v7687_v4, %v515_v52  ;;  %v7238_v4 = vld [vmem:[%s11171_s1 + $0xa0] sm:$0xff]  }
 0x119   : > { %1509 = vmatprep.subr.bf16.mxu0 %v11324_v28 }
 0x11c   : > { %1510 = vmatpush1.bf16.msra.mxu0 %v7233_v58 }
 0x11d   : > { %6673 = vmatprep.subr.bf16.mxu0 %v7234_v53 }
 0x11f   : > { %5352 = vmatmul.mubr.msk.bf16.vlgmr.msra.gmra.mrb[100].mxu0 %vm7720_vm5, %v5351_v48  ;;  %v7240_v48 = vld [vmem:[%s11171_s1 + $0xb0] sm:$0xff]  }
 0x120   : > { %6674 = vmatpush3.bf16.msra.mxu0 %v7234_v53  ;;  %1519 = vmatprep.mubr.bf16.mxu0 %v7489_v10  ;;  %v7239_v53 = vld [vmem:[%s11171_s1 + $0xa8] sm:$0xff]  }
 0x121   : > { %6675 = vmatprep.subr.bf16.mxu0 %v7235_v45  ;;  %v6671_v29 = vpop.f32.mrb[0].mxu1 }
 0x122   : > { %v1015_v17 = vpop.f32.mrb[0].mxu0  ;;  %v8466_v58 = vpop.f32.mrb[1].mxu1 }
 0x123   : > { %v1017_v25 = vpop.f32.mrb[1].mxu0  ;;  %v6672_v20 = vpop.f32.mrb[2].mxu1 }
 0x124   : > { %v1018_v39 = vpop.f32.mrb[2].mxu0  ;;  %6676 = vmatpush3.bf16.msra.mxu0 %v7235_v45  ;;  %v8471_v2 = vpop.f32.mrb[3].mxu1  ;;  %v11367_v20 = vld [vmem:[#allocation22_spill] sm:$0xff] }
 0x125   : > { %v1020_v10 = vpop.f32.mrb[3].mxu0  ;;  %6677 = vmatprep.subr.bf16.mxu0 %v7236_v30 }
 0x127   : > { %5355 = vmatmul.mubr.msk.bf16.gmra.mrb[4].mxu0 %vm7720_vm5, %v5354_v31 }
 0x128   : > { %1527 = vmatprep.mubr.bf16.mxu0 %v7746_v60  ;;  %6678 = vmatpush3.bf16.msra.mxu0 %v7236_v30 }
 0x129   : > { %6679 = vmatprep.subr.bf16.mxu0 %v7237_v42 }
 0x12c   : > { %6680 = vmatpush3.bf16.msra.mxu0 %v7237_v42 }
 0x12d   : > { %6681 = vmatprep.subr.bf16.mxu0 %v7238_v4 }
 0x12f   : > { %5358 = vmatmul.mubr.msk.bf16.gmra.mrb[104].mxu0 %vm7720_vm5, %v7798_v7  ;;  %v7241_v7 = vld [vmem:[%s11171_s1 + $0xb8] sm:$0xff]  }
 0x130   : > { %1535 = vmatprep.mubr.bf16.mxu0 %v7802_v38  ;;  %6682 = vmatpush3.bf16.msra.mxu0 %v7238_v4 }
 0x131   : > { %6683 = vmatprep.subr.bf16.mxu0 %v7239_v53 }
 0x132   : > { %v8489_v45 = vpop.f32.mrb[8].mxu0 }
 0x133   : > { %v1033_v52 = vpop.f32.mrb[9].mxu0 }
 0x134   : > { %v8491_v30 = vpop.f32.mrb[10].mxu0  ;;  %6684 = vmatpush3.bf16.msra.mxu0 %v7239_v53  ;;  %v11369_v52 = vld [vmem:[#allocation24_spill] sm:$0xff] }
 0x135   : > { %v1036_v17 = vpop.f32.mrb[11].mxu0  ;;  %6685 = vmatprep.subr.bf16.mxu0 %v7240_v48 }
 0x137   : > { %5361 = vmatmul.mubr.msk.bf16.gmra.mrb[108].mxu0 %vm7720_vm5, %v7832_v19 }
 0x138   : > { %1543 = vmatprep.mubr.bf16.mxu0 %v7836_v44  ;;  %6686 = vmatpush3.bf16.msra.mxu0 %v7240_v48  ;;  %v11368_v48 = vld [vmem:[#allocation23_spill] sm:$0xff] }
 0x139   : > { %6687 = vmatprep.subr.bf16.mxu0 %v7241_v7 }
 0x13a   : > { %v8500_v29 = vpop.f32.mrb[12].mxu0 }
 0x13b   : > { %v1041_v25 = vpop.f32.mrb[13].mxu0 }
 0x13c   : > { %v8502_v31 = vpop.f32.mrb[14].mxu0  ;;  %6688 = vmatpush3.bf16.msra.mxu0 %v7241_v7 }
 0x13d   : > { %v1044_v39 = vpop.f32.mrb[15].mxu0  ;;  %2047 = vmatprep.subr.bf16.mxu0 %v11324_v28 }
 0x13f   : > { %5364 = vmatmul.mubr.msk.bf16.gmra.mrb[112].mxu0 %vm7720_vm5, %v7868_v3  ;;  %v11374_v3 = vld [vmem:[#allocation29_spill] sm:$0xff] }
 0x140   : > { %1551 = vmatprep.mubr.bf16.mxu0 %v11367_v20 }
 0x142   : > { %v8509_v10 = vpop.f32.mrb[16].mxu0 }
 0x143   : > { %v1049_v42 = vpop.f32.mrb[17].mxu0 }
 0x144   : > { %v8511_v4 = vpop.f32.mrb[18].mxu0  ;;  %v11371_v42 = vld [vmem:[#allocation26_spill] sm:$0xff] }
 0x145   : > { %v1052_v53 = vpop.f32.mrb[19].mxu0 }
 0x147   : > { %5367 = vmatmul.mubr.msk.bf16.gmra.mrb[116].mxu0 %vm7720_vm5, %v11368_v48  ;;  %v11372_v48 = vld [vmem:[#allocation27_spill] sm:$0xff] }
 0x148   : > { %1559 = vmatprep.mubr.bf16.mxu0 %v11369_v52 }
 0x14a   : > { %v8517_v17 = vpop.f32.mrb[20].mxu0 }
 0x14b   : > { %v1057_v7 = vpop.f32.mrb[21].mxu0 }
 0x14c   : > { %v8519_v25 = vpop.f32.mrb[22].mxu0  ;;  %v11373_v7 = vld [vmem:[#allocation28_spill] sm:$0xff] }
 0x14d   : > { %v1060_v39 = vpop.f32.mrb[23].mxu0 }
 0x14f   : > { %5370 = vmatmul.mubr.msk.bf16.gmra.mrb[120].mxu0 %vm7720_vm5, %v11370_v51 }
 0x150   : > { %1567 = vmatprep.mubr.bf16.mxu0 %v11371_v42 }
 0x152   : > { %v8525_v49 = vpop.f32.mrb[24].mxu0 }
 0x153   : > { %v1065_v53 = vpop.f32.mrb[25].mxu0 }
 0x154   : > { %v8527_v43 = vpop.f32.mrb[26].mxu0  ;;  %v11375_v53 = vld [vmem:[#allocation30_spill] sm:$0xff] }
 0x155   : > { %v1068_v21 = vpop.f32.mrb[27].mxu0 }
 0x157   : > { %5373 = vmatmul.mubr.msk.bf16.gmra.mrb[124].mxu0 %vm7720_vm5, %v11372_v48 }
 0x158   : > { %1575 = vmatprep.mubr.bf16.mxu0 %v11373_v7 }
 0x15a   : > { %v8533_v52 = vpop.f32.mrb[28].mxu0 }
 0x15b   : > { %v1073_v39 = vpop.f32.mrb[29].mxu0 }
 0x15c   : > { %v8535_v20 = vpop.f32.mrb[30].mxu0  ;;  %v11376_v39 = vld [vmem:[#allocation32_spill] sm:$0xff] }
 0x15d   : > { %v1076_v51 = vpop.f32.mrb[31].mxu0 }
 0x15f   : > { %5376 = vmatmul.mubr.msk.bf16.gmra.mrb[128].mxu0 %vm7720_vm5, %v11374_v3 }
 0x160   : > { %1583 = vmatprep.mubr.bf16.mxu0 %v11375_v53 }
 0x162   : > { %v8541_v42 = vpop.f32.mrb[32].mxu0 }
 0x163   : > { %v1081_v21 = vpop.f32.mrb[33].mxu0 }
 0x164   : > { %v8543_v44 = vpop.f32.mrb[34].mxu0 }
 0x165   : > { %v1084_v48 = vpop.f32.mrb[35].mxu0 }
 0x167   : > { %5379 = vmatmul.mubr.msk.bf16.gmra.mrb[132].mxu0 %vm7720_vm5, %v8136_v56 }
 0x168   : > { %1591 = vmatprep.mubr.bf16.mxu0 %v11376_v39 }
 0x16a   : > { %v8549_v7 = vpop.f32.mrb[36].mxu0 }
 0x16b   : > { %v1089_v51 = vpop.f32.mrb[37].mxu0 }
 0x16c   : > { %v8551_v19 = vpop.f32.mrb[38].mxu0 }
 0x16d   : > { %v1092_v3 = vpop.f32.mrb[39].mxu0 }
 0x16f   : > { %5382 = vmatmul.mubr.msk.bf16.gmra.mrb[136].mxu0 %vm7720_vm5, %v8178_v59 }
 0x170   : > { %1599 = vmatprep.mubr.bf16.mxu0 %v8186_v57 }
 0x172   : > { %v8557_v21 = vpop.f32.mrb[40].mxu0 }
 0x173   : > { %v1097_v48 = vpop.f32.mrb[41].mxu0 }
 0x174   : > { %v8559_v53 = vpop.f32.mrb[42].mxu0 }
 0x175   : > { %v1100_v56 = vpop.f32.mrb[43].mxu0 }
 0x177   : > { %5385 = vmatmul.mubr.msk.bf16.gmra.mrb[140].mxu0 %vm7720_vm5, %v8206_v0 }
 0x178   : > { %1607 = vmatprep.mubr.bf16.mxu0 %v8212_v35 }
 0x17a   : > { %v8565_v51 = vpop.f32.mrb[44].mxu0 }
 0x17b   : > { %v1105_v3 = vpop.f32.mrb[45].mxu0 }
 0x17c   : > { %v8567_v39 = vpop.f32.mrb[46].mxu0 }
 0x17d   : > { %v1108_v59 = vpop.f32.mrb[47].mxu0 }
 0x17f   : > { %5388 = vmatmul.mubr.msk.bf16.gmra.mrb[144].mxu0 %vm7720_vm5, %v8222_v50 }
 0x180   : > { %1615 = vmatprep.mubr.bf16.mxu0 %v8228_v24 }
 0x182   : > { %v8573_v48 = vpop.f32.mrb[48].mxu0 }
 0x183   : > { %v1113_v56 = vpop.f32.mrb[49].mxu0 }
 0x184   : > { %v8575_v57 = vpop.f32.mrb[50].mxu0 }
 0x185   : > { %v1116_v0 = vpop.f32.mrb[51].mxu0 }
 0x187   : > { %5391 = vmatmul.mubr.msk.bf16.gmra.mrb[148].mxu0 %vm7720_vm5, %v8238_v5 }
 0x188   : > { %1623 = vmatprep.mubr.bf16.mxu0 %v8244_v23 }
 0x18a   : > { %v8581_v3 = vpop.f32.mrb[52].mxu0 }
 0x18b   : > { %v1121_v59 = vpop.f32.mrb[53].mxu0 }
 0x18c   : > { %v8583_v35 = vpop.f32.mrb[54].mxu0 }
 0x18d   : > { %v1124_v50 = vpop.f32.mrb[55].mxu0 }
 0x18f   : > { %5394 = vmatmul.mubr.msk.bf16.gmra.mrb[152].mxu0 %vm7720_vm5, %v8254_v41  ;;  %v557_v41 = vrot.slane %v8429_v47, 1 }
 0x190   : > { %1631 = vmatprep.mubr.bf16.mxu0 %v8260_v15 }
 0x192   : > { %v8589_v56 = vpop.f32.mrb[56].mxu0 }
 0x193   : > { %v1129_v0 = vpop.f32.mrb[57].mxu0 }
 0x194   : > { %v8591_v24 = vpop.f32.mrb[58].mxu0  ;;  %v11378_v0 = vld [vmem:[#allocation7_spill] sm:$0xff] }
 0x195   : > { %11377 = vst [vmem:[#allocation47_spill] sm:$0xff] %v8591_v24  ;;  %v1132_v5 = vpop.f32.mrb[59].mxu0 }
 0x196   : > { %v626_v5 = vsel %vm592_vm1, %v557_v41, %v7635_v46 }
 0x197   : > { %5397 = vmatmul.mubr.msk.bf16.gmra.mrb[156].mxu0 %vm7720_vm5, %v8270_v63 }
 0x198   : > { %1639 = vmatprep.mubr.bf16.mxu0 %v8276_v62  ;;  %v11379_v62 = vrot.slane %v11378_v0, 1 }
 0x19a   : > { %v8597_v59 = vpop.f32.mrb[60].mxu0 }
 0x19b   : > { %v1137_v50 = vpop.f32.mrb[61].mxu0 }
 0x19c   : > { %v8599_v23 = vpop.f32.mrb[62].mxu0  ;;  %v627_v50 = vsel %vm592_vm1, %v11379_v62, %v557_v41 }
 0x19d   : > { %v1140_v15 = vpop.f32.mrb[63].mxu0  ;;  %v5405_v60 = vpack.c.bf16 %v626_v5, %v627_v50 }
 0x19f   : > { %5400 = vmatmul.mubr.msk.bf16.gmra.mrb[160].mxu0 %vm7720_vm5, %v8286_v55 }
 0x1a0   : > { %1647 = vmatprep.mubr.bf16.mxu0 %v7739_v61 }
 0x1a2   : > { %v1143_v63 = vpop.f32.mrb[64].mxu0 }
 0x1a3   : > { %v1145_v38 = vpop.f32.mrb[65].mxu0  ;;  %v8614_v47 = vadd.f32 %v8466_v58, %v1143_v63 }
 0x1a4   : > { %v1146_v15 = vpop.f32.mrb[66].mxu0  ;;  %v7242_v38 = vld [vmem:[%s11171_s1 + $0x180] sm:$0xff]  }
 0x1a5   : > { %v1148_v24 = vpop.f32.mrb[67].mxu0  ;;  %v8617_v55 = vadd.f32 %v8471_v2, %v1146_v15  ;;  %v7246_v15 = vld [vmem:[%s11171_s1 + $0x1a0] sm:$0xff]  }
 0x1a6   : > { %v7243_v24 = vld [vmem:[%s11171_s1 + $0x188] sm:$0xff]  }
 0x1a7   : > { %5403 = vmatmul.mubr.msk.bf16.gmra.mrb[164].mxu0 %vm7720_vm5, %v8301_v40 }
 0x1a8   : > { %6689 = vmatprep.mubr.msk.bf16.mxu0 %vm7731_vm6, %v5405_v60  ;;  %v7244_v60 = vld [vmem:[%s11171_s1 + $0x190] sm:$0xff]  }
 0x1aa   : > { %v1151_v46 = vpop.f32.mrb[68].mxu0 }
 0x1ab   : > { %v1153_v41 = vpop.f32.mrb[69].mxu0 }
 0x1ac   : > { %v1154_v62 = vpop.f32.mrb[70].mxu0 }
 0x1ad   : > { %v1156_v63 = vpop.f32.mrb[71].mxu0 }
 0x1af   : > { %6690 = vmatmul.mubr.msk.bf16.vlgmr.msra.gmra.mrb[4].mxu0 %vm7731_vm6, %v8323_v14  ;;  %v7245_v14 = vld [vmem:[%s11171_s1 + $0x198] sm:$0xff]  }
 0x1b0   : > { %2048 = vmatpush1.bf16.msra.mxu0 %v7242_v38  ;;  %6693 = vmatprep.mubr.msk.bf16.mxu0 %vm7731_vm6, %v7829_v18 }
 0x1b1   : > { %2049 = vmatprep.subr.bf16.mxu0 %v11324_v28 }
 0x1b4   : > { %2050 = vmatpush1.bf16.msra.mxu0 %v7243_v24  ;;  %v7248_v24 = vld [vmem:[%s11171_s1 + $0x1b0] sm:$0xff]  }
 0x1b5   : > { %2051 = vmatprep.subr.bf16.mxu0 %v11324_v28 }
 0x1b7   : > { %6694 = vmatmul.mubr.msk.bf16.gmra.mrb[168].mxu0 %vm7731_vm6, %v7893_v12 }
 0x1b8   : > { %2052 = vmatpush1.bf16.msra.mxu0 %v7244_v60  ;;  %6697 = vmatprep.mubr.msk.bf16.mxu0 %vm7731_vm6, %v7908_v34 }
 0x1b9   : > { %2053 = vmatprep.subr.bf16.mxu0 %v11324_v28 }
 0x1ba   : > { %v6643_v58 = vpop.f32.mrb[72].mxu0 }
 0x1bb   : > { %v8652_v2 = vadd.f32 %v6643_v58, %v8500_v29  ;;  %v1208_v5 = vpop.f32.mrb[73].mxu0 }
 0x1bc   : > { %v8655_v0 = vadd.f32 %v1208_v5, %v8489_v45  ;;  %v6644_v50 = vpop.f32.mrb[74].mxu0  ;;  %2054 = vmatpush1.bf16.msra.mxu0 %v7245_v14  ;;  %v7247_v45 = vld [vmem:[%s11171_s1 + $0x1a8] sm:$0xff]  }
 0x1bd   : > { %v8661_v46 = vadd.f32 %v6644_v50, %v8502_v31  ;;  %v1211_v41 = vpop.f32.mrb[75].mxu0  ;;  %2055 = vmatprep.subr.bf16.mxu0 %v11324_v28 }
 0x1be   : > { %v8665_v62 = vadd.f32 %v1211_v41, %v8491_v30 }
 0x1bf   : > { %6698 = vmatmul.mubr.msk.bf16.gmra.mrb[172].mxu0 %vm7731_vm6, %v7954_v9 }
 0x1c0   : > { %2056 = vmatpush1.bf16.msra.mxu0 %v7246_v15  ;;  %6701 = vmatprep.mubr.msk.bf16.mxu0 %vm7731_vm6, %v7967_v13  ;;  %v7250_v15 = vld [vmem:[%s11171_s1 + $0x1c0] sm:$0xff]  }
 0x1c1   : > { %2057 = vmatprep.subr.bf16.mxu0 %v11324_v28 }
 0x1c2   : > { %v6647_v29 = vpop.f32.mrb[76].mxu0 }
 0x1c3   : > { %v8678_v31 = vadd.f32 %v6647_v29, %v8517_v17  ;;  %v1224_v30 = vpop.f32.mrb[77].mxu0 }
 0x1c4   : > { %v8681_v38 = vadd.f32 %v1224_v30, %v8509_v10  ;;  %v6648_v63 = vpop.f32.mrb[78].mxu0  ;;  %2058 = vmatpush1.bf16.msra.mxu0 %v7247_v45  ;;  %v7249_v10 = vld [vmem:[%s11171_s1 + $0x1b8] sm:$0xff]  }
 0x1c5   : > { %v8687_v60 = vadd.f32 %v6648_v63, %v8519_v25  ;;  %v1227_v14 = vpop.f32.mrb[79].mxu0  ;;  %2059 = vmatprep.subr.bf16.mxu0 %v11324_v28 }
 0x1c6   : > { %v8691_v58 = vadd.f32 %v1227_v14, %v8511_v4 }
 0x1c7   : > { %6702 = vmatmul.mubr.msk.bf16.gmra.mrb[176].mxu0 %vm7731_vm6, %v8005_v32 }
 0x1c8   : > { %2060 = vmatpush1.bf16.msra.mxu0 %v7248_v24  ;;  %6705 = vmatprep.mubr.msk.bf16.mxu0 %vm7731_vm6, %v8011_v6  ;;  %v7252_v24 = vld [vmem:[%s11171_s1 + $0x1d0] sm:$0xff]  }
 0x1c9   : > { %2061 = vmatprep.subr.bf16.mxu0 %v11324_v28 }
 0x1ca   : > { %v6651_v17 = vpop.f32.mrb[80].mxu0 }
 0x1cb   : > { %v8704_v25 = vadd.f32 %v6651_v17, %v8533_v52  ;;  %v1240_v4 = vpop.f32.mrb[81].mxu0 }
 0x1cc   : > { %v8707_v5 = vadd.f32 %v1240_v4, %v8525_v49  ;;  %v6652_v50 = vpop.f32.mrb[82].mxu0  ;;  %2062 = vmatpush1.bf16.msra.mxu0 %v7249_v10  ;;  %v7251_v49 = vld [vmem:[%s11171_s1 + $0x1c8] sm:$0xff]  }
 0x1cd   : > { %v8713_v41 = vadd.f32 %v6652_v50, %v8535_v20  ;;  %v1243_v45 = vpop.f32.mrb[83].mxu0  ;;  %2063 = vmatprep.subr.bf16.mxu0 %v11324_v28 }
 0x1ce   : > { %v8717_v29 = vadd.f32 %v1243_v45, %v8527_v43 }
 0x1cf   : > { %6706 = vmatmul.mubr.msk.bf16.gmra.mrb[180].mxu0 %vm7731_vm6, %v8055_v16 }
 0x1d0   : > { %2064 = vmatpush1.bf16.msra.mxu0 %v7250_v15  ;;  %6709 = vmatprep.mubr.msk.bf16.mxu0 %vm7731_vm6, %v8061_v54  ;;  %v7254_v15 = vld [vmem:[%s11171_s1 + $0x1e0] sm:$0xff]  }
 0x1d1   : > { %2065 = vmatprep.subr.bf16.mxu0 %v11324_v28 }
 0x1d2   : > { %v6655_v20 = vpop.f32.mrb[84].mxu0 }
 0x1d3   : > { %v8730_v52 = vadd.f32 %v6655_v20, %v8549_v7  ;;  %v1256_v43 = vpop.f32.mrb[85].mxu0 }
 0x1d4   : > { %v8733_v30 = vadd.f32 %v1256_v43, %v8541_v42  ;;  %v6656_v63 = vpop.f32.mrb[86].mxu0  ;;  %2066 = vmatpush1.bf16.msra.mxu0 %v7251_v49 }
 0x1d5   : > { %v8739_v14 = vadd.f32 %v6656_v63, %v8551_v19  ;;  %v1259_v10 = vpop.f32.mrb[87].mxu0  ;;  %2067 = vmatprep.subr.bf16.mxu0 %v11324_v28  ;;  %v7253_v19 = vld [vmem:[%s11171_s1 + $0x1d8] sm:$0xff]  }
 0x1d6   : > { %v8743_v17 = vadd.f32 %v1259_v10, %v8543_v44 }
 0x1d7   : > { %6710 = vmatmul.mubr.msk.bf16.gmra.mrb[184].mxu0 %vm7731_vm6, %v8105_v22 }
 0x1d8   : > { %2068 = vmatpush1.bf16.msra.mxu0 %v7252_v24  ;;  %6713 = vmatprep.mubr.msk.bf16.mxu0 %vm7731_vm6, %v8111_v27  ;;  %v7256_v24 = vld [vmem:[%s11171_s1 + $0x1f0] sm:$0xff]  }
 0x1d9   : > { %2069 = vmatprep.subr.bf16.mxu0 %v11324_v28 }
 0x1da   : > { %v6659_v42 = vpop.f32.mrb[88].mxu0 }
 0x1db   : > { %v8756_v7 = vadd.f32 %v6659_v42, %v8565_v51  ;;  %v1272_v44 = vpop.f32.mrb[89].mxu0 }
 0x1dc   : > { %v8759_v4 = vadd.f32 %v1272_v44, %v8557_v21  ;;  %v6660_v50 = vpop.f32.mrb[90].mxu0  ;;  %2070 = vmatpush1.bf16.msra.mxu0 %v7253_v19 }
 0x1dd   : > { %v8765_v45 = vadd.f32 %v6660_v50, %v8567_v39  ;;  %v1275_v49 = vpop.f32.mrb[91].mxu0  ;;  %2071 = vmatprep.subr.bf16.mxu0 %v11324_v28  ;;  %v7255_v39 = vld [vmem:[%s11171_s1 + $0x1e8] sm:$0xff]  }
 0x1de   : > { %v8769_v20 = vadd.f32 %v1275_v49, %v8559_v53 }
 0x1df   : > { %6714 = vmatmul.mubr.msk.bf16.gmra.mrb[188].mxu0 %vm7731_vm6, %v8152_v36 }
 0x1e0   : > { %6717 = vmatprep.mubr.msk.bf16.mxu0 %vm7731_vm6, %v8158_v33  ;;  %2072 = vmatpush1.bf16.msra.mxu0 %v7254_v15 }
 0x1e1   : > { %2073 = vmatprep.subr.bf16.mxu0 %v11324_v28 }
 0x1e2   : > { %v6663_v21 = vpop.f32.mrb[92].mxu0 }
 0x1e3   : > { %v8782_v51 = vadd.f32 %v6663_v21, %v8581_v3  ;;  %v1288_v53 = vpop.f32.mrb[93].mxu0 }
 0x1e4   : > { %v8785_v43 = vadd.f32 %v1288_v53, %v8573_v48  ;;  %v6664_v63 = vpop.f32.mrb[94].mxu0  ;;  %2074 = vmatpush1.bf16.msra.mxu0 %v7255_v39  ;;  %v11381_v53 = vld [vmem:[#allocation14_spill] sm:$0xff] }
 0x1e5   : > { %v8791_v10 = vadd.f32 %v6664_v63, %v8583_v35  ;;  %v1291_v19 = vpop.f32.mrb[95].mxu0  ;;  %2075 = vmatprep.subr.bf16.mxu0 %v11324_v28  ;;  %v7257_v35 = vld [vmem:[%s11171_s1 + $0x1f8] sm:$0xff]  }
 0x1e6   : > { %v8795_v42 = vadd.f32 %v1291_v19, %v8575_v57  ;;  %v7258_v57 = vld [vmem:[%s11171_s1 + $0x200] sm:$0xff]   ;;  %v11382_v63 = vld [vmem:[#allocation13_spill] sm:$0xff] }
 0x1e7   : > { %6718 = vmatmul.mubr.msk.bf16.gmra.mrb[192].mxu0 %vm7731_vm6, %v8188_v8 }
 0x1e8   : > { %6721 = vmatprep.mubr.msk.bf16.mxu0 %vm7731_vm6, %v8196_v37  ;;  %2076 = vmatpush1.bf16.msra.mxu0 %v7256_v24  ;;  %v11383_v24 = vpack.c.bf16 %v11381_v53, %v11382_v63  ;;  %v7260_v53 = vld [vmem:[%s11171_s1 + $0x210] sm:$0xff]   ;;  %v7261_v63 = vld [vmem:[%s11171_s1 + $0x218] sm:$0xff]  }
 0x1e9   : > { %2077 = vmatprep.subr.bf16.mxu0 %v11324_v28  ;;  %v11380_v28 = vld [vmem:[#allocation47_spill] sm:$0xff] }
 0x1ea   : > { %v6667_v48 = vpop.f32.mrb[96].mxu0 }
 0x1eb   : > { %v8811_v3 = vadd.f32 %v6667_v48, %v8597_v59  ;;  %v1304_v44 = vpop.f32.mrb[97].mxu0  ;;  %v11384_v59 = vld [vmem:[#allocation12_spill] sm:$0xff] }
 0x1ec   : > { %v8814_v50 = vadd.f32 %v1304_v44, %v8589_v56  ;;  %v6668_v15 = vpop.f32.mrb[98].mxu0  ;;  %2078 = vmatpush1.bf16.msra.mxu0 %v7257_v35  ;;  %v11385_v44 = vld [vmem:[#allocation3_spill] sm:$0xff] }
 0x1ed   : > { %v8817_v49 = vadd.f32 %v6668_v15, %v8599_v23  ;;  %v1307_v39 = vpop.f32.mrb[99].mxu0  ;;  %6725 = vmatprep.subr.bf16.mxu0 %v7258_v57  ;;  %v7259_v23 = vld [vmem:[%s11171_s1 + $0x208] sm:$0xff]   ;;  %v11386_v15 = vld [vmem:[#allocation4_spill] sm:$0xff] }
 0x1ee   : > { %v8820_v21 = vadd.f32 %v1307_v39, %v11380_v28  ;;  %v11387_v39 = vpack.c.bf16 %v11385_v44, %v11386_v15  ;;  %v11388_v28 = vld [vmem:[#allocation18_spill] sm:$0xff] }
 0x1ef   : > { %6722 = vmatmul.mubr.msk.bf16.gmra.mrb[196].mxu0 %vm7731_vm6, %v11383_v24  ;;  %v11389_v24 = vld [vmem:[#allocation19_spill] sm:$0xff] }
 0x1f0   : > { %2079 = vmatprep.mubr.bf16.mxu0 %v11384_v59 }
 0x1f2   : > { %v1513_v56 = vpop.f32.mrb[100].mxu0 }
 0x1f3   : > { %v1515_v19 = vpop.f32.mrb[101].mxu0  ;;  %v11390_v56 = vld [vmem:[#allocation20_spill] sm:$0xff] }
 0x1f4   : > { %v1516_v48 = vpop.f32.mrb[102].mxu0 }
 0x1f5   : > { %v1518_v35 = vpop.f32.mrb[103].mxu0 }
 0x1f7   : > { %5532 = vmatmul.mubr.msk.bf16.vlgmr.msra.gmra.mrb[200].mxu0 %vm7720_vm5, %v11387_v39  ;;  %v7263_v39 = vld [vmem:[%s11171_s1 + $0x228] sm:$0xff]  }
 0x1f8   : > { %6726 = vmatpush3.bf16.msra.mxu0 %v7258_v57  ;;  %2087 = vmatprep.mubr.bf16.mxu0 %v11388_v28  ;;  %v7262_v57 = vld [vmem:[%s11171_s1 + $0x220] sm:$0xff]  }
 0x1f9   : > { %6727 = vmatprep.subr.bf16.mxu0 %v7259_v23 }
 0x1fc   : > { %6728 = vmatpush3.bf16.msra.mxu0 %v7259_v23 }
 0x1fd   : > { %6729 = vmatprep.subr.bf16.mxu0 %v7260_v53 }
 0x1ff   : > { %5535 = vmatmul.mubr.msk.bf16.gmra.mrb[4].mxu0 %vm7720_vm5, %v11389_v24  ;;  %v11392_v24 = vld [vmem:[#allocation22_spill] sm:$0xff] }
 0x200   : > { %2095 = vmatprep.mubr.bf16.mxu0 %v11390_v56  ;;  %6730 = vmatpush3.bf16.msra.mxu0 %v7260_v53  ;;  %v11391_v53 = vld [vmem:[#allocation21_spill] sm:$0xff] }
 0x201   : > { %6731 = vmatprep.subr.bf16.mxu0 %v7261_v63 }
 0x202   : > { %v1529_v19 = vpop.f32.mrb[104].mxu0 }
 0x203   : > { %v8851_v48 = vadd.f32 %v1529_v19, %v8655_v0  ;;  %v1531_v35 = vpop.f32.mrb[105].mxu0  ;;  %v7264_v0 = vld [vmem:[%s11171_s1 + $0x230] sm:$0xff]  }
 0x204   : > { %v1532_v23 = vpop.f32.mrb[106].mxu0  ;;  %6732 = vmatpush3.bf16.msra.mxu0 %v7261_v63 }
 0x205   : > { %v8854_v44 = vadd.f32 %v1532_v23, %v8665_v62  ;;  %v1534_v15 = vpop.f32.mrb[107].mxu0  ;;  %6733 = vmatprep.subr.bf16.mxu0 %v7262_v57 }
 0x207   : > { %5538 = vmatmul.mubr.msk.bf16.gmra.mrb[204].mxu0 %vm7720_vm5, %v11391_v53  ;;  %v11393_v53 = vld [vmem:[#allocation23_spill] sm:$0xff] }
 0x208   : > { %2103 = vmatprep.mubr.bf16.mxu0 %v11392_v24  ;;  %6734 = vmatpush3.bf16.msra.mxu0 %v7262_v57  ;;  %v7265_v57 = vld [vmem:[%s11171_s1 + $0x238] sm:$0xff]   ;;  %v11394_v24 = vld [vmem:[#allocation24_spill] sm:$0xff] }
 0x209   : > { %6735 = vmatprep.subr.bf16.mxu0 %v7263_v39 }
 0x20a   : > { %v1537_v62 = vpop.f32.mrb[108].mxu0 }
 0x20b   : > { %v8867_v63 = vadd.f32 %v1537_v62, %v8652_v2  ;;  %v1539_v19 = vpop.f32.mrb[109].mxu0 }
 0x20c   : > { %v1540_v35 = vpop.f32.mrb[110].mxu0  ;;  %6736 = vmatpush3.bf16.msra.mxu0 %v7263_v39 }
 0x20d   : > { %v8870_v23 = vadd.f32 %v1540_v35, %v8661_v46  ;;  %v1542_v15 = vpop.f32.mrb[111].mxu0  ;;  %6737 = vmatprep.subr.bf16.mxu0 %v7264_v0 }
 0x20e   : > { %v11395_v15 = vld [vmem:[#allocation25_spill] sm:$0xff] }
 0x20f   : > { %5541 = vmatmul.mubr.msk.bf16.gmra.mrb[208].mxu0 %vm7720_vm5, %v11393_v53  ;;  %v11396_v53 = vld [vmem:[#allocation26_spill] sm:$0xff] }
 0x210   : > { %2111 = vmatprep.mubr.bf16.mxu0 %v11394_v24  ;;  %6738 = vmatpush3.bf16.msra.mxu0 %v7264_v0 }
 0x211   : > { %6739 = vmatprep.subr.bf16.mxu0 %v7265_v57 }
 0x212   : > { %v1545_v2 = vpop.f32.mrb[112].mxu0 }
 0x213   : > { %v8880_v39 = vadd.f32 %v1545_v2, %v8681_v38  ;;  %v1547_v46 = vpop.f32.mrb[113].mxu0 }
 0x214   : > { %v1548_v62 = vpop.f32.mrb[114].mxu0  ;;  %6740 = vmatpush3.bf16.msra.mxu0 %v7265_v57  ;;  %v11397_v46 = vld [vmem:[#allocation27_spill] sm:$0xff] }
 0x215   : > { %v8883_v19 = vadd.f32 %v1548_v62, %v8691_v58  ;;  %v1550_v35 = vpop.f32.mrb[115].mxu0  ;;  %v11398_v58 = vld [vmem:[#allocation28_spill] sm:$0xff] }
 0x217   : > { %5544 = vmatmul.mubr.msk.bf16.gmra.mrb[212].mxu0 %vm7720_vm5, %v11395_v15 }
 0x218   : > { %2119 = vmatprep.mubr.bf16.mxu0 %v11396_v53 }
 0x21a   : > { %v1553_v24 = vpop.f32.mrb[116].mxu0 }
 0x21b   : > { %v8890_v0 = vadd.f32 %v1553_v24, %v8678_v31  ;;  %v1555_v56 = vpop.f32.mrb[117].mxu0  ;;  %v11399_v24 = vld [vmem:[#allocation29_spill] sm:$0xff] }
 0x21c   : > { %v1556_v38 = vpop.f32.mrb[118].mxu0 }
 0x21d   : > { %v8893_v2 = vadd.f32 %v1556_v38, %v8687_v60  ;;  %v1558_v57 = vpop.f32.mrb[119].mxu0  ;;  %v11400_v60 = vld [vmem:[#allocation30_spill] sm:$0xff] }
 0x21f   : > { %5547 = vmatmul.mubr.msk.bf16.gmra.mrb[216].mxu0 %vm7720_vm5, %v11397_v46 }
 0x220   : > { %2127 = vmatprep.mubr.bf16.mxu0 %v11398_v58 }
 0x222   : > { %v1561_v62 = vpop.f32.mrb[120].mxu0 }
 0x223   : > { %v8900_v35 = vadd.f32 %v1561_v62, %v8707_v5  ;;  %v1563_v15 = vpop.f32.mrb[121].mxu0 }
 0x224   : > { %v1564_v53 = vpop.f32.mrb[122].mxu0  ;;  %v11401_v15 = vld [vmem:[#allocation31_spill] sm:$0xff] }
 0x225   : > { %v8903_v31 = vadd.f32 %v1564_v53, %v8717_v29  ;;  %v1566_v56 = vpop.f32.mrb[123].mxu0  ;;  %v11402_v29 = vld [vmem:[#allocation32_spill] sm:$0xff] }
 0x227   : > { %5550 = vmatmul.mubr.msk.bf16.gmra.mrb[220].mxu0 %vm7720_vm5, %v11399_v24 }
 0x228   : > { %2135 = vmatprep.mubr.bf16.mxu0 %v11400_v60 }
 0x22a   : > { %v1569_v38 = vpop.f32.mrb[124].mxu0 }
 0x22b   : > { %v8910_v57 = vadd.f32 %v1569_v38, %v8704_v25  ;;  %v1571_v46 = vpop.f32.mrb[125].mxu0 }
 0x22c   : > { %v1572_v58 = vpop.f32.mrb[126].mxu0  ;;  %v11403_v46 = vld [vmem:[#allocation33_spill] sm:$0xff] }
 0x22d   : > { %v8913_v5 = vadd.f32 %v1572_v58, %v8713_v41  ;;  %v1574_v62 = vpop.f32.mrb[127].mxu0  ;;  %v11404_v41 = vld [vmem:[#allocation34_spill] sm:$0xff] }
 0x22f   : > { %5553 = vmatmul.mubr.msk.bf16.gmra.mrb[224].mxu0 %vm7720_vm5, %v11401_v15 }
 0x230   : > { %2143 = vmatprep.mubr.bf16.mxu0 %v11402_v29 }
 0x232   : > { %v1577_v53 = vpop.f32.mrb[128].mxu0 }
 0x233   : > { %v8920_v56 = vadd.f32 %v1577_v53, %v8733_v30  ;;  %v1579_v24 = vpop.f32.mrb[129].mxu0 }
 0x234   : > { %v1580_v60 = vpop.f32.mrb[130].mxu0  ;;  %v11405_v24 = vld [vmem:[#allocation35_spill] sm:$0xff] }
 0x235   : > { %v8923_v25 = vadd.f32 %v1580_v60, %v8743_v17  ;;  %v1582_v38 = vpop.f32.mrb[131].mxu0  ;;  %v11406_v17 = vld [vmem:[#allocation36_spill] sm:$0xff] }
 0x237   : > { %5556 = vmatmul.mubr.msk.bf16.gmra.mrb[228].mxu0 %vm7720_vm5, %v11403_v46 }
 0x238   : > { %2151 = vmatprep.mubr.bf16.mxu0 %v11404_v41 }
 0x23a   : > { %v1585_v58 = vpop.f32.mrb[132].mxu0 }
 0x23b   : > { %v8930_v62 = vadd.f32 %v1585_v58, %v8730_v52  ;;  %v1587_v15 = vpop.f32.mrb[133].mxu0 }
 0x23c   : > { %v1588_v29 = vpop.f32.mrb[134].mxu0  ;;  %v11407_v15 = vld [vmem:[#allocation37_spill] sm:$0xff] }
 0x23d   : > { %v8933_v30 = vadd.f32 %v1588_v29, %v8739_v14  ;;  %v1590_v53 = vpop.f32.mrb[135].mxu0  ;;  %v11408_v14 = vld [vmem:[#allocation38_spill] sm:$0xff] }
 0x23f   : > { %5559 = vmatmul.mubr.msk.bf16.gmra.mrb[232].mxu0 %vm7720_vm5, %v11405_v24 }
 0x240   : > { %2159 = vmatprep.mubr.bf16.mxu0 %v11406_v17 }
 0x242   : > { %v1593_v60 = vpop.f32.mrb[136].mxu0 }
 0x243   : > { %v8940_v38 = vadd.f32 %v1593_v60, %v8759_v4  ;;  %v1595_v46 = vpop.f32.mrb[137].mxu0 }
 0x244   : > { %v1596_v41 = vpop.f32.mrb[138].mxu0  ;;  %v11409_v46 = vld [vmem:[#allocation39_spill] sm:$0xff] }
 0x245   : > { %v8943_v52 = vadd.f32 %v1596_v41, %v8769_v20  ;;  %v1598_v58 = vpop.f32.mrb[139].mxu0  ;;  %v11410_v20 = vld [vmem:[#allocation40_spill] sm:$0xff] }
 0x247   : > { %5562 = vmatmul.mubr.msk.bf16.gmra.mrb[236].mxu0 %vm7720_vm5, %v11407_v15 }
 0x248   : > { %2167 = vmatprep.mubr.bf16.mxu0 %v11408_v14 }
 0x24a   : > { %v1601_v29 = vpop.f32.mrb[140].mxu0 }
 0x24b   : > { %v8950_v53 = vadd.f32 %v1601_v29, %v8756_v7  ;;  %v1603_v24 = vpop.f32.mrb[141].mxu0 }
 0x24c   : > { %v1604_v17 = vpop.f32.mrb[142].mxu0  ;;  %v11411_v24 = vld [vmem:[#allocation41_spill] sm:$0xff] }
 0x24d   : > { %v8953_v4 = vadd.f32 %v1604_v17, %v8765_v45  ;;  %v1606_v60 = vpop.f32.mrb[143].mxu0  ;;  %v11412_v45 = vld [vmem:[#allocation42_spill] sm:$0xff] }
 0x24f   : > { %5565 = vmatmul.mubr.msk.bf16.gmra.mrb[240].mxu0 %vm7720_vm5, %v11409_v46 }
 0x250   : > { %2175 = vmatprep.mubr.bf16.mxu0 %v11410_v20 }
 0x252   : > { %v1609_v41 = vpop.f32.mrb[144].mxu0 }
 0x253   : > { %v8960_v58 = vadd.f32 %v1609_v41, %v8785_v43  ;;  %v1611_v15 = vpop.f32.mrb[145].mxu0 }
 0x254   : > { %v1612_v14 = vpop.f32.mrb[146].mxu0  ;;  %v11413_v15 = vld [vmem:[#allocation43_spill] sm:$0xff] }
 0x255   : > { %v8963_v7 = vadd.f32 %v1612_v14, %v8795_v42  ;;  %v1614_v29 = vpop.f32.mrb[147].mxu0  ;;  %v11414_v42 = vld [vmem:[#allocation44_spill] sm:$0xff] }
 0x257   : > { %5568 = vmatmul.mubr.msk.bf16.gmra.mrb[244].mxu0 %vm7720_vm5, %v11411_v24 }
 0x258   : > { %2183 = vmatprep.mubr.bf16.mxu0 %v11412_v45 }
 0x25a   : > { %v1617_v17 = vpop.f32.mrb[148].mxu0 }
 0x25b   : > { %v8970_v60 = vadd.f32 %v1617_v17, %v8782_v51  ;;  %v1619_v46 = vpop.f32.mrb[149].mxu0 }
 0x25c   : > { %v1620_v20 = vpop.f32.mrb[150].mxu0 }
 0x25d   : > { %v8973_v43 = vadd.f32 %v1620_v20, %v8791_v10  ;;  %v1622_v41 = vpop.f32.mrb[151].mxu0  ;;  %v11415_v10 = vld [vmem:[#allocation45_spill] sm:$0xff] }
 0x25f   : > { %5571 = vmatmul.mubr.msk.bf16.gmra.mrb[248].mxu0 %vm7720_vm5, %v11413_v15 }
 0x260   : > { %2191 = vmatprep.mubr.bf16.mxu0 %v11414_v42 }
 0x262   : > { %v1625_v14 = vpop.f32.mrb[152].mxu0 }
 0x263   : > { %v8980_v29 = vadd.f32 %v1625_v14, %v8814_v50  ;;  %v1627_v24 = vpop.f32.mrb[153].mxu0 }
 0x264   : > { %v1628_v51 = vpop.f32.mrb[154].mxu0 }
 0x265   : > { %v8983_v17 = vadd.f32 %v1628_v51, %v8820_v21  ;;  %v1630_v46 = vpop.f32.mrb[155].mxu0  ;;  %v11416_v21 = vld [vmem:[#allocation17_spill] sm:$0xff]  ;;  %v9000_v51 = vld [vmem:[%s7475_s30 + $0x130] sm:$0xff] }
 0x267   : > { %5574 = vmatmul.mubr.msk.bf16.gmra.mrb[252].mxu0 %vm7720_vm5, %v11415_v10 }
 0x268   : > { %2199 = vmatprep.mubr.bf16.mxu0 %v7739_v61  ;;  %v9007_v61 = vld [vmem:[%s7475_s30 + $0x138] sm:$0xff] }
 0x26a   : > { %v1633_v20 = vpop.f32.mrb[156].mxu0 }
 0x26b   : > { %v8990_v41 = vadd.f32 %v1633_v20, %v8811_v3  ;;  %v1635_v15 = vpop.f32.mrb[157].mxu0 }
 0x26c   : > { %v1636_v50 = vpop.f32.mrb[158].mxu0  ;;  %v1833_v15 = vrot.slane %v9000_v51, 7 }
 0x26d   : > { %v8993_v14 = vadd.f32 %v1636_v50, %v8817_v49  ;;  %v1638_v24 = vpop.f32.mrb[159].mxu0  ;;  %v1852_v49 = vpack.c.bf16 %v9007_v61, %v9000_v51 }
 0x26e   : > { %v11417_v24 = vld [vmem:[#allocation46_spill] sm:$0xff] }
 0x26f   : > { %5577 = vmatmul.mubr.msk.bf16.gmra.mrb[0].mxu0 %vm7720_vm5, %v8301_v40 }
 0x270   : > { %2207 = vmatprep.mubr.bf16.mxu0 %v11416_v21  ;;  %v11418_v21 = vld [vmem:[#allocation2_spill] sm:$0xff] }
 0x272   : > { %v1641_v46 = vpop.f32.mrb[160].mxu0 }
 0x273   : > { %v9003_v10 = vadd.f32 %v1641_v46, %v8614_v47  ;;  %v1643_v3 = vpop.f32.mrb[161].mxu0  ;;  %v11419_v47 = vrot.slane %v11418_v21, 7 }
 0x274   : > { %v1644_v20 = vpop.f32.mrb[162].mxu0  ;;  %v11420_v3 = vld [vmem:[#allocation5_spill] sm:$0xff] }
 0x275   : > { %v9012_v50 = vadd.f32 %v1644_v20, %v8617_v55  ;;  %v1646_v40 = vpop.f32.mrb[163].mxu0  ;;  %v1835_v46 = vsel %vm481_vm0, %v1833_v15, %v11419_v47  ;;  %v1836_v42 = vsel %vm481_vm0, %v11420_v3, %v1833_v15 }
 0x276   : > { %v5582_v59 = vpack.c.bf16 %v1835_v46, %v1836_v42 }
 0x277   : > { %5580 = vmatmul.mubr.msk.bf16.gmra.mrb[8].mxu0 %vm7720_vm5, %v11417_v24 }
 0x278   : > { %2215 = vmatprep.mubr.bf16.mxu0 %v1852_v49 }
 0x27a   : > { %v1649_v45 = vpop.f32.mrb[164].mxu0 }
 0x27b   : > { %v1651_v28 = vpop.f32.mrb[165].mxu0 }
 0x27c   : > { %v1652_v55 = vpop.f32.mrb[166].mxu0 }
 0x27d   : > { %v1654_v20 = vpop.f32.mrb[167].mxu0 }
 0x27f   : > { %5583 = vmatmul.mubr.msk.bf16.gmra.mrb[12].mxu0 %vm7720_vm5, %v5582_v59 }
 0x280   : > { %6741 = vmatprep.mubr.msk.bf16.mxu0 %vm7731_vm6, %v7829_v18 }
 0x287   : > { %6742 = vmatmul.mubr.msk.bf16.vlgmr.msra.gmra.mrb[4].mxu0 %vm7731_vm6, %v7893_v12 }
 0x288   : > { %6745 = vmatprep.mubr.msk.bf16.mxu0 %vm7731_vm6, %v7908_v34 }
 0x28a   : > { %v6695_v45 = vpop.f32.mrb[168].mxu0 }
 0x28b   : > { %v9036_v28 = vadd.f32 %v6695_v45, %v8867_v63  ;;  %v1706_v42 = vpop.f32.mrb[169].mxu0 }
 0x28c   : > { %v9039_v15 = vadd.f32 %v1706_v42, %v8851_v48  ;;  %v6696_v59 = vpop.f32.mrb[170].mxu0 }
 0x28d   : > { %v9042_v49 = vadd.f32 %v6696_v59, %v8870_v23  ;;  %v1709_v18 = vpop.f32.mrb[171].mxu0 }
 0x28e   : > { %v9045_v40 = vadd.f32 %v1709_v18, %v8854_v44 }
 0x28f   : > { %6746 = vmatmul.mubr.msk.bf16.gmra.mrb[16].mxu0 %vm7731_vm6, %v7954_v9 }
 0x290   : > { %6749 = vmatprep.mubr.msk.bf16.mxu0 %vm7731_vm6, %v7967_v13 }
 0x292   : > { %v6699_v12 = vpop.f32.mrb[172].mxu0 }
 0x293   : > { %v9054_v34 = vadd.f32 %v6699_v12, %v8890_v0  ;;  %v1722_v48 = vpop.f32.mrb[173].mxu0 }
 0x294   : > { %v9057_v63 = vadd.f32 %v1722_v48, %v8880_v39  ;;  %v6700_v23 = vpop.f32.mrb[174].mxu0 }
 0x295   : > { %v9060_v44 = vadd.f32 %v6700_v23, %v8893_v2  ;;  %v1725_v24 = vpop.f32.mrb[175].mxu0 }
 0x296   : > { %v9063_v21 = vadd.f32 %v1725_v24, %v8883_v19 }
 0x297   : > { %6750 = vmatmul.mubr.msk.bf16.gmra.mrb[20].mxu0 %vm7731_vm6, %v8005_v32 }
 0x298   : > { %6753 = vmatprep.mubr.msk.bf16.mxu0 %vm7731_vm6, %v8011_v6 }
 0x29a   : > { %v6703_v13 = vpop.f32.mrb[176].mxu0 }
 0x29b   : > { %v9072_v9 = vadd.f32 %v6703_v13, %v8910_v57  ;;  %v1738_v39 = vpop.f32.mrb[177].mxu0  ;;  %v11428_v13 = vld [vmem:[#allocation15_spill] sm:$0xff] }
 0x29c   : > { %v9075_v0 = vadd.f32 %v1738_v39, %v8900_v35  ;;  %v6704_v2 = vpop.f32.mrb[178].mxu0 }
 0x29d   : > { %v9078_v19 = vadd.f32 %v6704_v2, %v8913_v5  ;;  %v1741_v47 = vpop.f32.mrb[179].mxu0 }
 0x29e   : > { %v9081_v46 = vadd.f32 %v1741_v47, %v8903_v31 }
 0x29f   : > { %6754 = vmatmul.mubr.msk.bf16.gmra.mrb[24].mxu0 %vm7731_vm6, %v8055_v16 }
 0x2a0   : > { %6757 = vmatprep.mubr.msk.bf16.mxu0 %vm7731_vm6, %v8061_v54 }
 0x2a2   : > { %v6707_v32 = vpop.f32.mrb[180].mxu0 }
 0x2a3   : > { %v9090_v6 = vadd.f32 %v6707_v32, %v8930_v62  ;;  %v1754_v35 = vpop.f32.mrb[181].mxu0 }
 0x2a4   : > { %v9093_v57 = vadd.f32 %v1754_v35, %v8920_v56  ;;  %v6708_v5 = vpop.f32.mrb[182].mxu0 }
 0x2a5   : > { %v9096_v31 = vadd.f32 %v6708_v5, %v8933_v30  ;;  %v1757_v3 = vpop.f32.mrb[183].mxu0 }
 0x2a6   : > { %v9099_v55 = vadd.f32 %v1757_v3, %v8923_v25 }
 0x2a7   : > { %6758 = vmatmul.mubr.msk.bf16.gmra.mrb[28].mxu0 %vm7731_vm6, %v8105_v22 }
 0x2a8   : > { %6761 = vmatprep.mubr.msk.bf16.mxu0 %vm7731_vm6, %v8111_v27 }
 0x2aa   : > { %v6711_v16 = vpop.f32.mrb[184].mxu0 }
 0x2ab   : > { %v9108_v54 = vadd.f32 %v6711_v16, %v8950_v53  ;;  %v1770_v56 = vpop.f32.mrb[185].mxu0 }
 0x2ac   : > { %v9111_v62 = vadd.f32 %v1770_v56, %v8940_v38  ;;  %v6712_v30 = vpop.f32.mrb[186].mxu0 }
 0x2ad   : > { %v9114_v25 = vadd.f32 %v6712_v30, %v8953_v4  ;;  %v1773_v20 = vpop.f32.mrb[187].mxu0 }
 0x2ae   : > { %v9117_v45 = vadd.f32 %v1773_v20, %v8943_v52  ;;  %v1841_v52 = vrot.slane %v9000_v51, 1 }
 0x2af   : > { %6762 = vmatmul.mubr.msk.bf16.gmra.mrb[32].mxu0 %vm7731_vm6, %v8152_v36 }
 0x2b0   : > { %6765 = vmatprep.mubr.msk.bf16.mxu0 %vm7731_vm6, %v8158_v33  ;;  %v11422_v33 = vld [vmem:[#allocation11_spill] sm:$0xff] }
 0x2b2   : > { %v6715_v22 = vpop.f32.mrb[188].mxu0 }
 0x2b3   : > { %v9126_v27 = vadd.f32 %v6715_v22, %v8970_v60  ;;  %v1786_v38 = vpop.f32.mrb[189].mxu0 }
 0x2b4   : > { %v9129_v53 = vadd.f32 %v1786_v38, %v8960_v58  ;;  %v6716_v4 = vpop.f32.mrb[190].mxu0  ;;  %v1844_v58 = vsel %vm592_vm1, %v11422_v33, %v1841_v52 }
 0x2b5   : > { %v9133_v42 = vadd.f32 %v6716_v4, %v8973_v43  ;;  %v1789_v59 = vpop.f32.mrb[191].mxu0 }
 0x2b6   : > { %v9136_v36 = vadd.f32 %v1789_v59, %v8963_v7  ;;  %v1842_v7 = vrot.slane %v9007_v61, 1 }
 0x2b7   : > { %6766 = vmatmul.mubr.msk.bf16.gmra.mrb[36].mxu0 %vm7731_vm6, %v8188_v8  ;;  %v11425_v8 = vld [vmem:[#allocation16_spill] sm:$0xff] }
 0x2b8   : > { %11421 = vst [vmem:[#allocation7_spill] sm:$0xff] %v9136_v36  ;;  %6769 = vmatprep.mubr.msk.bf16.mxu0 %vm7731_vm6, %v8196_v37  ;;  %v5633_v48 = vpack.c.bf16 %v1844_v58, %v11425_v8  ;;  %v1843_v61 = vsel %vm592_vm1, %v1841_v52, %v1842_v7 }
 0x2ba   : > { %v6719_v60 = vpop.f32.mrb[192].mxu0 }
 0x2bb   : > { %v9148_v43 = vadd.f32 %v6719_v60, %v8990_v41  ;;  %v1802_v51 = vpop.f32.mrb[193].mxu0  ;;  %v11429_v41 = vld [vmem:[#allocation6_spill] sm:$0xff] }
 0x2bc   : > { %v9152_v18 = vadd.f32 %v1802_v51, %v8980_v29  ;;  %v6720_v12 = vpop.f32.mrb[194].mxu0  ;;  %v1845_v29 = vsel %vm592_vm1, %v1842_v7, %v11429_v41 }
 0x2bd   : > { %11423 = vst [vmem:[#allocation47_spill] sm:$0xff] %v9148_v43  ;;  %v9156_v23 = vadd.f32 %v6720_v12, %v8993_v14  ;;  %v1805_v37 = vpop.f32.mrb[195].mxu0  ;;  %v5636_v39 = vpack.c.bf16 %v1845_v29, %v1843_v61 }
 0x2be   : > { %11424 = vst [vmem:[#allocation14_spill] sm:$0xff] %v9152_v18  ;;  %v9159_v24 = vadd.f32 %v1805_v37, %v8983_v17 }
 0x2bf   : > { %11426 = vst [vmem:[#allocation13_spill] sm:$0xff] %v9156_v23  ;;  %6770 = vmatmul.mubr.msk.bf16.gmra.mrb[40].mxu0 %vm7731_vm6, %v11428_v13 }
 0x2c0   : > { %11427 = vst [vmem:[#allocation3_spill] sm:$0xff] %v9159_v24  ;;  %6773 = vmatprep.mubr.msk.bf16.mxu0 %vm7731_vm6, %v5633_v48 }
 0x2c2   : > { %v6723_v14 = vpop.f32.mrb[196].mxu0 }
 0x2c3   : > { %v1818_v2 = vpop.f32.mrb[197].mxu0 }
 0x2c4   : > { %v9172_v17 = vadd.f32 %v1818_v2, %v9003_v10  ;;  %v6724_v47 = vpop.f32.mrb[198].mxu0 }
 0x2c5   : > { %v1821_v32 = vpop.f32.mrb[199].mxu0 }
 0x2c6   : > { %11430 = vst [vmem:[#allocation4_spill] sm:$0xff] %v9172_v17  ;;  %v9175_v35 = vadd.f32 %v1821_v32, %v9012_v50 }
 0x2c7   : > { %6774 = vmatmul.mubr.msk.bf16.gmra.mrb[44].mxu0 %vm7731_vm6, %v5636_v39 }
 0x2c8   : > { %11431 = vst [vmem:[#allocation19_spill] sm:$0xff] %v9175_v35 }
 0x2ca   : > { %v2081_v5 = vpop.f32.mrb[200].mxu0 }
 0x2cb   : > { %v2083_v3 = vpop.f32.mrb[201].mxu0 }
 0x2cc   : > { %v2084_v16 = vpop.f32.mrb[202].mxu0  ;;  %v7266_v3 = vld [vmem:[%s11174_s4 + $0x100] sm:$0xff]  }
 0x2cd   : > { %v2086_v56 = vpop.f32.mrb[203].mxu0  ;;  %v7267_v16 = vld [vmem:[%s11174_s4 + $0xc0] sm:$0xff]   ;;  %6189 = vmatprep.subr.bf16.mxu1 %v7266_v3 }
 0x2ce   : > { %6190 = vmatpush3.bf16.msra.mxu1 %v7267_v16  ;;  %v7268_v56 = vld [vmem:[%s11174_s4 + $0x108] sm:$0xff]   ;;  %v7275_v3 = vld [vmem:[%s11174_s4 + $0xe0] sm:$0xff]  }
 0x2cf   : > { %6191 = vmatprep.subr.bf16.mxu1 %v7268_v56  ;;  %v7276_v16 = vld [vmem:[%s11174_s4 + $0x128] sm:$0xff]  }
 0x2da   : > { %v9179_v30 = vpop.f32.mrb[204].mxu0 }
 0x2db   : > { %v2099_v20 = vpop.f32.mrb[205].mxu0 }
 0x2dc   : > { %v9181_v22 = vpop.f32.mrb[206].mxu0 }
 0x2dd   : > { %v2102_v38 = vpop.f32.mrb[207].mxu0 }
 0x2de   : > { %v7269_v38 = vld [vmem:[%s11174_s4 + $0xc8] sm:$0xff]  }
 0x2df   : > { %6192 = vmatpush3.bf16.msra.mxu1 %v7269_v38  ;;  %v7277_v38 = vld [vmem:[%s11174_s4 + $0xe8] sm:$0xff]  }
 0x2e2   : > { %v9183_v10 = vpop.f32.mrb[208].mxu0 }
 0x2e3   : > { %v2107_v4 = vpop.f32.mrb[209].mxu0 }
 0x2e4   : > { %v9185_v52 = vpop.f32.mrb[210].mxu0 }
 0x2e5   : > { %v2110_v50 = vpop.f32.mrb[211].mxu0 }
 0x2ea   : > { %v9187_v59 = vpop.f32.mrb[212].mxu0 }
 0x2eb   : > { %v2115_v33 = vpop.f32.mrb[213].mxu0 }
 0x2ec   : > { %v9189_v58 = vpop.f32.mrb[214].mxu0 }
 0x2ed   : > { %v2118_v60 = vpop.f32.mrb[215].mxu0 }
 0x2ee   : > { %v7270_v60 = vld [vmem:[%s11174_s4 + $0x110] sm:$0xff]  }
 0x2ef   : > { %6193 = vmatprep.subr.bf16.mxu1 %v7270_v60 }
 0x2f2   : > { %v9191_v51 = vpop.f32.mrb[216].mxu0 }
 0x2f3   : > { %v2123_v7 = vpop.f32.mrb[217].mxu0 }
 0x2f4   : > { %v9193_v12 = vpop.f32.mrb[218].mxu0  ;;  %v7271_v7 = vld [vmem:[%s11174_s4 + $0xd0] sm:$0xff]  }
 0x2f5   : > { %v2126_v8 = vpop.f32.mrb[219].mxu0  ;;  %6194 = vmatpush3.bf16.msra.mxu1 %v7271_v7  ;;  %v7278_v7 = vld [vmem:[%s11174_s4 + $0x130] sm:$0xff]  }
 0x2f6   : > { %v7272_v8 = vld [vmem:[%s11174_s4 + $0x118] sm:$0xff]  }
 0x2f7   : > { %6195 = vmatprep.subr.bf16.mxu1 %v7272_v8  ;;  %v7279_v8 = vld [vmem:[%s11174_s4 + $0xf0] sm:$0xff]  }
 0x2fa   : > { %v9195_v48 = vpop.f32.mrb[220].mxu0 }
 0x2fb   : > { %v2131_v37 = vpop.f32.mrb[221].mxu0 }
 0x2fc   : > { %v9197_v13 = vpop.f32.mrb[222].mxu0 }
 0x2fd   : > { %v2134_v61 = vpop.f32.mrb[223].mxu0 }
 0x2fe   : > { %v7273_v61 = vld [vmem:[%s11174_s4 + $0xd8] sm:$0xff]  }
 0x2ff   : > { %6196 = vmatpush3.bf16.msra.mxu1 %v7273_v61  ;;  %v7280_v61 = vld [vmem:[%s11174_s4 + $0x138] sm:$0xff]  }
 0x302   : > { %v9199_v41 = vpop.f32.mrb[224].mxu0 }
 0x303   : > { %v2139_v29 = vpop.f32.mrb[225].mxu0 }
 0x304   : > { %v9201_v14 = vpop.f32.mrb[226].mxu0 }
 0x305   : > { %v2142_v39 = vpop.f32.mrb[227].mxu0 }
 0x30a   : > { %v9203_v2 = vpop.f32.mrb[228].mxu0 }
 0x30b   : > { %v2147_v47 = vpop.f32.mrb[229].mxu0 }
 0x30c   : > { %v9205_v32 = vpop.f32.mrb[230].mxu0 }
 0x30d   : > { %v2150_v5 = vpop.f32.mrb[231].mxu0 }
 0x30e   : > { %v7274_v5 = vld [vmem:[%s11174_s4 + $0x120] sm:$0xff]  }
 0x30f   : > { %6197 = vmatprep.subr.bf16.mxu1 %v7274_v5 }
 0x310   : > { %6198 = vmatpush3.bf16.msra.mxu1 %v7275_v3 }
 0x311   : > { %6199 = vmatprep.subr.bf16.mxu1 %v7276_v16 }
 0x312   : > { %v9216_v20 = vpop.f32.mrb[232].mxu0 }
 0x313   : > { %v2155_v4 = vpop.f32.mrb[233].mxu0 }
 0x314   : > { %v9221_v50 = vpop.f32.mrb[234].mxu0  ;;  %6200 = vmatpush3.bf16.msra.mxu1 %v7277_v38  ;;  %v9274_v38 = vld [vmem:[%s11174_s4 + $0x140] sm:$0xff]  }
 0x315   : > { %v2158_v33 = vpop.f32.mrb[235].mxu0  ;;  %6201 = vmatprep.subr.bf16.mxu1 %v7278_v7  ;;  %11432 = vst [vmem:[#allocation21_spill] sm:$0xff] %v9274_v38 }
 0x318   : > { %6202 = vmatpush3.bf16.msra.mxu1 %v7279_v8 }
 0x319   : > { %6203 = vmatprep.subr.bf16.mxu1 %v7280_v61 }
 0x31a   : > { %v9232_v37 = vpop.f32.mrb[236].mxu0 }
 0x31b   : > { %v2163_v29 = vpop.f32.mrb[237].mxu0 }
 0x31c   : > { %v9237_v39 = vpop.f32.mrb[238].mxu0  ;;  %v7281_v29 = vld [vmem:[%s11174_s4 + $0xf8] sm:$0xff]  }
 0x31d   : > { %v2166_v47 = vpop.f32.mrb[239].mxu0  ;;  %6204 = vmatpush3.bf16.msra.mxu1 %v7281_v29 }
 0x31e   : > { %6777 = vmatprep.subr.bf16.mxu1 %v9274_v38 }
 0x322   : > { %v9248_v56 = vpop.f32.mrb[240].mxu0 }
 0x323   : > { %v2171_v4 = vpop.f32.mrb[241].mxu0 }
 0x324   : > { %v9253_v33 = vpop.f32.mrb[242].mxu0 }
 0x325   : > { %v2174_v60 = vpop.f32.mrb[243].mxu0 }
 0x32a   : > { %v9267_v47 = vpop.f32.mrb[244].mxu0 }
 0x32b   : > { %v2179_v5 = vpop.f32.mrb[245].mxu0 }
 0x32c   : > { %v9269_v3 = vpop.f32.mrb[246].mxu0 }
 0x32d   : > { %v2182_v16 = vpop.f32.mrb[247].mxu0 }
 0x332   : > { %v9277_v4 = vpop.f32.mrb[248].mxu0 }
 0x333   : > { %v2187_v60 = vpop.f32.mrb[249].mxu0 }
 0x334   : > { %v9279_v7 = vpop.f32.mrb[250].mxu0 }
 0x335   : > { %v2190_v8 = vpop.f32.mrb[251].mxu0 }
 0x33a   : > { %v9281_v1 = vpop.f32.mrb[252].mxu0 }
 0x33b   : > { %11433 = vst [vmem:[#allocation23_spill] sm:$0xff] %v9281_v1  ;;  %v2195_v61 = vpop.f32.mrb[253].mxu0 }
 0x33c   : > { %v9283_v5 = vpop.f32.mrb[254].mxu0  ;;  %v9296_v61 = vld [vmem:[%s11172_s2] ss:$0 sm:$0xff] }
 0x33d   : > { %11434 = vst [vmem:[#allocation25_spill] sm:$0xff] %v9283_v5  ;;  %v2198_v29 = vpop.f32.mrb[255].mxu0 }
 0x342   : > { %v9285_v16 = vpop.f32.mrb[0].mxu0 }
 0x343   : > { %11435 = vst [vmem:[#allocation27_spill] sm:$0xff] %v9285_v16  ;;  %v2203_v26 = vpop.f32.mrb[1].mxu0 }
 0x344   : > { %v9287_v35 = vpop.f32.mrb[2].mxu0  ;;  %v9301_v26 = vld [vmem:[%s11173_s3] ss:$0 sm:$0xff] }
 0x345   : > { %11436 = vst [vmem:[#allocation29_spill] sm:$0xff] %v9287_v35  ;;  %v2206_v17 = vpop.f32.mrb[3].mxu0 }
 0x34a   : > { %v9289_v24 = vpop.f32.mrb[8].mxu0 }
 0x34b   : > { %11437 = vst [vmem:[#allocation31_spill] sm:$0xff] %v9289_v24  ;;  %v2211_v38 = vpop.f32.mrb[9].mxu0 }
 0x34c   : > { %v9291_v23 = vpop.f32.mrb[10].mxu0 }
 0x34d   : > { %11438 = vst [vmem:[#allocation33_spill] sm:$0xff] %v9291_v23  ;;  %v2214_v60 = vpop.f32.mrb[11].mxu0 }
 0x352   : > { %v2217_v18 = vpop.f32.mrb[12].mxu0 }
 0x353   : > { %v2219_v8 = vpop.f32.mrb[13].mxu0 }
 0x354   : > { %v2220_v43 = vpop.f32.mrb[14].mxu0 }
 0x355   : > { %v2222_v1 = vpop.f32.mrb[15].mxu0 }
 0x35a   : > { %v6743_v29 = vpop.f32.mrb[4].mxu0 }
 0x35b   : > { %v2446_v17 = vmul.f32 %v6743_v29, %v9296_v61  ;;  %v2258_v38 = vpop.f32.mrb[5].mxu0 }
 0x35c   : > { %v6744_v23 = vpop.f32.mrb[6].mxu0 }
 0x35d   : > { %v2489_v18 = vadd.f32 %v9301_v26, %v2446_v17  ;;  %v2447_v43 = vmul.f32 %v6744_v23, %v9296_v61  ;;  %v2261_v1 = vpop.f32.mrb[7].mxu0 }
 0x35f   : > { %v2490_v60 = vadd.f32 %v9301_v26, %v2447_v43  ;;  %v2525_v8 = vmax.f32 %v2489_v18, 0.0 }
 0x361   : > { %v9307_v24 = vmax.f32 %v2490_v60, 0.0 }
 0x362   : > { %v6747_v5 = vpop.f32.mrb[16].mxu0 }
 0x363   : > { %11439 = vst [vmem:[#allocation35_spill] sm:$0xff] %v9307_v24  ;;  %v2283_v35 = vadd.f32 %v6747_v5, %v9183_v10  ;;  %v2274_v16 = vpop.f32.mrb[17].mxu0  ;;  %v9311_v36 = vpack.c.bf16 %v9307_v24, %v2525_v8 }
 0x364   : > { %v2275_v29 = vadd.f32 %v2274_v16, %v9179_v30  ;;  %v6748_v38 = vpop.f32.mrb[18].mxu0 }
 0x365   : > { %11440 = vst [vmem:[#allocation37_spill] sm:$0xff] %v9311_v36  ;;  %v2407_v17 = vadd.f32 %v2283_v35, %v9036_v28  ;;  %v2286_v23 = vadd.f32 %v6748_v38, %v9185_v52  ;;  %v2277_v1 = vpop.f32.mrb[19].mxu0  ;;  %3241 = vmatprep.mubr.bf16.mxu1 %v9311_v36 }
 0x366   : > { %v2405_v18 = vadd.f32 %v2275_v29, %v9039_v15  ;;  %v2278_v43 = vadd.f32 %v2277_v1, %v9181_v22 }
 0x367   : > { %v2450_v10 = vmul.f32 %v9296_v61, %v2407_v17  ;;  %v2408_v5 = vadd.f32 %v2286_v23, %v9042_v49 }
 0x368   : > { %v2448_v60 = vmul.f32 %v9296_v61, %v2405_v18  ;;  %v2406_v30 = vadd.f32 %v2278_v43, %v9045_v40  ;;  %v7375_v18 = vmov 0.0  }
 0x369   : > { %v2493_v16 = vadd.f32 %v9301_v26, %v2450_v10  ;;  %v2451_v28 = vmul.f32 %v9296_v61, %v2408_v5  ;;  %v9333_v43 = vrot.slane %v7375_v18, 7  ;;  %v9335_v10 = vrot.slane %v2525_v8, 7 }
 0x36a   : > { %v2491_v35 = vadd.f32 %v9301_v26, %v2448_v60  ;;  %v2449_v52 = vmul.f32 %v9296_v61, %v2406_v30  ;;  %v6751_v38 = vpop.f32.mrb[20].mxu0  ;;  %v2710_v5 = vrot.slane %v9307_v24, 7 }
 0x36b   : > { %v9327_v15 = vmax.f32 %v2493_v16, 0.0  ;;  %v2494_v22 = vadd.f32 %v9301_v26, %v2451_v28  ;;  %v2299_v29 = vadd.f32 %v6751_v38, %v9191_v51  ;;  %v2290_v49 = vpop.f32.mrb[21].mxu0  ;;  %11441 = vst [vmem:[#allocation39_spill] sm:$0xff] %v9333_v43  ;;  %11442 = vst [vmem:[#allocation41_spill] sm:$0xff] %v9335_v10  ;;  %v9339_v16 = vrot.slane %v7375_v18, 1 }
 0x36c   : > { %v2527_v17 = vmax.f32 %v2491_v35, 0.0  ;;  %v2492_v23 = vadd.f32 %v9301_v26, %v2449_v52  ;;  %v2291_v40 = vadd.f32 %v2290_v49, %v9187_v59  ;;  %v6752_v1 = vpop.f32.mrb[22].mxu0 }
 0x36d   : > { %v2411_v60 = vadd.f32 %v2299_v29, %v9054_v34  ;;  %v2293_v30 = vpop.f32.mrb[23].mxu0  ;;  %11443 = vst [vmem:[#allocation43_spill] sm:$0xff] %v9339_v16  ;;  %v9347_v38 = vmax.f32 %v2494_v22, 0.0  ;;  %v2302_v36 = vadd.f32 %v6752_v1, %v9193_v12  ;;  %v11445_v12 = vrot.slane %v9327_v15, 1 }
 0x36e   : > { %v2711_v28 = vrot.slane %v2527_v17, 7  ;;  %v9342_v35 = vmax.f32 %v2492_v23, 0.0  ;;  %v2409_v59 = vadd.f32 %v2291_v40, %v9057_v63  ;;  %v9345_v52 = vrot.slane %v2527_v17, 1 }
 0x36f   : > { %v2454_v49 = vmul.f32 %v9296_v61, %v2411_v60  ;;  %v2294_v51 = vadd.f32 %v2293_v30, %v9189_v58  ;;  %v2412_v63 = vadd.f32 %v2302_v36, %v9060_v44  ;;  %v9371_v36 = vrot.slane %v2525_v8, 1 }
 0x370   : > { %11444 = vst [vmem:[#allocation45_spill] sm:$0xff] %v9345_v52  ;;  %v2808_v29 = vrot.slane %v9342_v35, 1  ;;  %v2452_v18 = vmul.f32 %v9296_v61, %v2409_v59  ;;  %v9358_v40 = vpack.c.bf16 %v9342_v35, %v2527_v17  ;;  %v2766_v22 = vsel %vm481_vm0, %v2710_v5, %v2711_v28 }
 0x371   : > { %v2497_v23 = vadd.f32 %v9301_v26, %v2454_v49  ;;  %v2410_v30 = vadd.f32 %v2294_v51, %v9063_v21  ;;  %v2455_v59 = vmul.f32 %v9296_v61, %v2412_v63  ;;  %v9390_v8 = vsel %vm481_vm0, %v9335_v10, %v2710_v5 }
 0x372   : > { %v2860_v1 = vsel %vm592_vm1, %v2808_v29, %v11445_v12  ;;  %v2861_v60 = vsel %vm592_vm1, %v9345_v52, %v2808_v29  ;;  %v2495_v58 = vadd.f32 %v9301_v26, %v2452_v18  ;;  %v6755_v44 = vpop.f32.mrb[24].mxu0  ;;  %v11447_v18 = vrot.slane %v9342_v35, 7  ;;  %11449 = vst [vmem:[#allocation2_spill] sm:$0xff] %v9390_v8 }
 0x373   : > { %v9373_v17 = vpack.c.bf16 %v2860_v1, %v2861_v60  ;;  %v2315_v49 = vadd.f32 %v6755_v44, %v9199_v41  ;;  %v2306_v34 = vpop.f32.mrb[25].mxu0  ;;  %v9377_v24 = vmax.f32 %v2497_v23, 0.0  ;;  %v2453_v12 = vmul.f32 %v9296_v61, %v2410_v30 }
 0x374   : > { %v2307_v29 = vadd.f32 %v2306_v34, %v9195_v48  ;;  %v6756_v52 = vpop.f32.mrb[26].mxu0  ;;  %v9385_v21 = vsel %vm481_vm0, %v2711_v28, %v11447_v18  ;;  %v9392_v41 = vmax.f32 %v2495_v58, 0.0  ;;  %v2498_v51 = vadd.f32 %v9301_v26, %v2455_v59 }
 0x375   : > { %11446 = vst [vmem:[#allocation17_spill] sm:$0xff] %v9373_v17  ;;  %11448 = vst [vmem:[#allocation46_spill] sm:$0xff] %v9385_v21  ;;  %v2415_v23 = vadd.f32 %v2315_v49, %v9072_v9  ;;  %v2309_v63 = vpop.f32.mrb[27].mxu0  ;;  %v2713_v48 = vrot.slane %v9327_v15, 7  ;;  %v2714_v34 = vrot.slane %v9347_v38, 7  ;;  %v2496_v1 = vadd.f32 %v9301_v26, %v2453_v12 }
 0x376   : > { %v2413_v60 = vadd.f32 %v2307_v29, %v9075_v0  ;;  %v2318_v58 = vadd.f32 %v6756_v52, %v9201_v14  ;;  %v2310_v44 = vadd.f32 %v2309_v63, %v9197_v13  ;;  %v9405_v9 = vmax.f32 %v2498_v51, 0.0 }
 0x377   : > { %v2458_v5 = vmul.f32 %v9296_v61, %v2415_v23  ;;  %v9409_v18 = vpack.c.bf16 %v9385_v21, %v2766_v22  ;;  %v2715_v0 = vrot.slane %v9392_v41, 7  ;;  %v9415_v14 = vmax.f32 %v2496_v1, 0.0 }
 0x378   : > { %v2456_v49 = vmul.f32 %v9296_v61, %v2413_v60  ;;  %v2416_v23 = vadd.f32 %v2318_v58, %v9078_v19  ;;  %v2414_v52 = vadd.f32 %v2310_v44, %v9081_v46  ;;  %v9422_v22 = vsel %vm481_vm0, %v9333_v43, %v2711_v28 }
 0x379   : > { %v2501_v29 = vadd.f32 %v9301_v26, %v2458_v5  ;;  %11450 = vst [vmem:[#allocation5_spill] sm:$0xff] %v9422_v22  ;;  %v2718_v1 = vrot.slane %v9405_v9, 7  ;;  %v9434_v28 = vpack.c.bf16 %v9347_v38, %v9327_v15  ;;  %v2716_v30 = vrot.slane %v9415_v14, 7 }
 0x37a   : > { %v2499_v13 = vadd.f32 %v9301_v26, %v2456_v49  ;;  %v6759_v51 = vpop.f32.mrb[28].mxu0  ;;  %v2459_v60 = vmul.f32 %v9296_v61, %v2416_v23  ;;  %v2457_v46 = vmul.f32 %v9296_v61, %v2414_v52 }
 0x37b   : > { %v2331_v5 = vadd.f32 %v6759_v51, %v9216_v20  ;;  %v2322_v12 = vpop.f32.mrb[29].mxu0  ;;  %v9437_v23 = vmax.f32 %v2501_v29, 0.0 }
 0x37c   : > { %v2323_v58 = vadd.f32 %v2322_v12, %v9203_v2  ;;  %v6760_v44 = vpop.f32.mrb[30].mxu0  ;;  %v2502_v20 = vadd.f32 %v9301_v26, %v2459_v60  ;;  %v9442_v63 = vmax.f32 %v2499_v13, 0.0  ;;  %v2500_v2 = vadd.f32 %v9301_v26, %v2457_v46 }
 0x37d   : > { %v2419_v51 = vadd.f32 %v2331_v5, %v9090_v6  ;;  %v2325_v19 = vpop.f32.mrb[31].mxu0  ;;  %v2334_v29 = vadd.f32 %v6760_v44, %v9221_v50  ;;  %v2763_v13 = vsel %vm481_vm0, %v2713_v48, %v2714_v34  ;;  %v11451_v5 = vrot.slane %v9342_v35, 7 }
 0x37e   : > { %v2417_v12 = vadd.f32 %v2323_v58, %v9093_v57  ;;  %v2326_v49 = vadd.f32 %v2325_v19, %v9205_v32  ;;  %v9450_v60 = vmax.f32 %v2502_v20, 0.0  ;;  %v2719_v58 = vrot.slane %v9442_v63, 7 }
 0x37f   : > { %v2462_v59 = vmul.f32 %v9296_v61, %v2419_v51  ;;  %v2764_v57 = vsel %vm481_vm0, %v11451_v5, %v2713_v48  ;;  %v2420_v19 = vadd.f32 %v2334_v29, %v9096_v31  ;;  %v9466_v44 = vmax.f32 %v2500_v2, 0.0 }
 0x380   : > { %v2460_v6 = vmul.f32 %v9296_v61, %v2417_v12  ;;  %v2418_v51 = vadd.f32 %v2326_v49, %v9099_v55  ;;  %v9473_v52 = vpack.c.bf16 %v2763_v13, %v2764_v57  ;;  %v11257_v31 = vrot.slane %v9450_v60, 7 }
 0x381   : > { %v2505_v32 = vadd.f32 %v9301_v26, %v2462_v59  ;;  %v2463_v48 = vmul.f32 %v9296_v61, %v2420_v19  ;;  %v9480_v55 = vpack.c.bf16 %v9415_v14, %v9392_v41  ;;  %v2720_v19 = vrot.slane %v9466_v44, 7 }
 0x382   : > { %v2503_v20 = vadd.f32 %v9301_v26, %v2460_v6  ;;  %v6763_v35 = vpop.f32.mrb[32].mxu0  ;;  %v2461_v59 = vmul.f32 %v9296_v61, %v2418_v51 }
 0x383   : > { %v2347_v5 = vadd.f32 %v6763_v35, %v9248_v56  ;;  %v2338_v50 = vpop.f32.mrb[33].mxu0  ;;  %v9483_v6 = vmax.f32 %v2505_v32, 0.0  ;;  %v2506_v56 = vadd.f32 %v9301_v26, %v2463_v48 }
 0x384   : > { %v2339_v2 = vadd.f32 %v2338_v50, %v9232_v37  ;;  %v6764_v29 = vpop.f32.mrb[34].mxu0  ;;  %v9488_v35 = vmax.f32 %v2503_v20, 0.0  ;;  %v2504_v37 = vadd.f32 %v9301_v26, %v2461_v59  ;;  %v2761_v20 = vsel %vm481_vm0, %v2715_v0, %v2716_v30 }
 0x385   : > { %v2423_v13 = vadd.f32 %v2347_v5, %v9108_v54  ;;  %v2341_v57 = vpop.f32.mrb[35].mxu0  ;;  %v2350_v32 = vadd.f32 %v6764_v29, %v9253_v33  ;;  %v9496_v48 = vmax.f32 %v2506_v56, 0.0 }
 0x386   : > { %v2421_v50 = vadd.f32 %v2339_v2, %v9111_v62  ;;  %v2342_v49 = vadd.f32 %v2341_v57, %v9237_v39  ;;  %v2762_v62 = vsel %vm481_vm0, %v2714_v34, %v2715_v0  ;;  %v9516_v29 = vmax.f32 %v2504_v37, 0.0 }
 0x387   : > { %v2466_v12 = vmul.f32 %v9296_v61, %v2423_v13  ;;  %v2424_v59 = vadd.f32 %v2350_v32, %v9114_v25  ;;  %v9523_v51 = vpack.c.bf16 %v2761_v20, %v2762_v62 }
 0x388   : > { %v2464_v54 = vmul.f32 %v9296_v61, %v2421_v50  ;;  %v2422_v13 = vadd.f32 %v2342_v49, %v9117_v45  ;;  %v9530_v45 = vpack.c.bf16 %v9405_v9, %v9377_v24  ;;  %v9658_v21 = vpack.c.bf16 %v9516_v29, %v9488_v35 }
 0x389   : > { %v2509_v5 = vadd.f32 %v9301_v26, %v2466_v12  ;;  %v2467_v34 = vmul.f32 %v9296_v61, %v2424_v59  ;;  %v11460_v59 = vld [vmem:[#allocation25_spill] sm:$0xff] }
 0x38a   : > { %v2507_v56 = vadd.f32 %v9301_v26, %v2464_v54  ;;  %v6767_v57 = vpop.f32.mrb[36].mxu0  ;;  %v2465_v12 = vmul.f32 %v9296_v61, %v2422_v13  ;;  %11468 = vst [vmem:[#allocation11_spill] sm:$0xff] %v9658_v21 }
 0x38b   : > { %v2363_v0 = vadd.f32 %v6767_v57, %v9277_v4  ;;  %v2354_v33 = vpop.f32.mrb[37].mxu0  ;;  %v9533_v54 = vmax.f32 %v2509_v5, 0.0  ;;  %v2510_v4 = vadd.f32 %v9301_v26, %v2467_v34 }
 0x38c   : > { %v2355_v37 = vadd.f32 %v2354_v33, %v9267_v47  ;;  %v6768_v32 = vpop.f32.mrb[38].mxu0  ;;  %v9538_v57 = vmax.f32 %v2507_v56, 0.0  ;;  %v2508_v47 = vadd.f32 %v9301_v26, %v2465_v12  ;;  %v11452_v56 = vrot.slane %v9377_v24, 7 }
 0x38d   : > { %v2427_v20 = vadd.f32 %v2363_v0, %v9126_v27  ;;  %v2357_v62 = vpop.f32.mrb[39].mxu0  ;;  %v2366_v5 = vadd.f32 %v6768_v32, %v9279_v7  ;;  %v9546_v34 = vmax.f32 %v2510_v4, 0.0 }
 0x38e   : > { %v2425_v33 = vadd.f32 %v2355_v37, %v9129_v53  ;;  %v2358_v49 = vadd.f32 %v2357_v62, %v9269_v3  ;;  %v2759_v0 = vsel %vm481_vm0, %v11452_v56, %v2718_v1  ;;  %v11453_v53 = vmov %v11452_v56 }
 0x38f   : > { %v2470_v50 = vmul.f32 %v9296_v61, %v2427_v20  ;;  %v2760_v7 = vsel %vm481_vm0, %v2716_v30, %v11453_v53  ;;  %v2428_v32 = vadd.f32 %v2366_v5, %v9133_v42  ;;  %v9566_v20 = vmax.f32 %v2508_v47, 0.0  ;;  %v11455_v53 = vld [vmem:[#allocation27_spill] sm:$0xff] }
 0x390   : > { %v2468_v27 = vmul.f32 %v9296_v61, %v2425_v33  ;;  %v11454_v33 = vld [vmem:[#allocation7_spill] sm:$0xff]  ;;  %v9573_v25 = vpack.c.bf16 %v2759_v0, %v2760_v7 }
 0x391   : > { %v2513_v37 = vadd.f32 %v9301_v26, %v2470_v50  ;;  %v2426_v56 = vadd.f32 %v2358_v49, %v11454_v33  ;;  %v2471_v30 = vmul.f32 %v9296_v61, %v2428_v32  ;;  %v11456_v47 = vld [vmem:[#allocation23_spill] sm:$0xff]  ;;  %v9580_v49 = vpack.c.bf16 %v9466_v44, %v9442_v63 }
 0x392   : > { %v2511_v62 = vadd.f32 %v9301_v26, %v2468_v27  ;;  %v6771_v13 = vpop.f32.mrb[40].mxu0  ;;  %v11457_v32 = vld [vmem:[#allocation47_spill] sm:$0xff]  ;;  %v11459_v27 = vld [vmem:[#allocation29_spill] sm:$0xff] }
 0x393   : > { %v2379_v3 = vadd.f32 %v6771_v13, %v11455_v53  ;;  %v2370_v12 = vpop.f32.mrb[41].mxu0  ;;  %v2469_v50 = vmul.f32 %v9296_v61, %v2426_v56  ;;  %v9583_v33 = vmax.f32 %v2513_v37, 0.0  ;;  %v2514_v13 = vadd.f32 %v9301_v26, %v2471_v30  ;;  %v11458_v56 = vld [vmem:[#allocation14_spill] sm:$0xff] }
 0x394   : > { %v2371_v5 = vadd.f32 %v2370_v12, %v11456_v47  ;;  %v6772_v4 = vpop.f32.mrb[42].mxu0  ;;  %v9588_v39 = vmax.f32 %v2511_v62, 0.0  ;;  %v2757_v62 = vsel %vm481_vm0, %v2719_v58, %v2720_v19 }
 0x395   : > { %v2431_v0 = vadd.f32 %v2379_v3, %v11457_v32  ;;  %v2373_v7 = vpop.f32.mrb[43].mxu0  ;;  %v2512_v12 = vadd.f32 %v9301_v26, %v2469_v50  ;;  %v2382_v37 = vadd.f32 %v6772_v4, %v11459_v27  ;;  %v9596_v30 = vmax.f32 %v2514_v13, 0.0  ;;  %v11461_v27 = vld [vmem:[#allocation13_spill] sm:$0xff] }
 0x396   : > { %v2429_v47 = vadd.f32 %v2371_v5, %v11458_v56  ;;  %v2374_v46 = vadd.f32 %v2373_v7, %v11460_v59  ;;  %v2758_v4 = vsel %vm481_vm0, %v2718_v1, %v2719_v58  ;;  %v2731_v32 = vrot.slane %v9588_v39, 7  ;;  %v11462_v56 = vld [vmem:[#allocation3_spill] sm:$0xff] }
 0x397   : > { %v2474_v2 = vmul.f32 %v9296_v61, %v2431_v0  ;;  %v2432_v13 = vadd.f32 %v2382_v37, %v11461_v27  ;;  %v9616_v0 = vmax.f32 %v2512_v12, 0.0  ;;  %v9622_v59 = vpack.c.bf16 %v2757_v62, %v2758_v4  ;;  %v11463_v27 = vld [vmem:[#allocation31_spill] sm:$0xff] }
 0x398   : > { %v2472_v3 = vmul.f32 %v9296_v61, %v2429_v47  ;;  %v2430_v47 = vadd.f32 %v2374_v46, %v11462_v56  ;;  %v2734_v37 = vrot.slane %v9596_v30, 7  ;;  %v11464_v46 = vrot.slane %v9437_v23, 7 }
 0x399   : > { %v2517_v5 = vadd.f32 %v9301_v26, %v2474_v2  ;;  %v2475_v1 = vmul.f32 %v9296_v61, %v2432_v13  ;;  %v9626_v2 = vpack.c.bf16 %v9450_v60, %v9437_v23  ;;  %v9746_v21 = vpack.c.bf16 %v9616_v0, %v9588_v39 }
 0x39a   : > { %v2515_v7 = vadd.f32 %v9301_v26, %v2472_v3  ;;  %v6775_v42 = vpop.f32.mrb[44].mxu0  ;;  %v2473_v12 = vmul.f32 %v9296_v61, %v2430_v47  ;;  %v11465_v53 = vmov %v11464_v46  ;;  %v2732_v47 = vrot.slane %v9616_v0, 7 }
 0x39b   : > { %v2386_v58 = vpop.f32.mrb[45].mxu0  ;;  %v2755_v42 = vsel %vm481_vm0, %v11464_v46, %v11257_v31  ;;  %v9638_v4 = vmax.f32 %v2517_v5, 0.0  ;;  %v2518_v13 = vadd.f32 %v9301_v26, %v2475_v1  ;;  %v11466_v46 = vld [vmem:[#allocation4_spill] sm:$0xff]  ;;  %v11467_v31 = vld [vmem:[#allocation33_spill] sm:$0xff]  ;;  %11493 = vst [vmem:[#allocation14_spill] sm:$0xff] %v9746_v21 }
 0x39c   : > { %v2387_v3 = vadd.f32 %v2386_v58, %v11463_v27  ;;  %v6776_v50 = vpop.f32.mrb[46].mxu0  ;;  %v9648_v58 = vmax.f32 %v2515_v7, 0.0  ;;  %v2516_v27 = vadd.f32 %v9301_v26, %v2473_v12  ;;  %v11470_v7 = vrot.slane %v9488_v35, 7 }
 0x39d   : > { %v2389_v56 = vpop.f32.mrb[47].mxu0  ;;  %v2756_v50 = vsel %vm481_vm0, %v2720_v19, %v11465_v53  ;;  %v2554_v43 = vmax.f32 %v2518_v13, 0.0  ;;  %v11469_v53 = vrot.slane %v9516_v29, 7  ;;  %v11476_v13 = vrot.slane %v9496_v48, 7 }
 0x39e   : > { %v2433_v62 = vadd.f32 %v2387_v3, %v11466_v46  ;;  %v2390_v1 = vadd.f32 %v2389_v56, %v11467_v31  ;;  %v9654_v22 = vpack.c.bf16 %v2755_v42, %v2756_v50  ;;  %v11471_v3 = vmov %v11470_v7  ;;  %v11473_v50 = vld [vmem:[#allocation19_spill] sm:$0xff] }
 0x39f   : > { %v2753_v12 = vsel %vm481_vm0, %v11470_v7, %v11469_v53  ;;  %v11472_v31 = vrot.slane %v9450_v60, 7  ;;  %v2737_v56 = vrot.slane %v9638_v4, 7  ;;  %v2735_v5 = vrot.slane %v9648_v58, 7 }
 0x3a0   : > { %v2476_v19 = vmul.f32 %v9296_v61, %v2433_v62  ;;  %v2434_v62 = vadd.f32 %v2390_v1, %v11473_v50  ;;  %v9679_v17 = vmax.f32 %v2516_v27, 0.0  ;;  %v9684_v7 = vpack.c.bf16 %v9496_v48, %v9483_v6 }
 0x3a1   : > { %v2754_v42 = vsel %vm481_vm0, %v11472_v31, %v11471_v3  ;;  %v11477_v1 = vrot.slane %v9483_v6, 7  ;;  %v9700_v50 = vrot.slane %v2554_v43, 7 }
 0x3a2   : > { %v9676_v46 = vpack.c.bf16 %v2753_v12, %v2754_v42  ;;  %v2519_v53 = vadd.f32 %v9301_v26, %v2476_v19  ;;  %11475 = vst [vmem:[#allocation15_spill] sm:$0xff] %v9684_v7  ;;  %v2477_v31 = vmul.f32 %v9296_v61, %v2434_v62  ;;  %v11479_v42 = vrot.slane %v9516_v29, 7 }
 0x3a3   : > { %v2751_v12 = vsel %vm481_vm0, %v11477_v1, %v11476_v13  ;;  %v11478_v27 = vmov %v11477_v1  ;;  %11480 = vst [vmem:[#allocation6_spill] sm:$0xff] %v9700_v50  ;;  %v9708_v61 = vpack.c.bf16 %v9566_v20, %v9538_v57  ;;  %v11483_v13 = vrot.slane %v9566_v20, 7 }
 0x3a4   : > { %11474 = vst [vmem:[#allocation16_spill] sm:$0xff] %v9676_v46  ;;  %v2752_v19 = vsel %vm481_vm0, %v11479_v42, %v11478_v27  ;;  %v9702_v7 = vmax.f32 %v2519_v53, 0.0  ;;  %v2520_v62 = vadd.f32 %v9301_v26, %v2477_v31  ;;  %v11484_v1 = vrot.slane %v9538_v57, 7 }
 0x3a5   : > { %v9704_v3 = vpack.c.bf16 %v2751_v12, %v2752_v19  ;;  %11482 = vst [vmem:[#allocation27_spill] sm:$0xff] %v9708_v61  ;;  %v11486_v53 = vrot.slane %v9496_v48, 7  ;;  %v9725_v42 = vpack.c.bf16 %v9546_v34, %v9533_v54  ;;  %v9727_v19 = vrot.slane %v2554_v43, 1 }
 0x3a6   : > { %v2749_v46 = vsel %vm481_vm0, %v11484_v1, %v11483_v13  ;;  %v11485_v27 = vmov %v11484_v1  ;;  %v2736_v26 = vrot.slane %v9679_v17, 7  ;;  %v11489_v61 = vrot.slane %v9546_v34, 7 }
 0x3a7   : > { %11481 = vst [vmem:[#allocation7_spill] sm:$0xff] %v9704_v3  ;;  %v2750_v12 = vsel %vm481_vm0, %v11486_v53, %v11485_v27  ;;  %11487 = vst [vmem:[#allocation23_spill] sm:$0xff] %v9725_v42  ;;  %v11490_v13 = vrot.slane %v9533_v54, 7  ;;  %v2556_v3 = vmax.f32 %v2520_v62, 0.0  ;;  %v11492_v53 = vrot.slane %v9566_v20, 7 }
 0x3a8   : > { %v9730_v31 = vpack.c.bf16 %v2749_v46, %v2750_v12  ;;  %v2745_v46 = vsel %vm481_vm0, %v2731_v32, %v2732_v47  ;;  %v9758_v62 = vpack.c.bf16 %v9596_v30, %v9583_v33 }
 0x3a9   : > { %v2747_v1 = vsel %vm481_vm0, %v11490_v13, %v11489_v61  ;;  %v11491_v27 = vmov %v11490_v13  ;;  %v11497_v13 = vrot.slane %v9583_v33, 7  ;;  %v9765_v21 = vrot.slane %v2556_v3, 7 }
 0x3aa   : > { %11488 = vst [vmem:[#allocation47_spill] sm:$0xff] %v9730_v31  ;;  %v2748_v42 = vsel %vm481_vm0, %v11492_v53, %v11491_v27  ;;  %v11495_v31 = vmov %v11489_v61  ;;  %11496 = vst [vmem:[#allocation25_spill] sm:$0xff] %v9758_v62  ;;  %v2995_v53 = vrot.slane %v9702_v7, 7  ;;  %v9777_v62 = vpack.c.bf16 %v9679_v17, %v9648_v58 }
 0x3ab   : > { %v9750_v12 = vpack.c.bf16 %v2747_v1, %v2748_v42  ;;  %v2746_v61 = vsel %vm481_vm0, %v11495_v31, %v2731_v32  ;;  %v2743_v27 = vsel %vm481_vm0, %v11497_v13, %v2734_v37  ;;  %11498 = vst [vmem:[#allocation13_spill] sm:$0xff] %v9765_v21  ;;  %v11499_v1 = vmov %v11497_v13 }
 0x3ac   : > { %v9767_v42 = vpack.c.bf16 %v2745_v46, %v2746_v61  ;;  %v2744_v32 = vsel %vm481_vm0, %v2732_v47, %v11499_v1  ;;  %v2741_v13 = vsel %vm481_vm0, %v2735_v5, %v2736_v26  ;;  %v2999_v46 = vsel %vm481_vm0, %v9765_v21, %v9335_v10 }
 0x3ad   : > { %11494 = vst [vmem:[#allocation29_spill] sm:$0xff] %v9750_v12  ;;  %v9773_v31 = vpack.c.bf16 %v2743_v27, %v2744_v32  ;;  %v2742_v12 = vsel %vm481_vm0, %v2734_v37, %v2735_v5  ;;  %v9790_v47 = vpack.c.bf16 %v2554_v43, %v9638_v4  ;;  %v2739_v27 = vsel %vm481_vm0, %v2737_v56, %v9700_v50  ;;  %v7283_v37 = vld [vmem:[%s11174_s4 + $0x148] sm:$0xff]  }
 0x3ae   : > { %v9787_v61 = vpack.c.bf16 %v2741_v13, %v2742_v12  ;;  %v5713_v1 = vpack.c.bf16 %v9390_v8, %v2999_v46  ;;  %v2740_v5 = vsel %vm481_vm0, %v2736_v26, %v2737_v56  ;;  %v9802_v32 = vpack.c.bf16 %v2556_v3, %v9702_v7 }
 0x3af   : > { %v2997_v43 = vsel %vm481_vm0, %v2995_v53, %v9765_v21  ;;  %v2832_v12 = vrot.slane %v9679_v17, 1  ;;  %v9808_v13 = vpack.c.bf16 %v2739_v27, %v2740_v5  ;;  %v2998_v46 = vsel %vm481_vm0, %v9700_v50, %v2995_v53 }
 0x3b0   : > { %11500 = vst [vmem:[#allocation3_spill] sm:$0xff] %v9802_v32  ;;  %v11501_v8 = vrot.slane %v9392_v41, 1  ;;  %v11502_v10 = vrot.slane %v9347_v38, 1  ;;  %v3003_v26 = vrot.slane %v9702_v7, 1  ;;  %5714 = vmatmul.mubr.msk.bf16.vlgmr.msra.gmra.mrb[4].mxu1 %vm7720_vm5, %v5713_v1  ;;  %v9822_v21 = vpack.c.bf16 %v2997_v43, %v2998_v46  ;;  %v11509_v7 = vld [vmem:[#allocation21_spill] sm:$0xff] }
 0x3b1   : > { %v11506_v27 = vrot.slane %v9327_v15, 1  ;;  %v11507_v5 = vrot.slane %v9377_v24, 1  ;;  %v11508_v50 = vrot.slane %v9415_v14, 1  ;;  %3249 = vmatprep.mubr.bf16.mxu1 %v9358_v40  ;;  %6778 = vmatpush3.bf16.msra.mxu1 %v11509_v7  ;;  %v11511_v15 = vrot.slane %v9392_v41, 1 }
 0x3b2   : > { %v2858_v56 = vsel %vm592_vm1, %v11502_v10, %v11501_v8  ;;  %11504 = vst [vmem:[#allocation31_spill] sm:$0xff] %v9822_v21  ;;  %v11505_v17 = vmov %v11502_v10  ;;  %v3004_v8 = vrot.slane %v2556_v3, 1  ;;  %v11512_v46 = vrot.slane %v9442_v63, 1  ;;  %6779 = vmatprep.subr.bf16.mxu1 %v7283_v37 }
 0x3b3   : > { %v2859_v53 = vsel %vm592_vm1, %v11506_v27, %v11505_v17  ;;  %v2856_v10 = vsel %vm592_vm1, %v11508_v50, %v11507_v5  ;;  %v11510_v38 = vmov %v11508_v50  ;;  %v11513_v17 = vrot.slane %v9405_v9, 1  ;;  %v7284_v50 = vld [vmem:[%s11174_s4 + $0x150] sm:$0xff]  }
 0x3b4   : > { %v9838_v1 = vpack.c.bf16 %v2858_v56, %v2859_v53  ;;  %v2857_v43 = vsel %vm592_vm1, %v11511_v15, %v11510_v38  ;;  %v11515_v41 = vmov %v11507_v5  ;;  %v11516_v53 = vrot.slane %v9437_v23, 1 }
 0x3b5   : > { %v2854_v3 = vsel %vm592_vm1, %v11513_v17, %v11512_v46  ;;  %v9855_v56 = vpack.c.bf16 %v2856_v10, %v2857_v43  ;;  %v11514_v14 = vmov %v11513_v17  ;;  %v11517_v5 = vrot.slane %v9466_v44, 1  ;;  %6780 = vmatpush3.bf16.msra.mxu1 %v7283_v37 }
 0x3b6   : > { %v2855_v27 = vsel %vm592_vm1, %v11515_v41, %v11514_v14  ;;  %v11519_v15 = vmov %v11512_v46  ;;  %v11520_v43 = vrot.slane %v9488_v35, 1  ;;  %v11521_v46 = vrot.slane %v9450_v60, 1  ;;  %6781 = vmatprep.subr.bf16.mxu1 %v7284_v50 }
 0x3b7   : > { %v2852_v7 = vsel %vm592_vm1, %v11517_v5, %v11516_v53  ;;  %v11518_v38 = vmov %v11517_v5  ;;  %v9875_v9 = vpack.c.bf16 %v2854_v3, %v2855_v27  ;;  %v11523_v44 = vmov %v11516_v53 }
 0x3b8   : > { %v2853_v10 = vsel %vm592_vm1, %v11519_v15, %v11518_v38  ;;  %v2850_v17 = vsel %vm592_vm1, %v11521_v46, %v11520_v43  ;;  %v11522_v14 = vmov %v11521_v46  ;;  %v11524_v3 = vrot.slane %v9483_v6, 1  ;;  %v7285_v6 = vld [vmem:[%s11174_s4 + $0x158] sm:$0xff]   ;;  %5717 = vmatmul.mubr.msk.bf16.gmra.mrb[8].mxu1 %vm7720_vm5, %v9409_v18 }
 0x3b9   : > { %v9877_v24 = vpack.c.bf16 %v2852_v7, %v2853_v10  ;;  %v2851_v63 = vsel %vm592_vm1, %v11523_v44, %v11522_v14  ;;  %v11525_v27 = vrot.slane %v9516_v29, 1  ;;  %v11527_v7 = vmov %v11520_v43  ;;  %3257 = vmatprep.mubr.bf16.mxu1 %v9434_v28  ;;  %6782 = vmatpush3.bf16.msra.mxu1 %v7284_v50 }
 0x3ba   : > { %v9891_v41 = vpack.c.bf16 %v2850_v17, %v2851_v63  ;;  %v11528_v23 = vrot.slane %v9538_v57, 1  ;;  %v11529_v38 = vrot.slane %v9496_v48, 1  ;;  %v11531_v46 = vmov %v11524_v3  ;;  %6783 = vmatprep.subr.bf16.mxu1 %v7285_v6 }
 0x3bb   : > { %v2848_v53 = vsel %vm592_vm1, %v11525_v27, %v11524_v3  ;;  %v11526_v5 = vmov %v11525_v27  ;;  %v11532_v29 = vrot.slane %v9533_v54, 1  ;;  %v11533_v17 = vrot.slane %v9566_v20, 1 }
 0x3bc   : > { %v2849_v60 = vsel %vm592_vm1, %v11527_v7, %v11526_v5  ;;  %v2846_v15 = vsel %vm592_vm1, %v11529_v38, %v11528_v23  ;;  %v11530_v43 = vmov %v11529_v38  ;;  %v11535_v37 = vmov %v11528_v23 }
 0x3bd   : > { %v9911_v10 = vpack.c.bf16 %v2848_v53, %v2849_v60  ;;  %v2847_v35 = vsel %vm592_vm1, %v11531_v46, %v11530_v43  ;;  %v2844_v14 = vsel %vm592_vm1, %v11533_v17, %v11532_v29  ;;  %v11534_v44 = vmov %v11533_v17  ;;  %6784 = vmatpush3.bf16.msra.mxu1 %v7285_v6  ;;  %v7289_v6 = vld [vmem:[%s11174_s4 + $0x178] sm:$0xff]  }
 0x3be   : > { %v2845_v63 = vsel %vm592_vm1, %v11535_v37, %v11534_v44  ;;  %v9934_v48 = vpack.c.bf16 %v2846_v15, %v2847_v35  ;;  %v11536_v27 = vrot.slane %v9588_v39, 1  ;;  %v11537_v53 = vrot.slane %v9546_v34, 1 }
 0x3bf   : > { %v9936_v3 = vpack.c.bf16 %v2844_v14, %v2845_v63  ;;  %v11539_v5 = vmov %v11532_v29  ;;  %v11540_v23 = vrot.slane %v9583_v33, 1  ;;  %v11541_v38 = vrot.slane %v9616_v0, 1 }
 0x3c0   : > { %v2842_v20 = vsel %vm592_vm1, %v11537_v53, %v11536_v27  ;;  %v11538_v57 = vmov %v11537_v53  ;;  %v11543_v46 = vmov %v11536_v27  ;;  %v11544_v54 = vrot.slane %v9648_v58, 1  ;;  %v7286_v58 = vld [vmem:[%s11174_s4 + $0x160] sm:$0xff]   ;;  %5720 = vmatmul.mubr.msk.bf16.gmra.mrb[12].mxu1 %vm7720_vm5, %v9473_v52 }
 0x3c1   : > { %v2843_v7 = vsel %vm592_vm1, %v11539_v5, %v11538_v57  ;;  %v2840_v15 = vsel %vm592_vm1, %v11541_v38, %v11540_v23  ;;  %v11542_v43 = vmov %v11541_v38  ;;  %v11545_v35 = vrot.slane %v9596_v30, 1  ;;  %6785 = vmatprep.subr.bf16.mxu1 %v7286_v58  ;;  %3265 = vmatprep.mubr.bf16.mxu1 %v9480_v55  ;;  %v7296_v38 = vld [vmem:[%s11174_s4 + $0x58] sm:$0xff]  }
 0x3c2   : > { %v9950_v60 = vpack.c.bf16 %v2842_v20, %v2843_v7  ;;  %v2841_v34 = vsel %vm592_vm1, %v11543_v46, %v11542_v43  ;;  %v11547_v39 = vmov %v11540_v23  ;;  %v11548_v44 = vrot.slane %v9638_v4, 1  ;;  %6786 = vmatpush3.bf16.msra.mxu1 %v7286_v58  ;;  %v11554_v43 = vld [vmem:[#allocation11_spill] sm:$0xff]  ;;  %v11555_v46 = vld [vmem:[#allocation16_spill] sm:$0xff] }
 0x3c3   : > { %v2838_v29 = vsel %vm592_vm1, %v11545_v35, %v11544_v54  ;;  %v9973_v17 = vpack.c.bf16 %v2840_v15, %v2841_v34  ;;  %v11546_v0 = vmov %v11545_v35  ;;  %v11549_v63 = vmov %v11544_v54  ;;  %v7290_v15 = vld [vmem:[%s11174_s4 + $0x40] sm:$0xff]   ;;  %v11556_v34 = vld [vmem:[#allocation15_spill] sm:$0xff] }
 0x3c4   : > { %v2839_v14 = vsel %vm592_vm1, %v11547_v39, %v11546_v0  ;;  %v2836_v37 = vsel %vm592_vm1, %v2832_v12, %v11548_v44  ;;  %v2837_v27 = vsel %vm592_vm1, %v11549_v63, %v2832_v12  ;;  %v11550_v33 = vmov %v11548_v44  ;;  %v11557_v54 = vld [vmem:[#allocation7_spill] sm:$0xff]  ;;  %v11561_v39 = vld [vmem:[#allocation29_spill] sm:$0xff] }
 0x3c5   : > { %v9990_v53 = vpack.c.bf16 %v2838_v29, %v2839_v14  ;;  %v9992_v30 = vpack.c.bf16 %v2836_v37, %v2837_v27  ;;  %v9999_v20 = vsel %vm592_vm1, %v11550_v33, %v9727_v19  ;;  %v3006_v12 = vsel %vm592_vm1, %v9727_v19, %v3003_v26  ;;  %v11558_v35 = vld [vmem:[#allocation27_spill] sm:$0xff]  ;;  %v11562_v14 = vld [vmem:[#allocation14_spill] sm:$0xff]  ;;  %v11563_v44 = vld [vmem:[#allocation25_spill] sm:$0xff] }
 0x3c6   : > { %v10009_v50 = vsel %vm592_vm1, %v3003_v26, %v3004_v8  ;;  %v10014_v4 = vsel %vm592_vm1, %v3004_v8, %v9371_v36  ;;  %v10020_v57 = vsel %vm592_vm1, %v9727_v19, %v9339_v16  ;;  %v10023_v5 = vpack.c.bf16 %v3006_v12, %v9999_v20  ;;  %v7287_v19 = vld [vmem:[%s11174_s4 + $0x168] sm:$0xff]   ;;  %v11566_v33 = vld [vmem:[#allocation45_spill] sm:$0xff] }
 0x3c7   : > { %11551 = vst [vmem:[#allocation4_spill] sm:$0xff] %v10009_v50  ;;  %v5806_v7 = vpack.c.bf16 %v10014_v4, %v10009_v50  ;;  %v10032_v23 = vsel %vm592_vm1, %v3004_v8, %v9339_v16  ;;  %6787 = vmatprep.subr.bf16.mxu1 %v7287_v19  ;;  %v7288_v8 = vld [vmem:[%s11174_s4 + $0x170] sm:$0xff]   ;;  %v11559_v29 = vld [vmem:[#allocation47_spill] sm:$0xff]  ;;  %v11571_v4 = vld [vmem:[#allocation37_spill] sm:$0xff] }
 0x3c8   : > { %11552 = vst [vmem:[#allocation33_spill] sm:$0xff] %v10023_v5  ;;  %11553 = vst [vmem:[#allocation19_spill] sm:$0xff] %v10032_v23  ;;  %6788 = vmatpush3.bf16.msra.mxu1 %v7287_v19  ;;  %v11560_v0 = vld [vmem:[#allocation23_spill] sm:$0xff] }
 0x3c9   : > { %6789 = vmatprep.subr.bf16.mxu1 %v7288_v8  ;;  %5723 = vmatmul.mubr.msk.bf16.gmra.mrb[16].mxu1 %vm7720_vm5, %v9523_v51  ;;  %v11564_v37 = vld [vmem:[#allocation3_spill] sm:$0xff] }
 0x3ca   : > { %3273 = vmatprep.mubr.bf16.mxu1 %v9530_v45  ;;  %v11565_v63 = vld [vmem:[#allocation35_spill] sm:$0xff] }
 0x3cb   : > { %v2806_v27 = vrot.slane %v11565_v63, 1  ;;  %v11568_v63 = vld [vmem:[#allocation17_spill] sm:$0xff]  ;;  %v7307_v26 = vld [vmem:[%s11174_s4 + $0x88] sm:$0xff]  }
 0x3cc   : > { %6790 = vmatpush3.bf16.msra.mxu1 %v7288_v8 }
 0x3cd   : > { %6791 = vmatprep.subr.bf16.mxu1 %v7289_v6  ;;  %v2862_v58 = vsel %vm592_vm1, %v2806_v27, %v11566_v33  ;;  %v2863_v12 = vsel %vm592_vm1, %v9371_v36, %v2806_v27  ;;  %v7293_v27 = vld [vmem:[%s11174_s4 + $0x8] sm:$0xff]  }
 0x3ce   : > { %v10107_v19 = vpack.c.bf16 %v2862_v58, %v2863_v12  ;;  %v7294_v58 = vld [vmem:[%s11174_s4 + $0x50] sm:$0xff]  }
 0x3cf   : > { %v7295_v12 = vld [vmem:[%s11174_s4 + $0x10] sm:$0xff]  }
 0x3d0   : > { %6792 = vmatpush3.bf16.msra.mxu1 %v7289_v6  ;;  %v7291_v6 = vld [vmem:[%s11174_s4] sm:$0xff]  }
 0x3d1   : > { %6325 = vmatprep.subr.bf16.mxu1 %v7290_v15  ;;  %5726 = vmatmul.mubr.msk.bf16.gmra.mrb[20].mxu1 %vm7720_vm5, %v9573_v25  ;;  %v7292_v15 = vld [vmem:[%s11174_s4 + $0x48] sm:$0xff]  }
 0x3d2   : > { %3281 = vmatprep.mubr.bf16.mxu1 %v9580_v49 }
 0x3d9   : > { %5729 = vmatmul.mubr.msk.bf16.gmra.mrb[24].mxu1 %vm7720_vm5, %v9622_v59 }
 0x3da   : > { %3289 = vmatprep.mubr.bf16.mxu1 %v9626_v2 }
 0x3e1   : > { %5732 = vmatmul.mubr.msk.bf16.gmra.mrb[28].mxu1 %vm7720_vm5, %v9654_v22 }
 0x3e2   : > { %3297 = vmatprep.mubr.bf16.mxu1 %v11554_v43 }
 0x3e9   : > { %5735 = vmatmul.mubr.msk.bf16.gmra.mrb[32].mxu1 %vm7720_vm5, %v11555_v46 }
 0x3ea   : > { %3305 = vmatprep.mubr.bf16.mxu1 %v11556_v34 }
 0x3f1   : > { %5738 = vmatmul.mubr.msk.bf16.gmra.mrb[36].mxu1 %vm7720_vm5, %v11557_v54 }
 0x3f2   : > { %3313 = vmatprep.mubr.bf16.mxu1 %v11558_v35 }
 0x3f9   : > { %5741 = vmatmul.mubr.msk.bf16.gmra.mrb[40].mxu1 %vm7720_vm5, %v11559_v29 }
 0x3fa   : > { %3321 = vmatprep.mubr.bf16.mxu1 %v11560_v0 }
 0x401   : > { %5744 = vmatmul.mubr.msk.bf16.gmra.mrb[44].mxu1 %vm7720_vm5, %v11561_v39 }
 0x402   : > { %3329 = vmatprep.mubr.bf16.mxu1 %v11562_v14 }
 0x409   : > { %5747 = vmatmul.mubr.msk.bf16.gmra.mrb[48].mxu1 %vm7720_vm5, %v9767_v42 }
 0x40a   : > { %3337 = vmatprep.mubr.bf16.mxu1 %v11563_v44 }
 0x411   : > { %5750 = vmatmul.mubr.msk.bf16.gmra.mrb[52].mxu1 %vm7720_vm5, %v9773_v31 }
 0x412   : > { %3345 = vmatprep.mubr.bf16.mxu1 %v9777_v62 }
 0x419   : > { %5753 = vmatmul.mubr.msk.bf16.gmra.mrb[56].mxu1 %vm7720_vm5, %v9787_v61 }
 0x41a   : > { %3353 = vmatprep.mubr.bf16.mxu1 %v9790_v47 }
 0x421   : > { %5756 = vmatmul.mubr.msk.bf16.gmra.mrb[60].mxu1 %vm7720_vm5, %v9808_v13 }
 0x422   : > { %3361 = vmatprep.mubr.bf16.mxu1 %v11564_v37 }
 0x429   : > { %5759 = vmatmul.mubr.msk.bf16.gmra.mrb[64].mxu1 %vm7720_vm5, %v9822_v21 }
 0x42a   : > { %6793 = vmatprep.mubr.msk.bf16.mxu1 %vm7731_vm6, %v10107_v19 }
 0x431   : > { %6794 = vmatmul.mubr.msk.bf16.vlgmr.msra.gmra.mrb[68].mxu1 %vm7731_vm6, %v11568_v63 }
 0x432   : > { %6797 = vmatprep.mubr.msk.bf16.mxu1 %vm7731_vm6, %v9838_v1  ;;  %6326 = vmatpush3.bf16.msra.mxu1 %v7291_v6  ;;  %v7297_v6 = vld [vmem:[%s11174_s4 + $0x18] sm:$0xff]  }
 0x433   : > { %6327 = vmatprep.subr.bf16.mxu1 %v7292_v15  ;;  %v7298_v15 = vld [vmem:[%s11174_s4 + $0x60] sm:$0xff]  }
 0x436   : > { %6328 = vmatpush3.bf16.msra.mxu1 %v7293_v27  ;;  %v7299_v27 = vld [vmem:[%s11174_s4 + $0x20] sm:$0xff]  }
 0x437   : > { %6329 = vmatprep.subr.bf16.mxu1 %v7294_v58  ;;  %v7300_v58 = vld [vmem:[%s11174_s4 + $0x68] sm:$0xff]  }
 0x439   : > { %6798 = vmatmul.mubr.msk.bf16.gmra.mrb[72].mxu1 %vm7731_vm6, %v9855_v56 }
 0x43a   : > { %6801 = vmatprep.mubr.msk.bf16.mxu1 %vm7731_vm6, %v9875_v9  ;;  %6330 = vmatpush3.bf16.msra.mxu1 %v7295_v12  ;;  %v7302_v12 = vld [vmem:[%s11174_s4 + $0x70] sm:$0xff]  }
 0x43b   : > { %6331 = vmatprep.subr.bf16.mxu1 %v7296_v38  ;;  %v7301_v38 = vld [vmem:[%s11174_s4 + $0x28] sm:$0xff]  }
 0x43e   : > { %6332 = vmatpush3.bf16.msra.mxu1 %v7297_v6  ;;  %v7303_v6 = vld [vmem:[%s11174_s4 + $0x30] sm:$0xff]  }
 0x43f   : > { %6333 = vmatprep.subr.bf16.mxu1 %v7298_v15  ;;  %v7304_v15 = vld [vmem:[%s11174_s4 + $0x78] sm:$0xff]  }
 0x441   : > { %6802 = vmatmul.mubr.msk.bf16.gmra.mrb[76].mxu1 %vm7731_vm6, %v9877_v24 }
 0x442   : > { %6805 = vmatprep.mubr.msk.bf16.mxu1 %vm7731_vm6, %v9891_v41  ;;  %6334 = vmatpush3.bf16.msra.mxu1 %v7299_v27  ;;  %v7305_v27 = vld [vmem:[%s11174_s4 + $0x38] sm:$0xff]  }
 0x443   : > { %6335 = vmatprep.subr.bf16.mxu1 %v7300_v58  ;;  %v7306_v58 = vld [vmem:[%s11174_s4 + $0x80] sm:$0xff]  }
 0x446   : > { %6336 = vmatpush3.bf16.msra.mxu1 %v7301_v38  ;;  %v11278_v38 = vmov 0.0|0.0  }
 0x447   : > { %6337 = vmatprep.subr.bf16.mxu1 %v7302_v12  ;;  %v11569_v12 = vld [vmem:[#allocation39_spill] sm:$0xff] }
 0x449   : > { %6806 = vmatmul.mubr.msk.bf16.gmra.mrb[80].mxu1 %vm7731_vm6, %v9911_v10 }
 0x44a   : > { %6809 = vmatprep.mubr.msk.bf16.mxu1 %vm7731_vm6, %v9934_v48  ;;  %6338 = vmatpush3.bf16.msra.mxu1 %v7303_v6  ;;  %v11570_v6 = vld [vmem:[#allocation6_spill] sm:$0xff] }
 0x44b   : > { %6339 = vmatprep.subr.bf16.mxu1 %v7304_v15  ;;  %v2770_v15 = vsel %vm481_vm0, %v11570_v6, %v11569_v12 }
 0x44e   : > { %6340 = vmatpush3.bf16.msra.mxu1 %v7305_v27  ;;  %v5833_v27 = vpack.c.bf16 %v11569_v12, %v2770_v15  ;;  %v11573_v15 = vld [vmem:[#allocation2_spill] sm:$0xff] }
 0x44f   : > { %6825 = vmatprep.subr.bf16.mxu1 %v7306_v58 }
 0x451   : > { %6810 = vmatmul.mubr.msk.bf16.gmra.mrb[84].mxu1 %vm7731_vm6, %v9936_v3 }
 0x452   : > { %6813 = vmatprep.mubr.msk.bf16.mxu1 %vm7731_vm6, %v9950_v60 }
 0x459   : > { %6814 = vmatmul.mubr.msk.bf16.gmra.mrb[88].mxu1 %vm7731_vm6, %v9973_v17 }
 0x45a   : > { %6817 = vmatprep.mubr.msk.bf16.mxu1 %vm7731_vm6, %v9990_v53 }
 0x461   : > { %6818 = vmatmul.mubr.msk.bf16.gmra.mrb[92].mxu1 %vm7731_vm6, %v9992_v30 }
 0x462   : > { %6821 = vmatprep.mubr.msk.bf16.mxu1 %vm7731_vm6, %v10023_v5 }
 0x469   : > { %6822 = vmatmul.mubr.msk.bf16.gmra.mrb[96].mxu1 %vm7731_vm6, %v5806_v7  ;;  %v7308_v7 = vld [vmem:[%s11174_s4 + $0x90] sm:$0xff]  }
 0x46a   : > { %3707 = vmatprep.mubr.bf16.mxu1 %v11278_v38  ;;  %v11572_v38 = vld [vmem:[#allocation41_spill] sm:$0xff] }
 0x46b   : > { %v2768_v6 = vsel %vm481_vm0, %v11569_v12, %v11572_v38 }
 0x46c   : > { %v5836_v33 = vpack.c.bf16 %v11573_v15, %v2768_v6 }
 0x471   : > { %5834 = vmatmul.mubr.msk.bf16.vlgmr.msra.gmra.mrb[100].mxu1 %vm7720_vm5, %v5833_v27  ;;  %v7309_v27 = vld [vmem:[%s11174_s4 + $0x98] sm:$0xff]  }
 0x472   : > { %3715 = vmatprep.mubr.bf16.mxu1 %v11571_v4  ;;  %6826 = vmatpush3.bf16.msra.mxu1 %v7306_v58  ;;  %v7310_v58 = vld [vmem:[%s11174_s4 + $0xa0] sm:$0xff]  }
 0x473   : > { %6827 = vmatprep.subr.bf16.mxu1 %v7307_v26 }
 0x476   : > { %6828 = vmatpush3.bf16.msra.mxu1 %v7307_v26  ;;  %v7311_v26 = vld [vmem:[%s11174_s4 + $0xa8] sm:$0xff]  }
 0x477   : > { %6829 = vmatprep.subr.bf16.mxu1 %v7308_v7 }
 0x479   : > { %5837 = vmatmul.mubr.msk.bf16.gmra.mrb[104].mxu1 %vm7720_vm5, %v5836_v33  ;;  %v7312_v33 = vld [vmem:[%s11174_s4 + $0xb0] sm:$0xff]  }
 0x47a   : > { %3723 = vmatprep.mubr.bf16.mxu1 %v9358_v40  ;;  %6830 = vmatpush3.bf16.msra.mxu1 %v7308_v7 }
 0x47b   : > { %6831 = vmatprep.subr.bf16.mxu1 %v7309_v27 }
 0x47e   : > { %6832 = vmatpush3.bf16.msra.mxu1 %v7309_v27 }
 0x47f   : > { %6833 = vmatprep.subr.bf16.mxu1 %v7310_v58 }
 0x481   : > { %5840 = vmatmul.mubr.msk.bf16.gmra.mrb[108].mxu1 %vm7720_vm5, %v9409_v18  ;;  %v7313_v18 = vld [vmem:[%s11174_s4 + $0xb8] sm:$0xff]  }
 0x482   : > { %3731 = vmatprep.mubr.bf16.mxu1 %v9434_v28  ;;  %6834 = vmatpush3.bf16.msra.mxu1 %v7310_v58  ;;  %v7314_v58 = vld [vmem:[%s11174_s4 + $0x1c0] sm:$0xff]  }
 0x483   : > { %6835 = vmatprep.subr.bf16.mxu1 %v7311_v26  ;;  %v6205_v38 = vpop.f32.mrb[4].mxu1 }
 0x484   : > { %v6206_v4 = vpop.f32.mrb[5].mxu1 }
 0x485   : > { %v10249_v7 = vadd.f32 %v6206_v4, %v6205_v38  ;;  %v6208_v6 = vpop.f32.mrb[6].mxu1 }
 0x486   : > { %6836 = vmatpush3.bf16.msra.mxu1 %v7311_v26  ;;  %v6209_v15 = vpop.f32.mrb[7].mxu1 }
 0x487   : > { %6837 = vmatprep.subr.bf16.mxu1 %v7312_v33  ;;  %v10254_v27 = vadd.f32 %v6209_v15, %v6208_v6 }
 0x489   : > { %5843 = vmatmul.mubr.msk.bf16.gmra.mrb[112].mxu1 %vm7720_vm5, %v9473_v52 }
 0x48a   : > { %3739 = vmatprep.mubr.bf16.mxu1 %v9480_v55  ;;  %6838 = vmatpush3.bf16.msra.mxu1 %v7312_v33 }
 0x48b   : > { %6839 = vmatprep.subr.bf16.mxu1 %v7313_v18  ;;  %v6211_v26 = vpop.f32.mrb[8].mxu1 }
 0x48c   : > { %v6212_v38 = vpop.f32.mrb[9].mxu1 }
 0x48d   : > { %v10263_v4 = vadd.f32 %v6212_v38, %v6211_v26  ;;  %v6214_v50 = vpop.f32.mrb[10].mxu1 }
 0x48e   : > { %6840 = vmatpush3.bf16.msra.mxu1 %v7313_v18  ;;  %v6215_v6 = vpop.f32.mrb[11].mxu1 }
 0x48f   : > { %6461 = vmatprep.subr.bf16.mxu1 %v7314_v58  ;;  %v10265_v15 = vadd.f32 %v6215_v6, %v6214_v50 }
 0x491   : > { %5846 = vmatmul.mubr.msk.bf16.gmra.mrb[116].mxu1 %vm7720_vm5, %v9523_v51 }
 0x492   : > { %3747 = vmatprep.mubr.bf16.mxu1 %v9530_v45 }
 0x493   : > { %v6217_v33 = vpop.f32.mrb[12].mxu1 }
 0x494   : > { %v6218_v23 = vpop.f32.mrb[13].mxu1 }
 0x495   : > { %v10271_v5 = vadd.f32 %v6218_v23, %v6217_v33  ;;  %v6220_v12 = vpop.f32.mrb[14].mxu1 }
 0x496   : > { %v6221_v21 = vpop.f32.mrb[15].mxu1 }
 0x497   : > { %11574 = vst [vmem:[#allocation8_spill] sm:$0xff] %v10271_v5  ;;  %v10273_v26 = vadd.f32 %v6221_v21, %v6220_v12 }
 0x499   : > { %11575 = vst [vmem:[#allocation21_spill] sm:$0xff] %v10273_v26  ;;  %5849 = vmatmul.mubr.msk.bf16.gmra.mrb[120].mxu1 %vm7720_vm5, %v9573_v25 }
 0x49a   : > { %3755 = vmatprep.mubr.bf16.mxu1 %v9580_v49 }
 0x49c   : > { %v6223_v50 = vpop.f32.mrb[16].mxu1 }
 0x49d   : > { %v6224_v18 = vpop.f32.mrb[17].mxu1 }
 0x49e   : > { %v10279_v58 = vadd.f32 %v6224_v18, %v6223_v50  ;;  %v6226_v38 = vpop.f32.mrb[18].mxu1 }
 0x49f   : > { %v6227_v6 = vpop.f32.mrb[19].mxu1 }
 0x4a0   : > { %11576 = vst [vmem:[#allocation11_spill] sm:$0xff] %v10279_v58  ;;  %v10281_v37 = vadd.f32 %v6227_v6, %v6226_v38 }
 0x4a1   : > { %5852 = vmatmul.mubr.msk.bf16.gmra.mrb[124].mxu1 %vm7720_vm5, %v9622_v59 }
 0x4a2   : > { %11577 = vst [vmem:[#allocation16_spill] sm:$0xff] %v10281_v37  ;;  %3763 = vmatprep.mubr.bf16.mxu1 %v9626_v2 }
 0x4a4   : > { %v6229_v21 = vpop.f32.mrb[20].mxu1 }
 0x4a5   : > { %v6230_v23 = vpop.f32.mrb[21].mxu1 }
 0x4a6   : > { %v10287_v12 = vadd.f32 %v6230_v23, %v6229_v21  ;;  %v6232_v33 = vpop.f32.mrb[22].mxu1 }
 0x4a7   : > { %v6233_v26 = vpop.f32.mrb[23].mxu1 }
 0x4a8   : > { %11578 = vst [vmem:[#allocation15_spill] sm:$0xff] %v10287_v12  ;;  %v10289_v5 = vadd.f32 %v6233_v26, %v6232_v33 }
 0x4a9   : > { %5855 = vmatmul.mubr.msk.bf16.gmra.mrb[128].mxu1 %vm7720_vm5, %v9654_v22 }
 0x4aa   : > { %11579 = vst [vmem:[#allocation7_spill] sm:$0xff] %v10289_v5  ;;  %3771 = vmatprep.mubr.bf16.mxu1 %v11554_v43 }
 0x4ac   : > { %v6235_v50 = vpop.f32.mrb[24].mxu1 }
 0x4ad   : > { %v6236_v18 = vpop.f32.mrb[25].mxu1 }
 0x4ae   : > { %v10295_v38 = vadd.f32 %v6236_v18, %v6235_v50  ;;  %v6238_v6 = vpop.f32.mrb[26].mxu1 }
 0x4af   : > { %v6239_v37 = vpop.f32.mrb[27].mxu1 }
 0x4b0   : > { %11580 = vst [vmem:[#allocation27_spill] sm:$0xff] %v10295_v38  ;;  %v10297_v58 = vadd.f32 %v6239_v37, %v6238_v6 }
 0x4b1   : > { %5858 = vmatmul.mubr.msk.bf16.gmra.mrb[132].mxu1 %vm7720_vm5, %v11555_v46 }
 0x4b2   : > { %11581 = vst [vmem:[#allocation47_spill] sm:$0xff] %v10297_v58  ;;  %3779 = vmatprep.mubr.bf16.mxu1 %v11556_v34 }
 0x4b4   : > { %v6241_v26 = vpop.f32.mrb[28].mxu1 }
 0x4b5   : > { %v6242_v21 = vpop.f32.mrb[29].mxu1 }
 0x4b6   : > { %v10303_v23 = vadd.f32 %v6242_v21, %v6241_v26  ;;  %v6244_v33 = vpop.f32.mrb[30].mxu1 }
 0x4b7   : > { %v6245_v5 = vpop.f32.mrb[31].mxu1 }
 0x4b8   : > { %11582 = vst [vmem:[#allocation23_spill] sm:$0xff] %v10303_v23  ;;  %v10305_v12 = vadd.f32 %v6245_v5, %v6244_v33 }
 0x4b9   : > { %5861 = vmatmul.mubr.msk.bf16.gmra.mrb[136].mxu1 %vm7720_vm5, %v11557_v54 }
 0x4ba   : > { %11583 = vst [vmem:[#allocation29_spill] sm:$0xff] %v10305_v12  ;;  %3787 = vmatprep.mubr.bf16.mxu1 %v11558_v35 }
 0x4bc   : > { %v6247_v37 = vpop.f32.mrb[32].mxu1 }
 0x4bd   : > { %v6248_v50 = vpop.f32.mrb[33].mxu1 }
 0x4be   : > { %v10311_v18 = vadd.f32 %v6248_v50, %v6247_v37  ;;  %v6250_v6 = vpop.f32.mrb[34].mxu1 }
 0x4bf   : > { %v6251_v58 = vpop.f32.mrb[35].mxu1 }
 0x4c0   : > { %11584 = vst [vmem:[#allocation14_spill] sm:$0xff] %v10311_v18  ;;  %v10313_v38 = vadd.f32 %v6251_v58, %v6250_v6 }
 0x4c1   : > { %5864 = vmatmul.mubr.msk.bf16.gmra.mrb[140].mxu1 %vm7720_vm5, %v11559_v29 }
 0x4c2   : > { %11585 = vst [vmem:[#allocation25_spill] sm:$0xff] %v10313_v38  ;;  %3795 = vmatprep.mubr.bf16.mxu1 %v11560_v0 }
 0x4c4   : > { %v6253_v5 = vpop.f32.mrb[36].mxu1 }
 0x4c5   : > { %v6254_v26 = vpop.f32.mrb[37].mxu1 }
 0x4c6   : > { %v10319_v21 = vadd.f32 %v6254_v26, %v6253_v5  ;;  %v6256_v33 = vpop.f32.mrb[38].mxu1 }
 0x4c7   : > { %v6257_v12 = vpop.f32.mrb[39].mxu1 }
 0x4c8   : > { %11586 = vst [vmem:[#allocation35_spill] sm:$0xff] %v10319_v21  ;;  %v10321_v23 = vadd.f32 %v6257_v12, %v6256_v33 }
 0x4c9   : > { %5867 = vmatmul.mubr.msk.bf16.gmra.mrb[144].mxu1 %vm7720_vm5, %v11561_v39 }
 0x4ca   : > { %11587 = vst [vmem:[#allocation9_spill] sm:$0xff] %v10321_v23  ;;  %3803 = vmatprep.mubr.bf16.mxu1 %v11562_v14 }
 0x4cc   : > { %v6259_v58 = vpop.f32.mrb[40].mxu1 }
 0x4cd   : > { %v6260_v37 = vpop.f32.mrb[41].mxu1 }
 0x4ce   : > { %v10327_v50 = vadd.f32 %v6260_v37, %v6259_v58  ;;  %v6262_v6 = vpop.f32.mrb[42].mxu1 }
 0x4cf   : > { %v6263_v38 = vpop.f32.mrb[43].mxu1 }
 0x4d0   : > { %11588 = vst [vmem:[#allocation17_spill] sm:$0xff] %v10327_v50  ;;  %v10329_v18 = vadd.f32 %v6263_v38, %v6262_v6 }
 0x4d1   : > { %5870 = vmatmul.mubr.msk.bf16.gmra.mrb[148].mxu1 %vm7720_vm5, %v9767_v42 }
 0x4d2   : > { %11589 = vst [vmem:[#allocation6_spill] sm:$0xff] %v10329_v18  ;;  %3811 = vmatprep.mubr.bf16.mxu1 %v11563_v44 }
 0x4d4   : > { %v6265_v12 = vpop.f32.mrb[44].mxu1 }
 0x4d5   : > { %v6266_v5 = vpop.f32.mrb[45].mxu1 }
 0x4d6   : > { %v10335_v26 = vadd.f32 %v6266_v5, %v6265_v12  ;;  %v6268_v33 = vpop.f32.mrb[46].mxu1  ;;  %v2864_v5 = vsel %vm592_vm1, %v9339_v16, %v9371_v36 }
 0x4d7   : > { %v6269_v23 = vpop.f32.mrb[47].mxu1 }
 0x4d8   : > { %v10337_v21 = vadd.f32 %v6269_v23, %v6268_v33 }
 0x4d9   : > { %5873 = vmatmul.mubr.msk.bf16.gmra.mrb[152].mxu1 %vm7720_vm5, %v9773_v31 }
 0x4da   : > { %11590 = vst [vmem:[#allocation37_spill] sm:$0xff] %v10337_v21  ;;  %3819 = vmatprep.mubr.bf16.mxu1 %v9777_v62 }
 0x4dc   : > { %v6271_v38 = vpop.f32.mrb[48].mxu1 }
 0x4dd   : > { %v6272_v58 = vpop.f32.mrb[49].mxu1 }
 0x4de   : > { %v10343_v37 = vadd.f32 %v6272_v58, %v6271_v38  ;;  %v6274_v6 = vpop.f32.mrb[50].mxu1 }
 0x4df   : > { %v6275_v18 = vpop.f32.mrb[51].mxu1 }
 0x4e0   : > { %11591 = vst [vmem:[#allocation41_spill] sm:$0xff] %v10343_v37  ;;  %v10345_v50 = vadd.f32 %v6275_v18, %v6274_v6  ;;  %v5881_v18 = vpack.c.bf16 %v2864_v5, %v9339_v16  ;;  %v7316_v5 = vld [vmem:[%s11174_s4 + $0x1c8] sm:$0xff]  }
 0x4e1   : > { %5876 = vmatmul.mubr.msk.bf16.gmra.mrb[156].mxu1 %vm7720_vm5, %v9787_v61 }
 0x4e2   : > { %11592 = vst [vmem:[#allocation2_spill] sm:$0xff] %v10345_v50  ;;  %3827 = vmatprep.mubr.bf16.mxu1 %v9790_v47 }
 0x4e4   : > { %v6277_v23 = vpop.f32.mrb[52].mxu1 }
 0x4e5   : > { %v6278_v12 = vpop.f32.mrb[53].mxu1 }
 0x4e6   : > { %v10355_v33 = vadd.f32 %v6278_v12, %v6277_v23  ;;  %v6280_v38 = vpop.f32.mrb[54].mxu1  ;;  %v7315_v23 = vld [vmem:[%s11174_s4 + $0x180] sm:$0xff]  }
 0x4e7   : > { %v6281_v58 = vpop.f32.mrb[55].mxu1 }
 0x4e8   : > { %v10357_v37 = vadd.f32 %v6281_v58, %v6280_v38  ;;  %v7318_v58 = vld [vmem:[%s11174_s4 + $0x1d0] sm:$0xff]  }
 0x4e9   : > { %5879 = vmatmul.mubr.msk.bf16.gmra.mrb[160].mxu1 %vm7720_vm5, %v9808_v13 }
 0x4ea   : > { %6841 = vmatprep.mubr.msk.bf16.mxu1 %vm7731_vm6, %v5881_v18 }
 0x4ec   : > { %v6283_v6 = vpop.f32.mrb[56].mxu1 }
 0x4ed   : > { %v6284_v50 = vpop.f32.mrb[57].mxu1 }
 0x4ee   : > { %v10365_v21 = vadd.f32 %v6284_v50, %v6283_v6  ;;  %v6286_v36 = vpop.f32.mrb[58].mxu1  ;;  %v7317_v50 = vld [vmem:[%s11174_s4 + $0x188] sm:$0xff]  }
 0x4ef   : > { %v6287_v12 = vpop.f32.mrb[59].mxu1 }
 0x4f0   : > { %v10373_v38 = vadd.f32 %v6287_v12, %v6286_v36 }
 0x4f1   : > { %6842 = vmatmul.mubr.msk.bf16.vlgmr.msra.gmra.mrb[68].mxu1 %vm7731_vm6, %v10107_v19  ;;  %v7319_v19 = vld [vmem:[%s11174_s4 + $0x190] sm:$0xff]  }
 0x4f2   : > { %6845 = vmatprep.mubr.msk.bf16.mxu1 %vm7731_vm6, %v11568_v63  ;;  %6462 = vmatpush3.bf16.msra.mxu1 %v7315_v23 }
 0x4f3   : > { %6463 = vmatprep.subr.bf16.mxu1 %v7316_v5  ;;  %v7320_v5 = vld [vmem:[%s11174_s4 + $0x1d8] sm:$0xff]  }
 0x4f4   : > { %v6289_v18 = vpop.f32.mrb[60].mxu1 }
 0x4f5   : > { %v6290_v6 = vpop.f32.mrb[61].mxu1 }
 0x4f6   : > { %v10387_v36 = vadd.f32 %v6290_v6, %v6289_v18  ;;  %v6292_v12 = vpop.f32.mrb[62].mxu1  ;;  %6464 = vmatpush3.bf16.msra.mxu1 %v7317_v50  ;;  %v7321_v50 = vld [vmem:[%s11174_s4 + $0x198] sm:$0xff]  }
 0x4f7   : > { %v6293_v23 = vpop.f32.mrb[63].mxu1  ;;  %6465 = vmatprep.subr.bf16.mxu1 %v7318_v58  ;;  %v7322_v58 = vld [vmem:[%s11174_s4 + $0x1e0] sm:$0xff]  }
 0x4f8   : > { %11593 = vst [vmem:[#allocation48_spill] sm:$0xff] %v10387_v36  ;;  %v10395_v16 = vadd.f32 %v6293_v23, %v6292_v12 }
 0x4f9   : > { %6846 = vmatmul.mubr.msk.bf16.gmra.mrb[72].mxu1 %vm7731_vm6, %v9838_v1 }
 0x4fa   : > { %11594 = vst [vmem:[#allocation49_spill] sm:$0xff] %v10395_v16  ;;  %6849 = vmatprep.mubr.msk.bf16.mxu1 %vm7731_vm6, %v9855_v56  ;;  %6466 = vmatpush3.bf16.msra.mxu1 %v7319_v19  ;;  %v7323_v16 = vld [vmem:[%s11174_s4 + $0x1a0] sm:$0xff]  }
 0x4fb   : > { %6467 = vmatprep.subr.bf16.mxu1 %v7320_v5  ;;  %v7324_v5 = vld [vmem:[%s11174_s4 + $0x1e8] sm:$0xff]  }
 0x4fc   : > { %v6295_v18 = vpop.f32.mrb[64].mxu1 }
 0x4fd   : > { %v6296_v6 = vpop.f32.mrb[65].mxu1 }
 0x4fe   : > { %v10409_v12 = vadd.f32 %v6296_v6, %v6295_v18  ;;  %v6298_v23 = vpop.f32.mrb[66].mxu1  ;;  %6468 = vmatpush3.bf16.msra.mxu1 %v7321_v50  ;;  %v7325_v50 = vld [vmem:[%s11174_s4 + $0x1a8] sm:$0xff]   ;;  %v7327_v18 = vld [vmem:[%s11174_s4 + $0x1b0] sm:$0xff]   ;;  %v7328_v6 = vld [vmem:[%s11174_s4 + $0x1f8] sm:$0xff]  }
 0x4ff   : > { %v6299_v19 = vpop.f32.mrb[67].mxu1  ;;  %6469 = vmatprep.subr.bf16.mxu1 %v7322_v58  ;;  %v7326_v58 = vld [vmem:[%s11174_s4 + $0x1f0] sm:$0xff]  }
 0x500   : > { %v10417_v36 = vadd.f32 %v6299_v19, %v6298_v23  ;;  %v7330_v23 = vld [vmem:[%s11174_s4 + $0x200] sm:$0xff]   ;;  %v11595_v19 = vpack.c.bf16 %v10020_v57, %v9999_v20  ;;  %v7332_v20 = vld [vmem:[%s11174_s4 + $0x210] sm:$0xff]   ;;  %v7335_v57 = vld [vmem:[%s11174_s4 + $0x228] sm:$0xff]  }
 0x501   : > { %6850 = vmatmul.mubr.msk.bf16.gmra.mrb[76].mxu1 %vm7731_vm6, %v9875_v9 }
 0x502   : > { %6853 = vmatprep.mubr.msk.bf16.mxu1 %vm7731_vm6, %v9877_v24  ;;  %6470 = vmatpush3.bf16.msra.mxu1 %v7323_v16  ;;  %v7329_v16 = vld [vmem:[%s11174_s4 + $0x1b8] sm:$0xff]  }
 0x503   : > { %6471 = vmatprep.subr.bf16.mxu1 %v7324_v5  ;;  %v7331_v5 = vld [vmem:[%s11174_s4 + $0x208] sm:$0xff]  }
 0x506   : > { %6472 = vmatpush3.bf16.msra.mxu1 %v7325_v50  ;;  %v11596_v50 = vld [vmem:[#allocation46_spill] sm:$0xff] }
 0x507   : > { %6473 = vmatprep.subr.bf16.mxu1 %v7326_v58  ;;  %v11597_v58 = vld [vmem:[#allocation5_spill] sm:$0xff] }
 0x509   : > { %6854 = vmatmul.mubr.msk.bf16.gmra.mrb[80].mxu1 %vm7731_vm6, %v9891_v41 }
 0x50a   : > { %6857 = vmatprep.mubr.msk.bf16.mxu1 %vm7731_vm6, %v9911_v10  ;;  %6474 = vmatpush3.bf16.msra.mxu1 %v7327_v18  ;;  %v11598_v18 = vpack.c.bf16 %v11596_v50, %v11597_v58  ;;  %v10521_v58 = vld [vmem:[%s11177_s7] sm:$0xff]  }
 0x50b   : > { %6475 = vmatprep.subr.bf16.mxu1 %v7328_v6 }
 0x50e   : > { %6476 = vmatpush3.bf16.msra.mxu1 %v7329_v16 }
 0x50f   : > { %6873 = vmatprep.subr.bf16.mxu1 %v7330_v23 }
 0x511   : > { %6858 = vmatmul.mubr.msk.bf16.gmra.mrb[84].mxu1 %vm7731_vm6, %v9934_v48 }
 0x512   : > { %6861 = vmatprep.mubr.msk.bf16.mxu1 %vm7731_vm6, %v9936_v3 }
 0x519   : > { %6862 = vmatmul.mubr.msk.bf16.gmra.mrb[88].mxu1 %vm7731_vm6, %v9950_v60 }
 0x51a   : > { %6865 = vmatprep.mubr.msk.bf16.mxu1 %vm7731_vm6, %v9973_v17 }
 0x521   : > { %6866 = vmatmul.mubr.msk.bf16.gmra.mrb[92].mxu1 %vm7731_vm6, %v9990_v53 }
 0x522   : > { %6869 = vmatprep.mubr.msk.bf16.mxu1 %vm7731_vm6, %v9992_v30 }
 0x529   : > { %6870 = vmatmul.mubr.msk.bf16.gmra.mrb[96].mxu1 %vm7731_vm6, %v11595_v19 }
 0x52a   : > { %4243 = vmatprep.mubr.bf16.mxu1 %v9358_v40  ;;  %v7333_v40 = vld [vmem:[%s11174_s4 + $0x218] sm:$0xff]  }
 0x531   : > { %6002 = vmatmul.mubr.msk.bf16.vlgmr.msra.gmra.mrb[164].mxu1 %vm7720_vm5, %v11598_v18 }
 0x532   : > { %4251 = vmatprep.mubr.bf16.mxu1 %v9434_v28  ;;  %6874 = vmatpush3.bf16.msra.mxu1 %v7330_v23  ;;  %v7334_v28 = vld [vmem:[%s11174_s4 + $0x220] sm:$0xff]  }
 0x533   : > { %6875 = vmatprep.subr.bf16.mxu1 %v7331_v5 }
 0x536   : > { %6876 = vmatpush3.bf16.msra.mxu1 %v7331_v5  ;;  %v7337_v5 = vld [vmem:[%s11174_s4 + $0x238] sm:$0xff]  }
 0x537   : > { %6877 = vmatprep.subr.bf16.mxu1 %v7332_v20 }
 0x539   : > { %6005 = vmatmul.mubr.msk.bf16.gmra.mrb[168].mxu1 %vm7720_vm5, %v9473_v52  ;;  %v7336_v52 = vld [vmem:[%s11174_s4 + $0x230] sm:$0xff]  }
 0x53a   : > { %4259 = vmatprep.mubr.bf16.mxu1 %v9480_v55  ;;  %6878 = vmatpush3.bf16.msra.mxu1 %v7332_v20 }
 0x53b   : > { %6879 = vmatprep.subr.bf16.mxu1 %v7333_v40 }
 0x53e   : > { %6880 = vmatpush3.bf16.msra.mxu1 %v7333_v40 }
 0x53f   : > { %6881 = vmatprep.subr.bf16.mxu1 %v7334_v28 }
 0x541   : > { %6008 = vmatmul.mubr.msk.bf16.gmra.mrb[172].mxu1 %vm7720_vm5, %v9523_v51 }
 0x542   : > { %4267 = vmatprep.mubr.bf16.mxu1 %v9530_v45  ;;  %6882 = vmatpush3.bf16.msra.mxu1 %v7334_v28 }
 0x543   : > { %6883 = vmatprep.subr.bf16.mxu1 %v7335_v57 }
 0x544   : > { %v6341_v55 = vpop.f32.mrb[100].mxu1 }
 0x545   : > { %v6342_v6 = vpop.f32.mrb[101].mxu1 }
 0x546   : > { %v6343_v16 = vadd.f32 %v6342_v6, %v6341_v55  ;;  %v6344_v23 = vpop.f32.mrb[102].mxu1  ;;  %6884 = vmatpush3.bf16.msra.mxu1 %v7335_v57 }
 0x547   : > { %v6345_v19 = vpop.f32.mrb[103].mxu1  ;;  %6885 = vmatprep.subr.bf16.mxu1 %v7336_v52 }
 0x548   : > { %v10509_v51 = vadd.f32 %v6343_v16, %v10249_v7  ;;  %v6346_v45 = vadd.f32 %v6345_v19, %v6344_v23  ;;  %v11599_v23 = vld [vmem:[#allocation8_spill] sm:$0xff] }
 0x549   : > { %6011 = vmatmul.mubr.msk.bf16.gmra.mrb[176].mxu1 %vm7720_vm5, %v9573_v25 }
 0x54a   : > { %v10515_v50 = vadd.f32 %v6346_v45, %v10254_v27  ;;  %4275 = vmatprep.mubr.bf16.mxu1 %v9580_v49  ;;  %6886 = vmatpush3.bf16.msra.mxu1 %v7336_v52 }
 0x54b   : > { %6887 = vmatprep.subr.bf16.mxu1 %v7337_v5 }
 0x54c   : > { %v6347_v18 = vpop.f32.mrb[104].mxu1 }
 0x54d   : > { %v6348_v7 = vpop.f32.mrb[105].mxu1 }
 0x54e   : > { %v6349_v20 = vadd.f32 %v6348_v7, %v6347_v18  ;;  %v6350_v40 = vpop.f32.mrb[106].mxu1  ;;  %6888 = vmatpush3.bf16.msra.mxu1 %v7337_v5  ;;  %v11600_v5 = vld [vmem:[#allocation21_spill] sm:$0xff] }
 0x54f   : > { %v6351_v28 = vpop.f32.mrb[107].mxu1  ;;  %6921 = vmatprep.subr.bf16.mxu1 %v10521_v58 }
 0x550   : > { %v10525_v25 = vadd.f32 %v6349_v20, %v10263_v4  ;;  %v6352_v27 = vadd.f32 %v6351_v28, %v6350_v40  ;;  %v11601_v20 = vld [vmem:[#allocation11_spill] sm:$0xff] }
 0x551   : > { %6014 = vmatmul.mubr.msk.bf16.gmra.mrb[180].mxu1 %vm7720_vm5, %v9622_v59 }
 0x552   : > { %v10531_v49 = vadd.f32 %v6352_v27, %v10265_v15  ;;  %4283 = vmatprep.mubr.bf16.mxu1 %v9626_v2  ;;  %v11602_v27 = vld [vmem:[#allocation16_spill] sm:$0xff] }
 0x554   : > { %v6353_v57 = vpop.f32.mrb[108].mxu1 }
 0x555   : > { %v6354_v52 = vpop.f32.mrb[109].mxu1 }
 0x556   : > { %v6355_v55 = vadd.f32 %v6354_v52, %v6353_v57  ;;  %v6356_v6 = vpop.f32.mrb[110].mxu1 }
 0x557   : > { %v6357_v16 = vpop.f32.mrb[111].mxu1 }
 0x558   : > { %v10535_v19 = vadd.f32 %v6355_v55, %v11599_v23  ;;  %v6358_v4 = vadd.f32 %v6357_v16, %v6356_v6  ;;  %v11603_v16 = vld [vmem:[#allocation15_spill] sm:$0xff] }
 0x559   : > { %6017 = vmatmul.mubr.msk.bf16.gmra.mrb[184].mxu1 %vm7720_vm5, %v9654_v22 }
 0x55a   : > { %v10541_v59 = vadd.f32 %v6358_v4, %v11600_v5  ;;  %4291 = vmatprep.mubr.bf16.mxu1 %v11554_v43  ;;  %v11604_v5 = vld [vmem:[#allocation7_spill] sm:$0xff] }
 0x55c   : > { %v6359_v15 = vpop.f32.mrb[112].mxu1 }
 0x55d   : > { %v6360_v2 = vpop.f32.mrb[113].mxu1 }
 0x55e   : > { %v6361_v45 = vadd.f32 %v6360_v2, %v6359_v15  ;;  %v6362_v18 = vpop.f32.mrb[114].mxu1 }
 0x55f   : > { %v6363_v7 = vpop.f32.mrb[115].mxu1 }
 0x560   : > { %v10545_v40 = vadd.f32 %v6361_v45, %v11601_v20  ;;  %v6364_v28 = vadd.f32 %v6363_v7, %v6362_v18  ;;  %v11605_v7 = vld [vmem:[#allocation27_spill] sm:$0xff] }
 0x561   : > { %6020 = vmatmul.mubr.msk.bf16.gmra.mrb[188].mxu1 %vm7720_vm5, %v11555_v46 }
 0x562   : > { %v10551_v22 = vadd.f32 %v6364_v28, %v11602_v27  ;;  %4299 = vmatprep.mubr.bf16.mxu1 %v11556_v34  ;;  %v11606_v27 = vld [vmem:[#allocation47_spill] sm:$0xff] }
 0x564   : > { %v6365_v57 = vpop.f32.mrb[116].mxu1 }
 0x565   : > { %v6366_v43 = vpop.f32.mrb[117].mxu1 }
 0x566   : > { %v6367_v52 = vadd.f32 %v6366_v43, %v6365_v57  ;;  %v6368_v55 = vpop.f32.mrb[118].mxu1 }
 0x567   : > { %v6369_v6 = vpop.f32.mrb[119].mxu1 }
 0x568   : > { %v10555_v23 = vadd.f32 %v6367_v52, %v11603_v16  ;;  %v6370_v4 = vadd.f32 %v6369_v6, %v6368_v55  ;;  %v11607_v6 = vld [vmem:[#allocation23_spill] sm:$0xff] }
 0x569   : > { %6023 = vmatmul.mubr.msk.bf16.gmra.mrb[192].mxu1 %vm7720_vm5, %v11557_v54 }
 0x56a   : > { %v10561_v46 = vadd.f32 %v6370_v4, %v11604_v5  ;;  %4307 = vmatprep.mubr.bf16.mxu1 %v11558_v35  ;;  %v11608_v5 = vld [vmem:[#allocation29_spill] sm:$0xff] }
 0x56c   : > { %v6371_v15 = vpop.f32.mrb[120].mxu1 }
 0x56d   : > { %v6372_v34 = vpop.f32.mrb[121].mxu1 }
 0x56e   : > { %v6373_v2 = vadd.f32 %v6372_v34, %v6371_v15  ;;  %v6374_v45 = vpop.f32.mrb[122].mxu1 }
 0x56f   : > { %v6375_v18 = vpop.f32.mrb[123].mxu1 }
 0x570   : > { %v10565_v20 = vadd.f32 %v6373_v2, %v11605_v7  ;;  %v6376_v28 = vadd.f32 %v6375_v18, %v6374_v45  ;;  %v11609_v18 = vld [vmem:[#allocation14_spill] sm:$0xff] }
 0x571   : > { %6026 = vmatmul.mubr.msk.bf16.gmra.mrb[196].mxu1 %vm7720_vm5, %v11559_v29 }
 0x572   : > { %v10571_v54 = vadd.f32 %v6376_v28, %v11606_v27  ;;  %4315 = vmatprep.mubr.bf16.mxu1 %v11560_v0  ;;  %v11610_v27 = vld [vmem:[#allocation25_spill] sm:$0xff] }
 0x574   : > { %v6377_v57 = vpop.f32.mrb[124].mxu1 }
 0x575   : > { %v6378_v35 = vpop.f32.mrb[125].mxu1 }
 0x576   : > { %v6379_v43 = vadd.f32 %v6378_v35, %v6377_v57  ;;  %v6380_v52 = vpop.f32.mrb[126].mxu1 }
 0x577   : > { %v6381_v55 = vpop.f32.mrb[127].mxu1 }
 0x578   : > { %v10575_v16 = vadd.f32 %v6379_v43, %v11607_v6  ;;  %v6382_v4 = vadd.f32 %v6381_v55, %v6380_v52  ;;  %v11611_v55 = vld [vmem:[#allocation35_spill] sm:$0xff] }
 0x579   : > { %6029 = vmatmul.mubr.msk.bf16.gmra.mrb[200].mxu1 %vm7720_vm5, %v11561_v39 }
 0x57a   : > { %v10581_v29 = vadd.f32 %v6382_v4, %v11608_v5  ;;  %4323 = vmatprep.mubr.bf16.mxu1 %v11562_v14  ;;  %v11612_v5 = vld [vmem:[#allocation9_spill] sm:$0xff] }
 0x57c   : > { %v6383_v15 = vpop.f32.mrb[128].mxu1 }
 0x57d   : > { %v6384_v0 = vpop.f32.mrb[129].mxu1 }
 0x57e   : > { %v6385_v34 = vadd.f32 %v6384_v0, %v6383_v15  ;;  %v6386_v2 = vpop.f32.mrb[130].mxu1 }
 0x57f   : > { %v6387_v45 = vpop.f32.mrb[131].mxu1 }
 0x580   : > { %v10585_v7 = vadd.f32 %v6385_v34, %v11609_v18  ;;  %v6388_v28 = vadd.f32 %v6387_v45, %v6386_v2  ;;  %v11613_v45 = vld [vmem:[#allocation17_spill] sm:$0xff] }
 0x581   : > { %6032 = vmatmul.mubr.msk.bf16.gmra.mrb[204].mxu1 %vm7720_vm5, %v9767_v42 }
 0x582   : > { %v10591_v39 = vadd.f32 %v6388_v28, %v11610_v27  ;;  %4331 = vmatprep.mubr.bf16.mxu1 %v11563_v44  ;;  %v11614_v27 = vld [vmem:[#allocation6_spill] sm:$0xff] }
 0x584   : > { %v6389_v57 = vpop.f32.mrb[132].mxu1 }
 0x585   : > { %v6390_v14 = vpop.f32.mrb[133].mxu1 }
 0x586   : > { %v6391_v35 = vadd.f32 %v6390_v14, %v6389_v57  ;;  %v6392_v43 = vpop.f32.mrb[134].mxu1 }
 0x587   : > { %v6393_v52 = vpop.f32.mrb[135].mxu1 }
 0x588   : > { %v10595_v6 = vadd.f32 %v6391_v35, %v11611_v55  ;;  %v6394_v4 = vadd.f32 %v6393_v52, %v6392_v43 }
 0x589   : > { %6035 = vmatmul.mubr.msk.bf16.gmra.mrb[208].mxu1 %vm7720_vm5, %v9773_v31 }
 0x58a   : > { %v10601_v42 = vadd.f32 %v6394_v4, %v11612_v5  ;;  %4339 = vmatprep.mubr.bf16.mxu1 %v9777_v62  ;;  %v11615_v4 = vld [vmem:[#allocation37_spill] sm:$0xff]  ;;  %v11616_v5 = vld [vmem:[#allocation3_spill] sm:$0xff] }
 0x58c   : > { %v6395_v15 = vpop.f32.mrb[136].mxu1 }
 0x58d   : > { %v6396_v44 = vpop.f32.mrb[137].mxu1 }
 0x58e   : > { %v6397_v0 = vadd.f32 %v6396_v44, %v6395_v15  ;;  %v6398_v34 = vpop.f32.mrb[138].mxu1 }
 0x58f   : > { %v6399_v2 = vpop.f32.mrb[139].mxu1 }
 0x590   : > { %v10605_v18 = vadd.f32 %v6397_v0, %v11613_v45  ;;  %v6400_v28 = vadd.f32 %v6399_v2, %v6398_v34  ;;  %v11617_v2 = vld [vmem:[#allocation41_spill] sm:$0xff] }
 0x591   : > { %6038 = vmatmul.mubr.msk.bf16.gmra.mrb[212].mxu1 %vm7720_vm5, %v9787_v61 }
 0x592   : > { %v10611_v31 = vadd.f32 %v6400_v28, %v11614_v27  ;;  %4347 = vmatprep.mubr.bf16.mxu1 %v9790_v47  ;;  %v11618_v28 = vld [vmem:[#allocation31_spill] sm:$0xff]  ;;  %v11619_v27 = vld [vmem:[#allocation2_spill] sm:$0xff] }
 0x594   : > { %v6401_v57 = vpop.f32.mrb[140].mxu1 }
 0x595   : > { %v6402_v62 = vpop.f32.mrb[141].mxu1 }
 0x596   : > { %v6403_v14 = vadd.f32 %v6402_v62, %v6401_v57  ;;  %v6404_v35 = vpop.f32.mrb[142].mxu1  ;;  %v11620_v57 = vmov 0.0|0.0  }
 0x597   : > { %v6405_v43 = vpop.f32.mrb[143].mxu1 }
 0x598   : > { %v10615_v52 = vadd.f32 %v6403_v14, %v10335_v26  ;;  %v6406_v55 = vadd.f32 %v6405_v43, %v6404_v35  ;;  %v11621_v14 = vld [vmem:[#allocation39_spill] sm:$0xff]  ;;  %v11622_v35 = vld [vmem:[#allocation13_spill] sm:$0xff] }
 0x599   : > { %6041 = vmatmul.mubr.msk.bf16.gmra.mrb[216].mxu1 %vm7720_vm5, %v9808_v13  ;;  %v4000_v43 = vsel %vm481_vm0, %v11622_v35, %v11621_v14 }
 0x59a   : > { %v10621_v61 = vadd.f32 %v6406_v55, %v11615_v4  ;;  %4355 = vmatprep.mubr.bf16.mxu1 %v11616_v5 }
 0x59c   : > { %v6407_v15 = vpop.f32.mrb[144].mxu1 }
 0x59d   : > { %v6408_v47 = vpop.f32.mrb[145].mxu1 }
 0x59e   : > { %v6409_v44 = vadd.f32 %v6408_v47, %v6407_v15  ;;  %v6410_v0 = vpop.f32.mrb[146].mxu1  ;;  %v6046_v47 = vpack.c.bf16 %v11621_v14, %v4000_v43 }
 0x59f   : > { %v6411_v34 = vpop.f32.mrb[147].mxu1 }
 0x5a0   : > { %v10625_v45 = vadd.f32 %v6409_v44, %v11617_v2  ;;  %v6412_v26 = vadd.f32 %v6411_v34, %v6410_v0 }
 0x5a1   : > { %6044 = vmatmul.mubr.msk.bf16.gmra.mrb[220].mxu1 %vm7720_vm5, %v11618_v28 }
 0x5a2   : > { %v10631_v13 = vadd.f32 %v6412_v26, %v11619_v27  ;;  %4363 = vmatprep.mubr.bf16.mxu1 %v11620_v57 }
 0x5a4   : > { %v6413_v62 = vpop.f32.mrb[148].mxu1 }
 0x5a5   : > { %v6414_v55 = vpop.f32.mrb[149].mxu1 }
 0x5a6   : > { %v6415_v4 = vadd.f32 %v6414_v55, %v6413_v62  ;;  %v6416_v5 = vpop.f32.mrb[150].mxu1  ;;  %v11623_v55 = vld [vmem:[#allocation48_spill] sm:$0xff] }
 0x5a7   : > { %v6417_v15 = vpop.f32.mrb[151].mxu1 }
 0x5a8   : > { %v10640_v44 = vadd.f32 %v6415_v4, %v10355_v33  ;;  %v6418_v0 = vadd.f32 %v6417_v15, %v6416_v5  ;;  %v7339_v33 = vld [vmem:[%s11177_s7 + $0x8] sm:$0xff]   ;;  %v11624_v4 = vld [vmem:[#allocation49_spill] sm:$0xff]  ;;  %v7342_v15 = vld [vmem:[%s11177_s7 + $0x20] sm:$0xff]  }
 0x5a9   : > { %6047 = vmatmul.mubr.msk.bf16.gmra.mrb[224].mxu1 %vm7720_vm5, %v6046_v47 }
 0x5aa   : > { %v10645_v34 = vadd.f32 %v6418_v0, %v10357_v37  ;;  %6889 = vmatprep.mubr.msk.bf16.mxu1 %vm7731_vm6, %v11568_v63  ;;  %v7340_v63 = vld [vmem:[%s11177_s7 + $0x10] sm:$0xff]  }
 0x5ac   : > { %v6419_v2 = vpop.f32.mrb[152].mxu1 }
 0x5ad   : > { %v6420_v26 = vpop.f32.mrb[153].mxu1 }
 0x5ae   : > { %v6421_v28 = vadd.f32 %v6420_v26, %v6419_v2  ;;  %v6422_v27 = vpop.f32.mrb[154].mxu1 }
 0x5af   : > { %v6423_v57 = vpop.f32.mrb[155].mxu1 }
 0x5b0   : > { %v10654_v62 = vadd.f32 %v6421_v28, %v10365_v21  ;;  %v6424_v32 = vadd.f32 %v6423_v57, %v6422_v27 }
 0x5b1   : > { %6890 = vmatmul.mubr.msk.bf16.vlgmr.msra.gmra.mrb[68].mxu1 %vm7731_vm6, %v9838_v1 }
 0x5b2   : > { %v10660_v37 = vadd.f32 %v6424_v32, %v10373_v38  ;;  %6893 = vmatprep.mubr.msk.bf16.mxu1 %vm7731_vm6, %v9855_v56  ;;  %6922 = vmatpush3.bf16.msra.mxu1 %v10521_v58  ;;  %v7341_v38 = vld [vmem:[%s11177_s7 + $0x18] sm:$0xff]   ;;  %v11632_v32 = vld [vmem:[#allocation18_spill] sm:$0xff] }
 0x5b3   : > { %6923 = vmatprep.subr.bf16.mxu1 %v7339_v33 }
 0x5b4   : > { %v6425_v21 = vpop.f32.mrb[156].mxu1 }
 0x5b5   : > { %v6426_v14 = vpop.f32.mrb[157].mxu1 }
 0x5b6   : > { %v6427_v35 = vadd.f32 %v6426_v14, %v6425_v21  ;;  %v6428_v43 = vpop.f32.mrb[158].mxu1  ;;  %6924 = vmatpush3.bf16.msra.mxu1 %v7339_v33  ;;  %v7344_v33 = vld [vmem:[%s11177_s7 + $0x30] sm:$0xff]   ;;  %v11634_v21 = vld [vmem:[#allocation22_spill] sm:$0xff] }
 0x5b7   : > { %v6429_v1 = vpop.f32.mrb[159].mxu1  ;;  %6925 = vmatprep.subr.bf16.mxu1 %v7340_v63  ;;  %v11635_v14 = vld [vmem:[#allocation24_spill] sm:$0xff] }
 0x5b8   : > { %v10673_v56 = vadd.f32 %v6427_v35, %v11623_v55  ;;  %v6430_v58 = vadd.f32 %v6429_v1, %v6428_v43  ;;  %v11636_v35 = vld [vmem:[#allocation26_spill] sm:$0xff]  ;;  %v11637_v43 = vld [vmem:[#allocation28_spill] sm:$0xff] }
 0x5b9   : > { %6894 = vmatmul.mubr.msk.bf16.gmra.mrb[72].mxu1 %vm7731_vm6, %v9875_v9  ;;  %v7343_v9 = vld [vmem:[%s11177_s7 + $0x28] sm:$0xff]  }
 0x5ba   : > { %v10679_v5 = vadd.f32 %v6430_v58, %v11624_v4  ;;  %6897 = vmatprep.mubr.msk.bf16.mxu1 %vm7731_vm6, %v9877_v24  ;;  %6926 = vmatpush3.bf16.msra.mxu1 %v7340_v63  ;;  %v11633_v63 = vld [vmem:[#allocation20_spill] sm:$0xff] }
 0x5bb   : > { %6927 = vmatprep.subr.bf16.mxu1 %v7341_v38 }
 0x5bc   : > { %v6431_v47 = vpop.f32.mrb[160].mxu1 }
 0x5bd   : > { %v6432_v0 = vpop.f32.mrb[161].mxu1 }
 0x5be   : > { %v6433_v2 = vadd.f32 %v6432_v0, %v6431_v47  ;;  %v6434_v26 = vpop.f32.mrb[162].mxu1  ;;  %6928 = vmatpush3.bf16.msra.mxu1 %v7341_v38  ;;  %v11639_v47 = vld [vmem:[#allocation32_spill] sm:$0xff] }
 0x5bf   : > { %v6435_v28 = vpop.f32.mrb[163].mxu1  ;;  %6929 = vmatprep.subr.bf16.mxu1 %v7342_v15 }
 0x5c0   : > { %v10691_v27 = vadd.f32 %v6433_v2, %v10409_v12  ;;  %v6436_v24 = vadd.f32 %v6435_v28, %v6434_v26  ;;  %v7345_v12 = vld [vmem:[%s11177_s7 + $0x38] sm:$0xff]  }
 0x5c1   : > { %6898 = vmatmul.mubr.msk.bf16.gmra.mrb[76].mxu1 %vm7731_vm6, %v9891_v41  ;;  %v11625_v41 = vld [vmem:[#allocation33_spill] sm:$0xff] }
 0x5c2   : > { %v10697_v57 = vadd.f32 %v6436_v24, %v10417_v36  ;;  %6901 = vmatprep.mubr.msk.bf16.mxu1 %vm7731_vm6, %v9911_v10  ;;  %6930 = vmatpush3.bf16.msra.mxu1 %v7342_v15  ;;  %v11626_v10 = vld [vmem:[#allocation19_spill] sm:$0xff]  ;;  %v11638_v15 = vld [vmem:[#allocation30_spill] sm:$0xff] }
 0x5c3   : > { %6931 = vmatprep.subr.bf16.mxu1 %v7343_v9 }
 0x5c6   : > { %6932 = vmatpush3.bf16.msra.mxu1 %v7343_v9 }
 0x5c7   : > { %6933 = vmatprep.subr.bf16.mxu1 %v7344_v33 }
 0x5c9   : > { %6902 = vmatmul.mubr.msk.bf16.gmra.mrb[80].mxu1 %vm7731_vm6, %v9934_v48  ;;  %v11627_v48 = vld [vmem:[#allocation4_spill] sm:$0xff] }
 0x5ca   : > { %6905 = vmatprep.mubr.msk.bf16.mxu1 %vm7731_vm6, %v9936_v3  ;;  %6934 = vmatpush3.bf16.msra.mxu1 %v7344_v33  ;;  %v11628_v3 = vpack.c.bf16 %v11626_v10, %v11627_v48 }
 0x5cb   : > { %6935 = vmatprep.subr.bf16.mxu1 %v7345_v12 }
 0x5ce   : > { %6936 = vmatpush3.bf16.msra.mxu1 %v7345_v12 }
 0x5d1   : > { %6906 = vmatmul.mubr.msk.bf16.gmra.mrb[84].mxu1 %vm7731_vm6, %v9950_v60  ;;  %v11629_v60 = vld [vmem:[#allocation45_spill] sm:$0xff] }
 0x5d2   : > { %6909 = vmatprep.mubr.msk.bf16.mxu1 %vm7731_vm6, %v9973_v17  ;;  %v11630_v17 = vld [vmem:[#allocation43_spill] sm:$0xff] }
 0x5d3   : > { %v4009_v36 = vsel %vm592_vm1, %v11630_v17, %v11629_v60 }
 0x5d9   : > { %6910 = vmatmul.mubr.msk.bf16.gmra.mrb[88].mxu1 %vm7731_vm6, %v9990_v53  ;;  %v6094_v53 = vpack.c.bf16 %v4009_v36, %v11630_v17 }
 0x5da   : > { %6913 = vmatprep.mubr.msk.bf16.mxu1 %vm7731_vm6, %v9992_v30  ;;  %v11631_v30 = vld [vmem:[#allocation12_spill] sm:$0xff] }
 0x5e1   : > { %6914 = vmatmul.mubr.msk.bf16.gmra.mrb[92].mxu1 %vm7731_vm6, %v11625_v41  ;;  %v11640_v41 = vld [vmem:[#allocation34_spill] sm:$0xff] }
 0x5e2   : > { %6917 = vmatprep.mubr.msk.bf16.mxu1 %vm7731_vm6, %v11628_v3 }
 0x5e9   : > { %6918 = vmatmul.mubr.msk.bf16.gmra.mrb[96].mxu1 %vm7731_vm6, %v6094_v53 }
 0x5ea   : > { %6937 = vmatprep.mubr.bf16.mxu1 %v11631_v30  ;;  %v11642_v30 = vld [vmem:[#allocation38_spill] sm:$0xff] }
 0x5f1   : > { %6938 = vmatmul.mubr.bf16.vlgmr.msra.gmra.mrb[228].mxu1 %v11632_v32 }
 0x5f2   : > { %6941 = vmatprep.mubr.bf16.mxu1 %v11633_v63 }
 0x5f9   : > { %6942 = vmatmul.mubr.bf16.gmra.mrb[232].mxu1 %v11634_v21 }
 0x5fa   : > { %6945 = vmatprep.mubr.bf16.mxu1 %v11635_v14 }
 0x601   : > { %6946 = vmatmul.mubr.bf16.gmra.mrb[236].mxu1 %v11636_v35 }
 0x602   : > { %6949 = vmatprep.mubr.bf16.mxu1 %v11637_v43 }
 0x604   : > { %v6477_v11 = vpop.f32.mrb[164].mxu1 }
 0x605   : > { %v6478_v1 = vpop.f32.mrb[165].mxu1 }
 0x606   : > { %v6479_v38 = vadd.f32 %v6478_v1, %v6477_v11  ;;  %v6480_v55 = vpop.f32.mrb[166].mxu1  ;;  %v11644_v1 = vld [vmem:[#allocation42_spill] sm:$0xff] }
 0x607   : > { %v6481_v8 = vpop.f32.mrb[167].mxu1 }
 0x608   : > { %v6482_v58 = vadd.f32 %v6481_v8, %v6480_v55  ;;  %v10749_v4 = vadd.f32 %v10509_v51, %v6479_v38  ;;  %v11641_v51 = vld [vmem:[#allocation36_spill] sm:$0xff] }
 0x609   : > { %6950 = vmatmul.mubr.bf16.gmra.mrb[240].mxu1 %v11638_v15 }
 0x60a   : > { %6953 = vmatprep.mubr.bf16.mxu1 %v11639_v47  ;;  %v10754_v0 = vadd.f32 %v10515_v50, %v6482_v58 }
 0x60c   : > { %v6483_v2 = vpop.f32.mrb[168].mxu1 }
 0x60d   : > { %v6484_v26 = vpop.f32.mrb[169].mxu1 }
 0x60e   : > { %v6485_v28 = vadd.f32 %v6484_v26, %v6483_v2  ;;  %v6486_v9 = vpop.f32.mrb[170].mxu1  ;;  %v11646_v26 = vld [vmem:[#allocation10_spill] sm:$0xff] }
 0x60f   : > { %v6487_v24 = vpop.f32.mrb[171].mxu1 }
 0x610   : > { %v6488_v33 = vadd.f32 %v6487_v24, %v6486_v9  ;;  %v10757_v12 = vadd.f32 %v10525_v25, %v6485_v28  ;;  %v11643_v25 = vld [vmem:[#allocation40_spill] sm:$0xff] }
 0x611   : > { %6954 = vmatmul.mubr.bf16.gmra.mrb[244].mxu1 %v11640_v41 }
 0x612   : > { %6957 = vmatprep.mubr.bf16.mxu1 %v11641_v51  ;;  %v10762_v10 = vadd.f32 %v10531_v49, %v6488_v33 }
 0x614   : > { %v6489_v48 = vpop.f32.mrb[172].mxu1 }
 0x615   : > { %v6490_v3 = vpop.f32.mrb[173].mxu1 }
 0x616   : > { %v6491_v50 = vadd.f32 %v6490_v3, %v6489_v48  ;;  %v6492_v60 = vpop.f32.mrb[174].mxu1 }
 0x617   : > { %v6493_v17 = vpop.f32.mrb[175].mxu1 }
 0x618   : > { %v6494_v36 = vadd.f32 %v6493_v17, %v6492_v60  ;;  %v10765_v53 = vadd.f32 %v10535_v19, %v6491_v50  ;;  %v11645_v19 = vld [vmem:[#allocation44_spill] sm:$0xff] }
 0x619   : > { %6958 = vmatmul.mubr.bf16.gmra.mrb[248].mxu1 %v11642_v30 }
 0x61a   : > { %6961 = vmatprep.mubr.bf16.mxu1 %v11643_v25  ;;  %v10770_v32 = vadd.f32 %v10541_v59, %v6494_v36 }
 0x61c   : > { %v6495_v63 = vpop.f32.mrb[176].mxu1 }
 0x61d   : > { %v6496_v21 = vpop.f32.mrb[177].mxu1 }
 0x61e   : > { %v6497_v49 = vadd.f32 %v6496_v21, %v6495_v63  ;;  %v6498_v14 = vpop.f32.mrb[178].mxu1 }
 0x61f   : > { %v6499_v35 = vpop.f32.mrb[179].mxu1 }
 0x620   : > { %v6500_v43 = vadd.f32 %v6499_v35, %v6498_v14  ;;  %v10773_v11 = vadd.f32 %v10545_v40, %v6497_v49 }
 0x621   : > { %6962 = vmatmul.mubr.bf16.gmra.mrb[252].mxu1 %v11644_v1 }
 0x622   : > { %6965 = vmatprep.mubr.bf16.mxu1 %v11645_v19  ;;  %v10778_v38 = vadd.f32 %v10551_v22, %v6500_v43 }
 0x624   : > { %v6501_v55 = vpop.f32.mrb[180].mxu1 }
 0x625   : > { %v6502_v8 = vpop.f32.mrb[181].mxu1 }
 0x626   : > { %v6503_v59 = vadd.f32 %v6502_v8, %v6501_v55  ;;  %v6504_v58 = vpop.f32.mrb[182].mxu1 }
 0x627   : > { %v6505_v15 = vpop.f32.mrb[183].mxu1 }
 0x628   : > { %v6506_v47 = vadd.f32 %v6505_v15, %v6504_v58  ;;  %v10781_v2 = vadd.f32 %v10555_v23, %v6503_v59 }
 0x629   : > { %6966 = vmatmul.mubr.bf16.gmra.mrb[0].mxu1 %v11646_v26 }
 0x62a   : > { %v10785_v40 = vadd.f32 %v10561_v46, %v6506_v47 }
 0x62c   : > { %v6507_v28 = vpop.f32.mrb[184].mxu1 }
 0x62d   : > { %v6508_v9 = vpop.f32.mrb[185].mxu1 }
 0x62e   : > { %v6509_v24 = vadd.f32 %v6508_v9, %v6507_v28  ;;  %v6510_v33 = vpop.f32.mrb[186].mxu1 }
 0x62f   : > { %v6511_v22 = vpop.f32.mrb[187].mxu1 }
 0x630   : > { %v6512_v41 = vadd.f32 %v6511_v22, %v6510_v33  ;;  %v10788_v51 = vadd.f32 %v10565_v20, %v6509_v24 }
 0x632   : > { %v10791_v48 = vadd.f32 %v10571_v54, %v6512_v41 }
 0x634   : > { %v6513_v3 = vpop.f32.mrb[188].mxu1 }
 0x635   : > { %v6514_v23 = vpop.f32.mrb[189].mxu1 }
 0x636   : > { %v6515_v50 = vadd.f32 %v6514_v23, %v6513_v3  ;;  %v6516_v60 = vpop.f32.mrb[190].mxu1 }
 0x637   : > { %v6517_v17 = vpop.f32.mrb[191].mxu1 }
 0x638   : > { %v6518_v36 = vadd.f32 %v6517_v17, %v6516_v60  ;;  %v10794_v46 = vadd.f32 %v10575_v16, %v6515_v50 }
 0x63a   : > { %v10797_v30 = vadd.f32 %v10581_v29, %v6518_v36 }
 0x63c   : > { %v6519_v25 = vpop.f32.mrb[192].mxu1 }
 0x63d   : > { %v6520_v63 = vpop.f32.mrb[193].mxu1 }
 0x63e   : > { %v6521_v21 = vadd.f32 %v6520_v63, %v6519_v25  ;;  %v6522_v20 = vpop.f32.mrb[194].mxu1 }
 0x63f   : > { %v6523_v49 = vpop.f32.mrb[195].mxu1 }
 0x640   : > { %v6524_v14 = vadd.f32 %v6523_v49, %v6522_v20  ;;  %v10800_v54 = vadd.f32 %v10585_v7, %v6521_v21 }
 0x642   : > { %v10803_v35 = vadd.f32 %v10591_v39, %v6524_v14 }
 0x644   : > { %v6525_v43 = vpop.f32.mrb[196].mxu1 }
 0x645   : > { %v6526_v1 = vpop.f32.mrb[197].mxu1 }
 0x646   : > { %v6527_v19 = vadd.f32 %v6526_v1, %v6525_v43  ;;  %v6528_v16 = vpop.f32.mrb[198].mxu1 }
 0x647   : > { %v6529_v55 = vpop.f32.mrb[199].mxu1 }
 0x648   : > { %v6530_v8 = vadd.f32 %v6529_v55, %v6528_v16  ;;  %v10806_v29 = vadd.f32 %v10595_v6, %v6527_v19 }
 0x64a   : > { %v10809_v59 = vadd.f32 %v10601_v42, %v6530_v8 }
 0x64c   : > { %v6531_v58 = vpop.f32.mrb[200].mxu1 }
 0x64d   : > { %v6532_v15 = vpop.f32.mrb[201].mxu1 }
 0x64e   : > { %v6533_v47 = vadd.f32 %v6532_v15, %v6531_v58  ;;  %v6534_v7 = vpop.f32.mrb[202].mxu1 }
 0x64f   : > { %v6535_v26 = vpop.f32.mrb[203].mxu1 }
 0x650   : > { %v6536_v28 = vadd.f32 %v6535_v26, %v6534_v7  ;;  %v10812_v39 = vadd.f32 %v10605_v18, %v6533_v47 }
 0x652   : > { %v10815_v9 = vadd.f32 %v10611_v31, %v6536_v28 }
 0x654   : > { %v6537_v24 = vpop.f32.mrb[204].mxu1 }
 0x655   : > { %v6538_v33 = vpop.f32.mrb[205].mxu1 }
 0x656   : > { %v6539_v22 = vadd.f32 %v6538_v33, %v6537_v24  ;;  %v6540_v6 = vpop.f32.mrb[206].mxu1 }
 0x657   : > { %v6541_v41 = vpop.f32.mrb[207].mxu1 }
 0x658   : > { %v6542_v3 = vadd.f32 %v6541_v41, %v6540_v6  ;;  %v10818_v42 = vadd.f32 %v10615_v52, %v6539_v22 }
 0x65a   : > { %v10821_v23 = vadd.f32 %v10621_v61, %v6542_v3 }
 0x65c   : > { %v6543_v50 = vpop.f32.mrb[208].mxu1 }
 0x65d   : > { %v6544_v60 = vpop.f32.mrb[209].mxu1 }
 0x65e   : > { %v6545_v17 = vadd.f32 %v6544_v60, %v6543_v50  ;;  %v6546_v18 = vpop.f32.mrb[210].mxu1 }
 0x65f   : > { %v6547_v36 = vpop.f32.mrb[211].mxu1 }
 0x660   : > { %v6548_v25 = vadd.f32 %v6547_v36, %v6546_v18  ;;  %v10824_v31 = vadd.f32 %v10625_v45, %v6545_v17 }
 0x662   : > { %v10827_v63 = vadd.f32 %v10631_v13, %v6548_v25 }
 0x664   : > { %v6549_v21 = vpop.f32.mrb[212].mxu1 }
 0x665   : > { %v6550_v20 = vpop.f32.mrb[213].mxu1 }
 0x666   : > { %v6551_v49 = vadd.f32 %v6550_v20, %v6549_v21  ;;  %v6552_v52 = vpop.f32.mrb[214].mxu1 }
 0x667   : > { %v6553_v14 = vpop.f32.mrb[215].mxu1 }
 0x668   : > { %v6554_v43 = vadd.f32 %v6553_v14, %v6552_v52  ;;  %v10830_v61 = vadd.f32 %v10640_v44, %v6551_v49 }
 0x66a   : > { %v10833_v1 = vadd.f32 %v10645_v34, %v6554_v43 }
 0x66c   : > { %v6555_v19 = vpop.f32.mrb[216].mxu1 }
 0x66d   : > { %v6556_v16 = vpop.f32.mrb[217].mxu1 }
 0x66e   : > { %v6557_v55 = vadd.f32 %v6556_v16, %v6555_v19  ;;  %v6558_v45 = vpop.f32.mrb[218].mxu1 }
 0x66f   : > { %v6559_v8 = vpop.f32.mrb[219].mxu1 }
 0x670   : > { %v6560_v58 = vadd.f32 %v6559_v8, %v6558_v45  ;;  %v10836_v13 = vadd.f32 %v10654_v62, %v6557_v55 }
 0x672   : > { %v10839_v15 = vadd.f32 %v10660_v37, %v6560_v58 }
 0x674   : > { %v6561_v47 = vpop.f32.mrb[220].mxu1 }
 0x675   : > { %v6562_v7 = vpop.f32.mrb[221].mxu1 }
 0x676   : > { %v6563_v26 = vadd.f32 %v6562_v7, %v6561_v47  ;;  %v6564_v44 = vpop.f32.mrb[222].mxu1 }
 0x677   : > { %v6565_v28 = vpop.f32.mrb[223].mxu1 }
 0x678   : > { %v6566_v24 = vadd.f32 %v6565_v28, %v6564_v44  ;;  %v10842_v34 = vadd.f32 %v10673_v56, %v6563_v26 }
 0x67a   : > { %v10845_v33 = vadd.f32 %v10679_v5, %v6566_v24 }
 0x67c   : > { %v6567_v22 = vpop.f32.mrb[224].mxu1 }
 0x67d   : > { %v6568_v6 = vpop.f32.mrb[225].mxu1 }
 0x67e   : > { %v6569_v41 = vadd.f32 %v6568_v6, %v6567_v22  ;;  %v6570_v62 = vpop.f32.mrb[226].mxu1 }
 0x67f   : > { %v6571_v3 = vpop.f32.mrb[227].mxu1 }
 0x680   : > { %v6572_v50 = vadd.f32 %v6571_v3, %v6570_v62  ;;  %v7070_v37 = vadd.f32 %v10691_v27, %v6569_v41 }
 0x682   : > { %v7076_v60 = vadd.f32 %v10697_v57, %v6572_v50 }
 0x684   : > { %v6891_v17 = vpop.f32.mrb[68].mxu1 }
 0x685   : > { %v10850_v18 = vadd.f32 %v10757_v12, %v6891_v17  ;;  %v4406_v36 = vpop.f32.mrb[69].mxu1 }
 0x686   : > { %v10853_v56 = vadd.f32 %v10749_v4, %v4406_v36  ;;  %v6892_v5 = vpop.f32.mrb[70].mxu1 }
 0x687   : > { %v10856_v25 = vadd.f32 %v10762_v10, %v6892_v5  ;;  %v4409_v21 = vpop.f32.mrb[71].mxu1 }
 0x688   : > { %v10859_v20 = vadd.f32 %v10754_v0, %v4409_v21 }
 0x68c   : > { %v6895_v49 = vpop.f32.mrb[72].mxu1 }
 0x68d   : > { %v10862_v27 = vadd.f32 %v10773_v11, %v6895_v49  ;;  %v4422_v57 = vpop.f32.mrb[73].mxu1 }
 0x68e   : > { %v10865_v12 = vadd.f32 %v10765_v53, %v4422_v57  ;;  %v6896_v52 = vpop.f32.mrb[74].mxu1 }
 0x68f   : > { %v10868_v4 = vadd.f32 %v10778_v38, %v6896_v52  ;;  %v4425_v14 = vpop.f32.mrb[75].mxu1 }
 0x690   : > { %v10871_v10 = vadd.f32 %v10770_v32, %v4425_v14 }
 0x694   : > { %v6899_v43 = vpop.f32.mrb[76].mxu1 }
 0x695   : > { %v10874_v0 = vadd.f32 %v10788_v51, %v6899_v43  ;;  %v4438_v19 = vpop.f32.mrb[77].mxu1 }
 0x696   : > { %v10877_v11 = vadd.f32 %v10781_v2, %v4438_v19  ;;  %v6900_v16 = vpop.f32.mrb[78].mxu1 }
 0x697   : > { %v10880_v53 = vadd.f32 %v10791_v48, %v6900_v16  ;;  %v4441_v55 = vpop.f32.mrb[79].mxu1 }
 0x698   : > { %v10883_v38 = vadd.f32 %v10785_v40, %v4441_v55 }
 0x69c   : > { %v6903_v45 = vpop.f32.mrb[80].mxu1 }
 0x69d   : > { %v10886_v32 = vadd.f32 %v10800_v54, %v6903_v45  ;;  %v4454_v8 = vpop.f32.mrb[81].mxu1 }
 0x69e   : > { %v10889_v51 = vadd.f32 %v10794_v46, %v4454_v8  ;;  %v6904_v58 = vpop.f32.mrb[82].mxu1 }
 0x69f   : > { %v10892_v2 = vadd.f32 %v10803_v35, %v6904_v58  ;;  %v4457_v47 = vpop.f32.mrb[83].mxu1 }
 0x6a0   : > { %v10895_v48 = vadd.f32 %v10797_v30, %v4457_v47 }
 0x6a4   : > { %v6907_v7 = vpop.f32.mrb[84].mxu1 }
 0x6a5   : > { %v10898_v40 = vadd.f32 %v10812_v39, %v6907_v7  ;;  %v4470_v26 = vpop.f32.mrb[85].mxu1 }
 0x6a6   : > { %v10901_v54 = vadd.f32 %v10806_v29, %v4470_v26  ;;  %v6908_v44 = vpop.f32.mrb[86].mxu1 }
 0x6a7   : > { %v10904_v46 = vadd.f32 %v10815_v9, %v6908_v44  ;;  %v4473_v28 = vpop.f32.mrb[87].mxu1 }
 0x6a8   : > { %v10907_v35 = vadd.f32 %v10809_v59, %v4473_v28 }
 0x6ac   : > { %v6911_v24 = vpop.f32.mrb[88].mxu1 }
 0x6ad   : > { %v10910_v30 = vadd.f32 %v10824_v31, %v6911_v24  ;;  %v4486_v22 = vpop.f32.mrb[89].mxu1 }
 0x6ae   : > { %v10913_v39 = vadd.f32 %v10818_v42, %v4486_v22  ;;  %v6912_v6 = vpop.f32.mrb[90].mxu1 }
 0x6af   : > { %v10916_v29 = vadd.f32 %v10827_v63, %v6912_v6  ;;  %v4489_v41 = vpop.f32.mrb[91].mxu1 }
 0x6b0   : > { %v10919_v9 = vadd.f32 %v10821_v23, %v4489_v41 }
 0x6b4   : > { %v6915_v62 = vpop.f32.mrb[92].mxu1 }
 0x6b5   : > { %v10922_v59 = vadd.f32 %v10836_v13, %v6915_v62  ;;  %v4502_v3 = vpop.f32.mrb[93].mxu1 }
 0x6b6   : > { %v10925_v31 = vadd.f32 %v10830_v61, %v4502_v3  ;;  %v6916_v50 = vpop.f32.mrb[94].mxu1 }
 0x6b7   : > { %v10928_v42 = vadd.f32 %v10839_v15, %v6916_v50  ;;  %v4505_v17 = vpop.f32.mrb[95].mxu1  ;;  %v10943_v15 = vld [vmem:[%s11175_s5] ss:$0 sm:$0xff] }
 0x6b8   : > { %v10931_v63 = vadd.f32 %v10833_v1, %v4505_v17  ;;  %v4572_v57 = vmul.f32 %v10853_v56, %v10943_v15  ;;  %v4575_v14 = vmul.f32 %v10856_v25, %v10943_v15  ;;  %v4573_v19 = vmul.f32 %v10859_v20, %v10943_v15 }
 0x6b9   : > { %v4578_v6 = vmul.f32 %v10862_v27, %v10943_v15  ;;  %v4576_v3 = vmul.f32 %v10865_v12, %v10943_v15  ;;  %v4577_v27 = vmul.f32 %v10871_v10, %v10943_v15 }
 0x6bc   : > { %v6919_v36 = vpop.f32.mrb[96].mxu1 }
 0x6bd   : > { %v10933_v5 = vadd.f32 %v7070_v37, %v6919_v36  ;;  %v4518_v23 = vpop.f32.mrb[97].mxu1  ;;  %v10951_v37 = vld [vmem:[%s11178_s8] ss:$0 sm:$0xff] }
 0x6be   : > { %v10936_v21 = vadd.f32 %v10842_v34, %v4518_v23  ;;  %v6920_v13 = vpop.f32.mrb[98].mxu1  ;;  %v4574_v34 = vmul.f32 %v10850_v18, %v10943_v15  ;;  %v4579_v23 = vmul.f32 %v10868_v4, %v10943_v15 }
 0x6bf   : > { %v10938_v49 = vadd.f32 %v7076_v60, %v6920_v13  ;;  %v4521_v61 = vpop.f32.mrb[99].mxu1  ;;  %v10958_v60 = vld [vmem:[%s11176_s6] ss:$0 sm:$0xff] }
 0x6c0   : > { %v10946_v1 = vadd.f32 %v10845_v33, %v4521_v61  ;;  %v10965_v33 = vld [vmem:[%s11179_s9] ss:$0 sm:$0xff]  ;;  %v4613_v56 = vadd.f32 %v10958_v60, %v4574_v34  ;;  %v4611_v47 = vadd.f32 %v10958_v60, %v4572_v57  ;;  %v4614_v26 = vadd.f32 %v10958_v60, %v4575_v14 }
 0x6c1   : > { %v4612_v28 = vadd.f32 %v10958_v60, %v4573_v19  ;;  %v4617_v14 = vadd.f32 %v10958_v60, %v4578_v6  ;;  %v4615_v19 = vadd.f32 %v10958_v60, %v4576_v3 }
 0x6c4   : > { %v6939_v52 = vpop.f32.mrb[228].mxu1 }
 0x6c5   : > { %v4877_v43 = vmul.f32 %v6939_v52, %v10951_v37  ;;  %v4741_v18 = vpop.f32.mrb[229].mxu1 }
 0x6c6   : > { %v4875_v16 = vmul.f32 %v10951_v37, %v4741_v18  ;;  %v6940_v55 = vpop.f32.mrb[230].mxu1 }
 0x6c7   : > { %v4916_v45 = vadd.f32 %v10965_v33, %v4877_v43  ;;  %v4878_v8 = vmul.f32 %v6940_v55, %v10951_v37  ;;  %v4744_v58 = vpop.f32.mrb[231].mxu1  ;;  %v4618_v55 = vadd.f32 %v10958_v60, %v4579_v23 }
 0x6c8   : > { %v4914_v25 = vadd.f32 %v10965_v33, %v4875_v16  ;;  %v4876_v7 = vmul.f32 %v10951_v37, %v4744_v58 }
 0x6c9   : > { %v4948_v20 = vadd.f32 %v4916_v45, %v4613_v56  ;;  %v4917_v44 = vadd.f32 %v10965_v33, %v4878_v8  ;;  %v4616_v8 = vadd.f32 %v10958_v60, %v4577_v27 }
 0x6ca   : > { %v4946_v24 = vadd.f32 %v4914_v25, %v4611_v47  ;;  %v4915_v22 = vadd.f32 %v10965_v33, %v4876_v7  ;;  %v4582_v25 = vmul.f32 %v10874_v0, %v10943_v15  ;;  %v4581_v0 = vmul.f32 %v10883_v38, %v10943_v15 }
 0x6cb   : > { %v4980_v41 = vmax.f32 %v4948_v20, 0.0  ;;  %v4949_v62 = vadd.f32 %v4917_v44, %v4614_v26  ;;  %v4580_v20 = vmul.f32 %v10877_v11, %v10943_v15 }
 0x6cc   : > { %v4978_v50 = vmax.f32 %v4946_v24, 0.0  ;;  %v4947_v17 = vadd.f32 %v4915_v22, %v4612_v28  ;;  %v6943_v36 = vpop.f32.mrb[232].mxu1  ;;  %v4583_v22 = vmul.f32 %v10880_v53, %v10943_v15 }
 0x6cd   : > { %5012 = vst [vmem:[%s10986_s27 + $0x10] sm:$0xff] %v4980_v41  ;;  %v4981_v13 = vmax.f32 %v4949_v62, 0.0  ;;  %v4881_v61 = vmul.f32 %v6943_v36, %v10951_v37  ;;  %v4757_v34 = vpop.f32.mrb[233].mxu1 }
 0x6ce   : > { %5010 = vst [vmem:[%s10986_s27] sm:$0xff] %v4978_v50  ;;  %v4979_v57 = vmax.f32 %v4947_v17, 0.0  ;;  %v4879_v52 = vmul.f32 %v10951_v37, %v4757_v34  ;;  %v6944_v12 = vpop.f32.mrb[234].mxu1  ;;  %v4621_v17 = vadd.f32 %v10958_v60, %v4582_v25  ;;  %v4622_v34 = vadd.f32 %v10958_v60, %v4583_v22 }
 0x6cf   : > { %5013 = vst [vmem:[%s10986_s27 + $0x18] sm:$0xff] %v4981_v13  ;;  %v4920_v43 = vadd.f32 %v10965_v33, %v4881_v61  ;;  %v4882_v4 = vmul.f32 %v6944_v12, %v10951_v37  ;;  %v4760_v18 = vpop.f32.mrb[235].mxu1  ;;  %v4619_v13 = vadd.f32 %v10958_v60, %v4580_v20 }
 0x6d0   : > { %5011 = vst [vmem:[%s10986_s27 + $0x8] sm:$0xff] %v4979_v57  ;;  %v4918_v16 = vadd.f32 %v10965_v33, %v4879_v52  ;;  %v4880_v10 = vmul.f32 %v10951_v37, %v4760_v18  ;;  %v4620_v52 = vadd.f32 %v10958_v60, %v4581_v0 }
 0x6d1   : > { %v4952_v56 = vadd.f32 %v4920_v43, %v4617_v14  ;;  %v4921_v45 = vadd.f32 %v10965_v33, %v4882_v4  ;;  %v4586_v43 = vmul.f32 %v10886_v32, %v10943_v15  ;;  %v4585_v32 = vmul.f32 %v10895_v48, %v10943_v15 }
 0x6d2   : > { %v4950_v58 = vadd.f32 %v4918_v16, %v4615_v19  ;;  %v4919_v47 = vadd.f32 %v10965_v33, %v4880_v10  ;;  %v4584_v19 = vmul.f32 %v10889_v51, %v10943_v15 }
 0x6d3   : > { %v4984_v7 = vmax.f32 %v4952_v56, 0.0  ;;  %v4953_v26 = vadd.f32 %v4921_v45, %v4618_v55  ;;  %v4587_v56 = vmul.f32 %v10892_v2, %v10943_v15 }
 0x6d4   : > { %v4982_v44 = vmax.f32 %v4950_v58, 0.0  ;;  %v4951_v28 = vadd.f32 %v4919_v47, %v4616_v8  ;;  %v6947_v24 = vpop.f32.mrb[236].mxu1 }
 0x6d5   : > { %5016 = vst [vmem:[%s10986_s27 + $0x30] sm:$0xff] %v4984_v7  ;;  %v4985_v6 = vmax.f32 %v4953_v26, 0.0  ;;  %v4885_v41 = vmul.f32 %v6947_v24, %v10951_v37  ;;  %v4773_v62 = vpop.f32.mrb[237].mxu1  ;;  %v4625_v7 = vadd.f32 %v10958_v60, %v4586_v43  ;;  %v4626_v24 = vadd.f32 %v10958_v60, %v4587_v56 }
 0x6d6   : > { %5014 = vst [vmem:[%s10986_s27 + $0x20] sm:$0xff] %v4982_v44  ;;  %v4983_v3 = vmax.f32 %v4951_v28, 0.0  ;;  %v4883_v50 = vmul.f32 %v10951_v37, %v4773_v62  ;;  %v6948_v11 = vpop.f32.mrb[238].mxu1  ;;  %v4623_v44 = vadd.f32 %v10958_v60, %v4584_v19 }
 0x6d7   : > { %5017 = vst [vmem:[%s10986_s27 + $0x38] sm:$0xff] %v4985_v6  ;;  %v4924_v36 = vadd.f32 %v10965_v33, %v4885_v41  ;;  %v4886_v53 = vmul.f32 %v6948_v11, %v10951_v37  ;;  %v4776_v23 = vpop.f32.mrb[239].mxu1  ;;  %v4624_v41 = vadd.f32 %v10958_v60, %v4585_v32  ;;  %v4592_v32 = vmul.f32 %v10913_v39, %v10943_v15 }
 0x6d8   : > { %5015 = vst [vmem:[%s10986_s27 + $0x28] sm:$0xff] %v4983_v3  ;;  %v4922_v61 = vadd.f32 %v10965_v33, %v4883_v50  ;;  %v4884_v38 = vmul.f32 %v10951_v37, %v4776_v23  ;;  %v4590_v3 = vmul.f32 %v10898_v40, %v10943_v15  ;;  %v4589_v40 = vmul.f32 %v10907_v35, %v10943_v15 }
 0x6d9   : > { %v4956_v27 = vadd.f32 %v4924_v36, %v4621_v17  ;;  %v4925_v57 = vadd.f32 %v10965_v33, %v4886_v53  ;;  %v4588_v17 = vmul.f32 %v10901_v54, %v10943_v15 }
 0x6da   : > { %v4954_v12 = vadd.f32 %v4922_v61, %v4619_v13  ;;  %v4923_v14 = vadd.f32 %v10965_v33, %v4884_v38  ;;  %v4591_v13 = vmul.f32 %v10904_v46, %v10943_v15 }
 0x6db   : > { %v4988_v4 = vmax.f32 %v4956_v27, 0.0  ;;  %v4957_v18 = vadd.f32 %v4925_v57, %v4622_v34  ;;  %v4627_v43 = vadd.f32 %v10958_v60, %v4588_v17 }
 0x6dc   : > { %v4986_v16 = vmax.f32 %v4954_v12, 0.0  ;;  %v4955_v10 = vadd.f32 %v4923_v14, %v4620_v52  ;;  %v6951_v55 = vpop.f32.mrb[240].mxu1  ;;  %v4629_v52 = vadd.f32 %v10958_v60, %v4590_v3 }
 0x6dd   : > { %5020 = vst [vmem:[%s10986_s27 + $0x50] sm:$0xff] %v4988_v4  ;;  %v4989_v45 = vmax.f32 %v4957_v18, 0.0  ;;  %v4889_v8 = vmul.f32 %v6951_v55, %v10951_v37  ;;  %v4789_v58 = vpop.f32.mrb[241].mxu1  ;;  %v4630_v18 = vadd.f32 %v10958_v60, %v4591_v13  ;;  %v4596_v13 = vmul.f32 %v10925_v31, %v10943_v15 }
 0x6de   : > { %5018 = vst [vmem:[%s10986_s27 + $0x40] sm:$0xff] %v4986_v16  ;;  %v4987_v47 = vmax.f32 %v4955_v10, 0.0  ;;  %v4887_v25 = vmul.f32 %v10951_v37, %v4789_v58  ;;  %v6952_v51 = vpop.f32.mrb[242].mxu1  ;;  %v4628_v10 = vadd.f32 %v10958_v60, %v4589_v40  ;;  %v4599_v40 = vmul.f32 %v10928_v42, %v10943_v15 }
 0x6df   : > { %5021 = vst [vmem:[%s10986_s27 + $0x58] sm:$0xff] %v4989_v45  ;;  %v4928_v26 = vadd.f32 %v10965_v33, %v4889_v8  ;;  %v4890_v2 = vmul.f32 %v6952_v51, %v10951_v37  ;;  %v4792_v20 = vpop.f32.mrb[243].mxu1  ;;  %v4594_v45 = vmul.f32 %v10910_v30, %v10943_v15  ;;  %v4593_v30 = vmul.f32 %v10919_v9, %v10943_v15 }
 0x6e0   : > { %5019 = vst [vmem:[%s10986_s27 + $0x48] sm:$0xff] %v4987_v47  ;;  %v4926_v28 = vadd.f32 %v10965_v33, %v4887_v25  ;;  %v4888_v48 = vmul.f32 %v10951_v37, %v4792_v20 }
 0x6e1   : > { %v4960_v22 = vadd.f32 %v4928_v26, %v4625_v7  ;;  %v4929_v6 = vadd.f32 %v10965_v33, %v4890_v2  ;;  %v4595_v7 = vmul.f32 %v10916_v29, %v10943_v15 }
 0x6e2   : > { %v4958_v62 = vadd.f32 %v4926_v28, %v4623_v44  ;;  %v4927_v0 = vadd.f32 %v10965_v33, %v4888_v48  ;;  %v4633_v48 = vadd.f32 %v10958_v60, %v4594_v45  ;;  %v4602_v45 = vmul.f32 %v10933_v5, %v10943_v15 }
 0x6e3   : > { %v4992_v50 = vmax.f32 %v4960_v22, 0.0  ;;  %v4961_v11 = vadd.f32 %v4929_v6, %v4626_v24  ;;  %v4631_v6 = vadd.f32 %v10958_v60, %v4592_v32  ;;  %v4600_v32 = vmul.f32 %v10936_v21, %v10943_v15 }
 0x6e4   : > { %v4990_v36 = vmax.f32 %v4958_v62, 0.0  ;;  %v4959_v53 = vadd.f32 %v4927_v0, %v4624_v41  ;;  %v6955_v23 = vpop.f32.mrb[244].mxu1  ;;  %v4634_v62 = vadd.f32 %v10958_v60, %v4595_v7  ;;  %v4603_v7 = vmul.f32 %v10938_v49, %v10943_v15 }
 0x6e5   : > { %5024 = vst [vmem:[%s10986_s27 + $0x70] sm:$0xff] %v4992_v50  ;;  %v4993_v61 = vmax.f32 %v4961_v11, 0.0  ;;  %v4893_v38 = vmul.f32 %v6955_v23, %v10951_v37  ;;  %v4805_v34 = vpop.f32.mrb[245].mxu1  ;;  %v4632_v50 = vadd.f32 %v10958_v60, %v4593_v30  ;;  %v4601_v5 = vmul.f32 %v10946_v1, %v10943_v15 }
 0x6e6   : > { %5022 = vst [vmem:[%s10986_s27 + $0x60] sm:$0xff] %v4990_v36  ;;  %v4991_v27 = vmax.f32 %v4959_v53, 0.0  ;;  %v4891_v57 = vmul.f32 %v10951_v37, %v4805_v34  ;;  %v6956_v54 = vpop.f32.mrb[246].mxu1  ;;  %v4598_v36 = vmul.f32 %v10922_v59, %v10943_v15  ;;  %v4597_v59 = vmul.f32 %v10931_v63, %v10943_v15 }
 0x6e7   : > { %5025 = vst [vmem:[%s10986_s27 + $0x78] sm:$0xff] %v4993_v61  ;;  %v4932_v12 = vadd.f32 %v10965_v33, %v4893_v38  ;;  %v4894_v46 = vmul.f32 %v6956_v54, %v10951_v37  ;;  %v4808_v14 = vpop.f32.mrb[247].mxu1 }
 0x6e8   : > { %5023 = vst [vmem:[%s10986_s27 + $0x68] sm:$0xff] %v4991_v27  ;;  %v4930_v4 = vadd.f32 %v10965_v33, %v4891_v57  ;;  %v4892_v35 = vmul.f32 %v10951_v37, %v4808_v14 }
 0x6e9   : > { %v4964_v19 = vadd.f32 %v4932_v12, %v4629_v52  ;;  %v4933_v16 = vadd.f32 %v10965_v33, %v4894_v46  ;;  %v4637_v46 = vadd.f32 %v10958_v60, %v4598_v36 }
 0x6ea   : > { %v4962_v55 = vadd.f32 %v4930_v4, %v4627_v43  ;;  %v4931_v56 = vadd.f32 %v10965_v33, %v4892_v35  ;;  %v4635_v4 = vadd.f32 %v10958_v60, %v4596_v13 }
 0x6eb   : > { %v4996_v8 = vmax.f32 %v4964_v19, 0.0  ;;  %v4965_v58 = vadd.f32 %v4933_v16, %v4630_v18  ;;  %v4638_v18 = vadd.f32 %v10958_v60, %v4599_v40 }
 0x6ec   : > { %v4994_v47 = vmax.f32 %v4962_v55, 0.0  ;;  %v4963_v25 = vadd.f32 %v4931_v56, %v4628_v10  ;;  %v6959_v51 = vpop.f32.mrb[248].mxu1  ;;  %v4636_v10 = vadd.f32 %v10958_v60, %v4597_v59 }
 0x6ed   : > { %5028 = vst [vmem:[%s10986_s27 + $0x90] sm:$0xff] %v4996_v8  ;;  %v4997_v26 = vmax.f32 %v4965_v58, 0.0  ;;  %v4897_v2 = vmul.f32 %v6959_v51, %v10951_v37  ;;  %v4821_v20 = vpop.f32.mrb[249].mxu1 }
 0x6ee   : > { %5026 = vst [vmem:[%s10986_s27 + $0x80] sm:$0xff] %v4994_v47  ;;  %v4995_v44 = vmax.f32 %v4963_v25, 0.0  ;;  %v4895_v28 = vmul.f32 %v10951_v37, %v4821_v20  ;;  %v6960_v39 = vpop.f32.mrb[250].mxu1 }
 0x6ef   : > { %5029 = vst [vmem:[%s10986_s27 + $0x98] sm:$0xff] %v4997_v26  ;;  %v4936_v24 = vadd.f32 %v10965_v33, %v4897_v2  ;;  %v4898_v29 = vmul.f32 %v6960_v39, %v10951_v37  ;;  %v4824_v22 = vpop.f32.mrb[251].mxu1 }
 0x6f0   : > { %5027 = vst [vmem:[%s10986_s27 + $0x88] sm:$0xff] %v4995_v44  ;;  %v4934_v41 = vadd.f32 %v10965_v33, %v4895_v28  ;;  %v4896_v9 = vmul.f32 %v10951_v37, %v4824_v22  ;;  %v4641_v28 = vadd.f32 %v10958_v60, %v4602_v45 }
 0x6f1   : > { %v4968_v0 = vadd.f32 %v4936_v24, %v4633_v48  ;;  %v4937_v3 = vadd.f32 %v10965_v33, %v4898_v29  ;;  %v4639_v24 = vadd.f32 %v10958_v60, %v4600_v32  ;;  %v4642_v29 = vadd.f32 %v10958_v60, %v4603_v7 }
 0x6f2   : > { %v4966_v11 = vadd.f32 %v4934_v41, %v4631_v6  ;;  %v4935_v17 = vadd.f32 %v10965_v33, %v4896_v9  ;;  %v4640_v41 = vadd.f32 %v10958_v60, %v4601_v5 }
 0x6f3   : > { %v5000_v53 = vmax.f32 %v4968_v0, 0.0  ;;  %v4969_v23 = vadd.f32 %v4937_v3, %v4634_v62 }
 0x6f4   : > { %v4998_v61 = vmax.f32 %v4966_v11, 0.0  ;;  %v4967_v38 = vadd.f32 %v4935_v17, %v4632_v50  ;;  %v6963_v34 = vpop.f32.mrb[252].mxu1 }
 0x6f5   : > { %5032 = vst [vmem:[%s10986_s27 + $0xb0] sm:$0xff] %v5000_v53  ;;  %v5001_v27 = vmax.f32 %v4969_v23, 0.0  ;;  %v4901_v57 = vmul.f32 %v6963_v34, %v10951_v37  ;;  %v4837_v54 = vpop.f32.mrb[253].mxu1 }
 0x6f6   : > { %5030 = vst [vmem:[%s10986_s27 + $0xa0] sm:$0xff] %v4998_v61  ;;  %v4999_v52 = vmax.f32 %v4967_v38, 0.0  ;;  %v4899_v12 = vmul.f32 %v10951_v37, %v4837_v54  ;;  %v6964_v31 = vpop.f32.mrb[254].mxu1 }
 0x6f7   : > { %5033 = vst [vmem:[%s10986_s27 + $0xb8] sm:$0xff] %v5001_v27  ;;  %v4940_v14 = vadd.f32 %v10965_v33, %v4901_v57  ;;  %v4902_v42 = vmul.f32 %v6964_v31, %v10951_v37  ;;  %v4840_v43 = vpop.f32.mrb[255].mxu1 }
 0x6f8   : > { %5031 = vst [vmem:[%s10986_s27 + $0xa8] sm:$0xff] %v4999_v52  ;;  %v4938_v35 = vadd.f32 %v10965_v33, %v4899_v12  ;;  %v4900_v63 = vmul.f32 %v10951_v37, %v4840_v43 }
 0x6f9   : > { %v4972_v19 = vadd.f32 %v4940_v14, %v4637_v46  ;;  %v4941_v16 = vadd.f32 %v10965_v33, %v4902_v42 }
 0x6fa   : > { %v4970_v55 = vadd.f32 %v4938_v35, %v4635_v4  ;;  %v4939_v56 = vadd.f32 %v10965_v33, %v4900_v63 }
 0x6fb   : > { %v5004_v8 = vmax.f32 %v4972_v19, 0.0  ;;  %v4973_v58 = vadd.f32 %v4941_v16, %v4638_v18 }
 0x6fc   : > { %v5002_v47 = vmax.f32 %v4970_v55, 0.0  ;;  %v4971_v25 = vadd.f32 %v4939_v56, %v4636_v10  ;;  %v6967_v51 = vpop.f32.mrb[0].mxu1 }
 0x6fd   : > { %5036 = vst [vmem:[%s10986_s27 + $0xd0] sm:$0xff] %v5004_v8  ;;  %v5005_v26 = vmax.f32 %v4973_v58, 0.0  ;;  %v4905_v2 = vmul.f32 %v6967_v51, %v10951_v37  ;;  %v4853_v20 = vpop.f32.mrb[1].mxu1 }
 0x6fe   : > { %5034 = vst [vmem:[%s10986_s27 + $0xc0] sm:$0xff] %v5002_v47  ;;  %v5003_v30 = vmax.f32 %v4971_v25, 0.0  ;;  %v4903_v44 = vmul.f32 %v10951_v37, %v4853_v20  ;;  %v6968_v21 = vpop.f32.mrb[2].mxu1 }
 0x6ff   : > { %5037 = vst [vmem:[%s10986_s27 + $0xd8] sm:$0xff] %v5005_v26  ;;  %v4944_v39 = vadd.f32 %v10965_v33, %v4905_v2  ;;  %v4906_v49 = vmul.f32 %v6968_v21, %v10951_v37  ;;  %v4856_v48 = vpop.f32.mrb[3].mxu1 }
 0x700   : > { %5035 = vst [vmem:[%s10986_s27 + $0xc8] sm:$0xff] %v5003_v30  ;;  %v4942_v15 = vadd.f32 %v10965_v33, %v4903_v44  ;;  %v4904_v1 = vmul.f32 %v10951_v37, %v4856_v48 }
 0x701   : > { %v4976_v22 = vadd.f32 %v4944_v39, %v4641_v28  ;;  %v4945_v6 = vadd.f32 %v10965_v33, %v4906_v49 }
 0x702   : > { %v4974_v9 = vadd.f32 %v4942_v15, %v4639_v24  ;;  %v4943_v62 = vadd.f32 %v10965_v33, %v4904_v1 }
 0x703   : > { %v5008_v0 = vmax.f32 %v4976_v22, 0.0  ;;  %v4977_v3 = vadd.f32 %v4945_v6, %v4642_v29 }
 0x704   : > { %v5006_v50 = vmax.f32 %v4974_v9, 0.0  ;;  %v4975_v11 = vadd.f32 %v4943_v62, %v4640_v41 }
 0x705   : > { %5040 = vst [vmem:[%s10986_s27 + $0xf0] sm:$0xff] %v5008_v0  ;;  %v5009_v17 = vmax.f32 %v4977_v3, 0.0 }
 0x706   : > { %5038 = vst [vmem:[%s10986_s27 + $0xe0] sm:$0xff] %v5006_v50  ;;  %v5007_v36 = vmax.f32 %v4975_v11, 0.0 }
 0x707   : > { %5041 = vst [vmem:[%s10986_s27 + $0xf8] sm:$0xff] %v5009_v17 }
 0x708   : > { %5039 = vst [vmem:[%s10986_s27 + $0xe8] sm:$0xff] %v5007_v36 }
 0x709 PF: > { %s20_s15 = sadd.s32 1, %s7371_s15   ;;  %s11647_s13 = smov %s7367_s14 }
 0x70a   : > { %p17_p5 = scmp.ge.s32.totalorder %s20_s15, 4   ;;  %s11648_s14 = smov %s11650_s16 }
 0x70c   :  { %19 = sbr.rel (!%p17_p5) target bundleno = 2 (0x2), region = 94 }

</bundles_post_ra>
